<compile_context>
chip_gen: v5e
topology: v5e:2x2
jax: 0.10.0
libtpu: 0.0.40
codegen_flags: <defaults>
</compile_context>

<pallas_src>
import functools

import jax
import jax.numpy as jnp
from jax.experimental import pallas as pl
from jax.experimental.pallas import tpu as pltpu


# ----------------------------- Pallas kernel -------------------------------

def _seg_max(y, k, g, seg_off):
    """Max over the K G-wide lane segments of y (rows, K*G) -> (rows, G).

    Power-of-two K: a log2(K)-step lane-rotate max tree (XLU slot, no sublane
    relayout).  Its result is periodic with period G, so the returned G-wide
    slice is taken at `seg_off % (K*G)`; matching the lane offset it will be
    stored at avoids a lane rotate on the store."""
    if k & (k - 1) == 0:
        s = k * g
        while s > g:
            s //= 2
            y = jnp.maximum(y, pltpu.roll(y, shift=s, axis=1))
        off = seg_off % (k * g)
        return y[:, off:off + g]
    # TODO(synk): non-power-of-two K falls back to a sublane reshape reduce.
    return jnp.max(y.reshape(y.shape[0], k, g), axis=1)


def _graphconv_kernel(num_layers, growth, knn, in_ch,
                      feat_ref, wall_ref, ball_ref, *rest):
    """One (batch, N-tile) block of the dense-growth FC stack, lane-packed:
    per-edge activations are (TN, K*G) slabs, one MXU dot per layer."""
    out_ref = rest[-1]
    hd_refs = rest[:-1]                     # block-diag weights, layers 2..L
    L, G, K, C = num_layers, growth, knn, in_ch
    KG = K * G

    feat = feat_ref[...]                    # (TN, (K+1)*C) = [x | knn_0..knn_{K-1}]

    # One MXU call: layer-1 per-edge pre-activations (K lane segments) plus the
    # per-point (x @ W_x + b) terms of every layer, all in pre's columns.
    pre = jnp.dot(feat, wall_ref[...], preferred_element_type=jnp.float32)
    pre = pre + ball_ref[...]               # (TN, (L-1)*KG + G), f32

    # x segment of the output (max over K of a per-point constant is itself).
    out_ref[:, L * G:L * G + C] = feat[:, 0:C].astype(out_ref.dtype)

    # Layer 1.
    h1 = jnp.maximum(pre[:, 0:KG], 0.0)     # (TN, KG)
    off1 = (L - 1) * G
    out_ref[:, off1:off1 + G] = _seg_max(h1, K, G, off1).astype(out_ref.dtype)

    # Layers 2..L; y is the running lane-concat [h_{i-1}, ..., h_1].
    y = h1
    for i in range(2, L + 1):
        w = hd_refs[i - 2][...]             # ((i-1)*KG, KG) block-diagonal
        z = jnp.dot(y.astype(w.dtype), w, preferred_element_type=jnp.float32)
        if i < L:
            hi = jnp.maximum(z + pre[:, (i - 1) * KG:i * KG], 0.0)
            off = (L - i) * G
            out_ref[:, off:off + G] = _seg_max(hi, K, G, off).astype(out_ref.dtype)
            y = jnp.concatenate([hi, y], axis=-1)
        else:
            # Last layer: no activation, so the per-point term (+ bias) commutes
            # with the K-max and is added on the reduced (TN, G) slab.
            red = _seg_max(z, K, G, 0) + pre[:, (L - 1) * KG:(L - 1) * KG + G]
            out_ref[:, 0:G] = red.astype(out_ref.dtype)


# ------------------------------ JAX glue ------------------------------------

def get_knn_idx(query, pos, k, offset=1):
    """(B, N, 3) -> (B, N, K) int32 neighbor indices (ascending distance)."""
    # TODO(synk): knn search kept in plain JAX (argsort), not Pallas.
    d = jnp.sum((query[:, :, None, :] - pos[:, None, :, :]) ** 2, axis=-1)
    idx = jnp.argsort(d, axis=-1)[:, :, offset:offset + k]
    return idx.astype(jnp.int32)


def knn_group(x, knn_idx):
    """x: (B, N, C), knn_idx: (B, N, K) -> (B, N, K, C)."""
    return jnp.take_along_axis(x[:, None, :, :], knn_idx[:, :, :, None], axis=2)


def init_graphconv_params(key, in_channels, num_fc_layers, growth_rate,
                          bn_eps=1e-5):
    """Deterministic param init; eval-mode BatchNorm2d (gamma=1, beta=0,
    running_mean=0, running_var=1) folded into the linear weight/bias."""
    # TODO(synk): real checkpoints need their actual BN running stats folded in.
    params = []
    layer_in = [in_channels * 3]
    for i in range(1, num_fc_layers - 1):
        layer_in.append(in_channels + i * growth_rate)
    layer_in.append(in_channels + (num_fc_layers - 1) * growth_rate)
    has_bn = [True] * (num_fc_layers - 1) + [False]

    bn_scale = 1.0 / jnp.sqrt(1.0 + bn_eps)   # fresh BN stats, eval mode
    for cin, bn in zip(layer_in, has_bn):
        key, kw, kb = jax.random.split(key, 3)
        w = jax.random.normal(kw, (cin, growth_rate), jnp.float32) * 0.1
        b = jax.random.normal(kb, (1, growth_rate), jnp.float32) * 0.1
        if bn:
            w = w * bn_scale
            b = b * bn_scale
        params.append((w, b))
    return params


def _pack_params(params, in_channels, growth_rate, knn, dtype):
    """Lane-packed weights, built once at trace time.

    Returns:
      w_all ((K+1)*C, (L-1)*K*G + G): rows 0:C are the per-point (x) weights --
        layer-1 and every mid layer tiled K times along the lane segments, the
        last layer untiled; rows C: are the layer-1 neighbor weights laid out
        block-diagonally (segment k of the output only sees neighbor k).
      b_all (1, (L-1)*K*G + G): biases, tiled to match (f32).
      hd[i-2] ((i-1)*K*G, K*G) for i = 2..L: block-row m = kron(I_K, Wi_block_m)
        so layer i is a single dot against the lane-concat [h_{i-1},...,h_1]."""
    L = len(params)
    C, G, K = in_channels, growth_rate, knn
    KG = K * G
    eye = jnp.eye(K, dtype=jnp.float32)

    W1, b1 = params[0]
    # layer-1 input is [x, knn, knn - x]:
    w1_knn = W1[C:2 * C] + W1[2 * C:3 * C]          # multiplies neighbor features
    w1_x = W1[0:C] - W1[2 * C:3 * C]                # multiplies the center point

    x_cols = [jnp.tile(w1_x, (1, K))]               # layer-1 per-point, K segments
    b_cols = [jnp.tile(b1, (1, K))]
    for i in range(2, L):                           # mid layers (input [h.., x])
        Wi, bi = params[i - 1]
        x_cols.append(jnp.tile(Wi[(i - 1) * G:(i - 1) * G + C], (1, K)))
        b_cols.append(jnp.tile(bi, (1, K)))
    WL, bL = params[L - 1]                          # last layer: per-point term is
    x_cols.append(WL[(L - 1) * G:(L - 1) * G + C])  # deferred past the K-max
    b_cols.append(bL)

    x_rows = jnp.concatenate(x_cols, axis=1)        # (C, (L-1)*KG + G)
    b_all = jnp.concatenate(b_cols, axis=1)         # (1, (L-1)*KG + G)
    knn_rows = jnp.zeros((K * C, x_rows.shape[1]), jnp.float32)
    knn_rows = knn_rows.at[:, 0:KG].set(jnp.kron(eye, w1_knn))
    w_all = jnp.concatenate([x_rows, knn_rows], axis=0)

    hd = []
    for i in range(2, L + 1):                       # per-edge weights, block-diag
        Wi, _ = params[i - 1]
        hd.append(jnp.concatenate(
            [jnp.kron(eye, Wi[m * G:(m + 1) * G]) for m in range(i - 1)], axis=0))

    return (w_all.astype(dtype), b_all.astype(jnp.float32),
            [h.astype(dtype) for h in hd])


def graph_conv_l(x, pos, params, *, knn, num_fc_layers, growth_rate,
                 knn_idx=None, tile_n=512, compute_dtype=jnp.float32):
    B, N, C_in = x.shape
    K, L, G = knn, num_fc_layers, growth_rate
    assert L > 2 and len(params) == L
    tile_n = min(tile_n, N)
    if B * (N // tile_n) < 2 and N % 16 == 0:
        tile_n = N // 2    # keep >= 2 parallel grid steps (v7x has 2 TensorCores)
    assert N % tile_n == 0 and tile_n % 8 == 0   # TODO(synk): no ragged-N masking

    if knn_idx is None:
        knn_idx = get_knn_idx(pos, pos, k=K, offset=1)

    # TODO(synk): the neighbor gather stays in XLA (Mosaic has no general
    # dynamic row-gather lowering; a per-row DMA gather would be N*K tiny
    # DMAs).  It is produced directly in the lane-packed [x | neighbors]
    # layout so the kernel never reshapes the per-edge tensor.
    knn_feat = knn_group(x, knn_idx)                           # (B, N, K, C)
    feat = jnp.concatenate([x[:, :, None, :], knn_feat], axis=2)
    feat = feat.reshape(B, N, (K + 1) * C_in).astype(compute_dtype)

    w_all, b_all, hd = _pack_params(params, C_in, G, K, compute_dtype)
    C_out = C_in + L * G

    in_specs = [
        pl.BlockSpec((pl.Squeezed(), tile_n, (K + 1) * C_in),
                     lambda b, n: (b, n, 0)),
        pl.BlockSpec(w_all.shape, lambda b, n: (0, 0)),
        pl.BlockSpec(b_all.shape, lambda b, n: (0, 0)),
    ]
    for h in hd:
        in_specs.append(pl.BlockSpec(h.shape, lambda b, n: (0, 0)))

    # Per-step VMEM after lane packing is a few MB at tile_n=512 (weights,
    # double-buffered feat/out tiles, packed intermediates), well inside the
    # default scoped VMEM limit on v5e/v6e/v7x, so no vmem_limit_bytes needed.
    out = pl.pallas_call(
        functools.partial(_graphconv_kernel, L, G, K, C_in),
        out_shape=jax.ShapeDtypeStruct((B, N, C_out), jnp.float32),
        grid_spec=pltpu.PrefetchScalarGridSpec(
            num_scalar_prefetch=0,
            grid=(B, N // tile_n),
            in_specs=in_specs,
            out_specs=pl.BlockSpec((pl.Squeezed(), tile_n, C_out),
                                   lambda b, n: (b, n, 0)),
        ),
        compiler_params=pltpu.CompilerParams(
            dimension_semantics=("parallel", "parallel")),
    )(feat, w_all, b_all, *hd)
    return out, knn_idx


# --------------------------- pure-JAX reference ------------------------------

def graph_conv_l_ref(x, pos, params, *, knn, num_fc_layers, knn_idx):
    knn_feat = knn_group(x, knn_idx)
    x_t = jnp.broadcast_to(x[:, :, None, :], knn_feat.shape)
    edge = jnp.concatenate([x_t, knn_feat, knn_feat - x_t], axis=-1)
    w, b = params[0]
    y = jnp.concatenate([jax.nn.relu(edge @ w + b), x_t], axis=-1)
    for li in range(1, num_fc_layers - 1):
        w, b = params[li]
        y = jnp.concatenate([jax.nn.relu(y @ w + b), y], axis=-1)
    w, b = params[-1]
    y = jnp.concatenate([y @ w + b, y], axis=-1)
    return jnp.max(y, axis=-2)


# --------------------------------- main --------------------------------------

if __name__ == "__main__":
    B, N, C_IN = 2, 256, 8
    K, NUM_LAYERS, GROWTH = 8, 3, 16

    key = jax.random.PRNGKey(0)
    kx, kp, kw = jax.random.split(key, 3)
    x = jax.random.normal(kx, (B, N, C_IN), jnp.float32)
    pos = jax.random.normal(kp, (B, N, 3), jnp.float32)
    params = init_graphconv_params(kw, C_IN, NUM_LAYERS, GROWTH)

    y, knn_idx = graph_conv_l(x, pos, params, knn=K,
                              num_fc_layers=NUM_LAYERS, growth_rate=GROWTH)
    y = jax.block_until_ready(y)

    y_ref = graph_conv_l_ref(x, pos, params, knn=K,
                             num_fc_layers=NUM_LAYERS, knn_idx=knn_idx)
    assert y.shape == (B, N, C_IN + NUM_LAYERS * GROWTH)
    assert jnp.allclose(y, y_ref, atol=2e-3, rtol=2e-3)

    # bf16-input path: halves the HBM read of the dominant per-edge tensor;
    # accumulation stays f32, so tolerance only loosens to bf16-rounding level.
    y_bf, _ = graph_conv_l(x, pos, params, knn=K, num_fc_layers=NUM_LAYERS,
                           growth_rate=GROWTH, knn_idx=knn_idx,
                           compute_dtype=jnp.bfloat16)
    y_bf = jax.block_until_ready(y_bf)
    assert jnp.allclose(y_bf, y_ref, atol=5e-2, rtol=5e-2)

    print("KERNEL_OK")
</pallas_src>

<mosaic_0001>
module attributes {stable_mosaic.version = 11 : i64} {
  func.func @_graphconv_kernel(%arg0: i32, %arg1: i32, %arg2: memref<1x256x72xf32, #tpu.memory_space<vmem>>, %arg3: memref<72x272xf32, #tpu.memory_space<vmem>>, %arg4: memref<1x272xf32, #tpu.memory_space<vmem>>, %arg5: memref<128x128xf32, #tpu.memory_space<vmem>>, %arg6: memref<256x128xf32, #tpu.memory_space<vmem>>, %arg7: memref<1x256x56xf32, #tpu.memory_space<vmem>>) attributes {dimension_semantics = [#tpu.dimension_semantics<parallel>, #tpu.dimension_semantics<parallel>], iteration_bounds = array<i64: 2, 1>, scalar_prefetch = 0 : i64, scratch_operands = 0 : i64, tpu.core_type = #tpu.core_type<tc>, window_params = [{transform_indices = @transform_0, window_bounds = array<i64: 1, 256, 72>}, {pipeline_mode = #tpu.pipeline_mode<synchronous>, transform_indices = @transform_1, window_bounds = array<i64: 72, 272>}, {pipeline_mode = #tpu.pipeline_mode<synchronous>, transform_indices = @transform_2, window_bounds = array<i64: 1, 272>}, {pipeline_mode = #tpu.pipeline_mode<synchronous>, transform_indices = @transform_3, window_bounds = array<i64: 128, 128>}, {pipeline_mode = #tpu.pipeline_mode<synchronous>, transform_indices = @transform_4, window_bounds = array<i64: 256, 128>}, {transform_indices = @transform_5, window_bounds = array<i64: 1, 256, 56>}]} {
    %c0 = arith.constant 0 : index
    %c0_0 = arith.constant 0 : index
    %c0_1 = arith.constant 0 : index
    %0 = vector.load %arg2[%c0, %c0_0, %c0_1] : memref<1x256x72xf32, #tpu.memory_space<vmem>>, vector<1x256x72xf32>
    %1 = vector.shape_cast %0 : vector<1x256x72xf32> to vector<256x72xf32>
    %c0_2 = arith.constant 0 : index
    %c0_3 = arith.constant 0 : index
    %2 = vector.load %arg3[%c0_2, %c0_3] : memref<72x272xf32, #tpu.memory_space<vmem>>, vector<72x272xf32>
    %cst = arith.constant dense<0.000000e+00> : vector<256x272xf32>
    %3 = tpu.matmul %1, %2, %cst {dimension_numbers = #tpu.dot_dimension_numbers<[1], [0], [0], [1], [0, 0, 1, 1], [], []>} : vector<256x72xf32>, vector<72x272xf32>, vector<256x272xf32> -> vector<256x272xf32>
    %c0_4 = arith.constant 0 : index
    %c0_5 = arith.constant 0 : index
    %4 = vector.load %arg4[%c0_4, %c0_5] : memref<1x272xf32, #tpu.memory_space<vmem>>, vector<1x272xf32>
    %5 = vector.broadcast %4 : vector<1x272xf32> to vector<256x272xf32>
    %6 = arith.addf %3, %5 : vector<256x272xf32>
    %7 = vector.extract_strided_slice %1 {offsets = [0, 0], sizes = [256, 8], strides = [1, 1]} : vector<256x72xf32> to vector<256x8xf32>
    %c0_6 = arith.constant 0 : index
    %c0_7 = arith.constant 0 : index
    %c48 = arith.constant 48 : index
    %8 = vector.load %arg7[%c0_6, %c0_7, %c48] : memref<1x256x56xf32, #tpu.memory_space<vmem>>, vector<1x256x8xf32>
    %9 = vector.shape_cast %8 : vector<1x256x8xf32> to vector<256x8xf32>
    %10 = vector.shape_cast %7 : vector<256x8xf32> to vector<1x256x8xf32>
    tpu.vector_store %arg7[%c0_6, %c0_7, %c48], %10 {strides = array<i32>} : memref<1x256x56xf32, #tpu.memory_space<vmem>>, vector<1x256x8xf32>,
    %11 = vector.extract_strided_slice %6 {offsets = [0, 0], sizes = [256, 128], strides = [1, 1]} : vector<256x272xf32> to vector<256x128xf32>
    %cst_8 = arith.constant 0.000000e+00 : f32
    %12 = vector.broadcast %cst_8 : f32 to vector<256x128xf32>
    %13 = arith.maximumf %11, %12 : vector<256x128xf32>
    %c64_i32 = arith.constant 64 : i32
    %14 = tpu.dynamic_rotate %13 by %c64_i32 dim 1 : vector<256x128xf32>, i32 -> vector<256x128xf32>
    %15 = arith.maximumf %13, %14 : vector<256x128xf32>
    %c32_i32 = arith.constant 32 : i32
    %16 = tpu.dynamic_rotate %15 by %c32_i32 dim 1 : vector<256x128xf32>, i32 -> vector<256x128xf32>
    %17 = arith.maximumf %15, %16 : vector<256x128xf32>
    %c16_i32 = arith.constant 16 : i32
    %18 = tpu.dynamic_rotate %17 by %c16_i32 dim 1 : vector<256x128xf32>, i32 -> vector<256x128xf32>
    %19 = arith.maximumf %17, %18 : vector<256x128xf32>
    %20 = vector.extract_strided_slice %19 {offsets = [0, 32], sizes = [256, 16], strides = [1, 1]} : vector<256x128xf32> to vector<256x16xf32>
    %c0_9 = arith.constant 0 : index
    %c0_10 = arith.constant 0 : index
    %c32 = arith.constant 32 : index
    %21 = vector.load %arg7[%c0_9, %c0_10, %c32] : memref<1x256x56xf32, #tpu.memory_space<vmem>>, vector<1x256x16xf32>
    %22 = vector.shape_cast %21 : vector<1x256x16xf32> to vector<256x16xf32>
    %23 = vector.shape_cast %20 : vector<256x16xf32> to vector<1x256x16xf32>
    tpu.vector_store %arg7[%c0_9, %c0_10, %c32], %23 {strides = array<i32>} : memref<1x256x56xf32, #tpu.memory_space<vmem>>, vector<1x256x16xf32>,
    %c0_11 = arith.constant 0 : index
    %c0_12 = arith.constant 0 : index
    %24 = vector.load %arg5[%c0_11, %c0_12] : memref<128x128xf32, #tpu.memory_space<vmem>>, vector<128x128xf32>
    %cst_13 = arith.constant dense<0.000000e+00> : vector<256x128xf32>
    %25 = tpu.matmul %13, %24, %cst_13 {dimension_numbers = #tpu.dot_dimension_numbers<[1], [0], [0], [1], [0, 0, 1, 1], [], []>} : vector<256x128xf32>, vector<128x128xf32>, vector<256x128xf32> -> vector<256x128xf32>
    %26 = vector.extract_strided_slice %6 {offsets = [0, 128], sizes = [256, 128], strides = [1, 1]} : vector<256x272xf32> to vector<256x128xf32>
    %27 = arith.addf %25, %26 : vector<256x128xf32>
    %cst_14 = arith.constant 0.000000e+00 : f32
    %28 = vector.broadcast %cst_14 : f32 to vector<256x128xf32>
    %29 = arith.maximumf %27, %28 : vector<256x128xf32>
    %c64_i32_15 = arith.constant 64 : i32
    %30 = tpu.dynamic_rotate %29 by %c64_i32_15 dim 1 : vector<256x128xf32>, i32 -> vector<256x128xf32>
    %31 = arith.maximumf %29, %30 : vector<256x128xf32>
    %c32_i32_16 = arith.constant 32 : i32
    %32 = tpu.dynamic_rotate %31 by %c32_i32_16 dim 1 : vector<256x128xf32>, i32 -> vector<256x128xf32>
    %33 = arith.maximumf %31, %32 : vector<256x128xf32>
    %c16_i32_17 = arith.constant 16 : i32
    %34 = tpu.dynamic_rotate %33 by %c16_i32_17 dim 1 : vector<256x128xf32>, i32 -> vector<256x128xf32>
    %35 = arith.maximumf %33, %34 : vector<256x128xf32>
    %36 = vector.extract_strided_slice %35 {offsets = [0, 16], sizes = [256, 16], strides = [1, 1]} : vector<256x128xf32> to vector<256x16xf32>
    %c0_18 = arith.constant 0 : index
    %c0_19 = arith.constant 0 : index
    %c16 = arith.constant 16 : index
    %37 = vector.load %arg7[%c0_18, %c0_19, %c16] : memref<1x256x56xf32, #tpu.memory_space<vmem>>, vector<1x256x16xf32>
    %38 = vector.shape_cast %37 : vector<1x256x16xf32> to vector<256x16xf32>
    %39 = vector.shape_cast %36 : vector<256x16xf32> to vector<1x256x16xf32>
    tpu.vector_store %arg7[%c0_18, %c0_19, %c16], %39 {strides = array<i32>} : memref<1x256x56xf32, #tpu.memory_space<vmem>>, vector<1x256x16xf32>,
    %40 = tpu.concatenate %29, %13 in 1 : vector<256x128xf32>, vector<256x128xf32> -> vector<256x256xf32>
    %c0_20 = arith.constant 0 : index
    %c0_21 = arith.constant 0 : index
    %41 = vector.load %arg6[%c0_20, %c0_21] : memref<256x128xf32, #tpu.memory_space<vmem>>, vector<256x128xf32>
    %cst_22 = arith.constant dense<0.000000e+00> : vector<256x128xf32>
    %42 = tpu.matmul %40, %41, %cst_22 {dimension_numbers = #tpu.dot_dimension_numbers<[1], [0], [0], [1], [0, 0, 1, 1], [], []>} : vector<256x256xf32>, vector<256x128xf32>, vector<256x128xf32> -> vector<256x128xf32>
    %c64_i32_23 = arith.constant 64 : i32
    %43 = tpu.dynamic_rotate %42 by %c64_i32_23 dim 1 : vector<256x128xf32>, i32 -> vector<256x128xf32>
    %44 = arith.maximumf %42, %43 : vector<256x128xf32>
    %c32_i32_24 = arith.constant 32 : i32
    %45 = tpu.dynamic_rotate %44 by %c32_i32_24 dim 1 : vector<256x128xf32>, i32 -> vector<256x128xf32>
    %46 = arith.maximumf %44, %45 : vector<256x128xf32>
    %c16_i32_25 = arith.constant 16 : i32
    %47 = tpu.dynamic_rotate %46 by %c16_i32_25 dim 1 : vector<256x128xf32>, i32 -> vector<256x128xf32>
    %48 = arith.maximumf %46, %47 : vector<256x128xf32>
    %49 = vector.extract_strided_slice %48 {offsets = [0, 0], sizes = [256, 16], strides = [1, 1]} : vector<256x128xf32> to vector<256x16xf32>
    %50 = vector.extract_strided_slice %6 {offsets = [0, 256], sizes = [256, 16], strides = [1, 1]} : vector<256x272xf32> to vector<256x16xf32>
    %51 = arith.addf %49, %50 : vector<256x16xf32>
    %c0_26 = arith.constant 0 : index
    %c0_27 = arith.constant 0 : index
    %c0_28 = arith.constant 0 : index
    %52 = vector.load %arg7[%c0_26, %c0_27, %c0_28] : memref<1x256x56xf32, #tpu.memory_space<vmem>>, vector<1x256x16xf32>
    %53 = vector.shape_cast %52 : vector<1x256x16xf32> to vector<256x16xf32>
    %54 = vector.shape_cast %51 : vector<256x16xf32> to vector<1x256x16xf32>
    tpu.vector_store %arg7[%c0_26, %c0_27, %c0_28], %54 {strides = array<i32>} : memref<1x256x56xf32, #tpu.memory_space<vmem>>, vector<1x256x16xf32>,
    return
  }
  func.func @transform_0(%arg0: i32, %arg1: i32) -> (i32, i32, i32) {
    %c0_i32 = arith.constant 0 : i32
    %c0_i32_0 = arith.constant 0 : i32
    return %arg0, %arg1, %c0_i32 : i32, i32, i32
  }
  func.func @transform_1(%arg0: i32, %arg1: i32) -> (i32, i32) {
    %c0_i32 = arith.constant 0 : i32
    %c0_i32_0 = arith.constant 0 : i32
    %c0_i32_1 = arith.constant 0 : i32
    return %c0_i32, %c0_i32_0 : i32, i32
  }
  func.func @transform_2(%arg0: i32, %arg1: i32) -> (i32, i32) {
    %c0_i32 = arith.constant 0 : i32
    %c0_i32_0 = arith.constant 0 : i32
    %c0_i32_1 = arith.constant 0 : i32
    return %c0_i32, %c0_i32_0 : i32, i32
  }
  func.func @transform_3(%arg0: i32, %arg1: i32) -> (i32, i32) {
    %c0_i32 = arith.constant 0 : i32
    %c0_i32_0 = arith.constant 0 : i32
    %c0_i32_1 = arith.constant 0 : i32
    return %c0_i32, %c0_i32_0 : i32, i32
  }
  func.func @transform_4(%arg0: i32, %arg1: i32) -> (i32, i32) {
    %c0_i32 = arith.constant 0 : i32
    %c0_i32_0 = arith.constant 0 : i32
    %c0_i32_1 = arith.constant 0 : i32
    return %c0_i32, %c0_i32_0 : i32, i32
  }
  func.func @transform_5(%arg0: i32, %arg1: i32) -> (i32, i32, i32) {
    %c0_i32 = arith.constant 0 : i32
    %c0_i32_0 = arith.constant 0 : i32
    return %arg0, %arg1, %c0_i32 : i32, i32, i32
  }
}

</mosaic_0001>

<bundles_post_ra>
// kernel: tpu_custom_call.1
= control target key start
LH: loop header
LB: loop body
LE: loop exit
PB: predicated region body
PF: predicated region fallthrough
CT: control target
= control target key end

     0   :  { %s2687_s18 = smov 0   ;;  %s2689_s19 = smov 0   ;;  %s5655_s0 = inlined_call_operand.vmem [shape: f32[2,256,72], index: 0, kind: input, shape index: {}]   ;;  %s5656_s1 = inlined_call_operand.vmem [shape: f32[72,272], index: 1, kind: input, shape index: {}]   ;;  %s5657_s2 = inlined_call_operand.vmem [shape: f32[1,272], index: 2, kind: input, shape index: {}]   ;;  %s5658_s3 = inlined_call_operand.vmem [shape: f32[128,128], index: 3, kind: input, shape index: {}]   ;;  %s5659_s4 = inlined_call_operand.vmem [shape: f32[256,128], index: 4, kind: input, shape index: {}]   ;;  %s5660_s5 = inlined_call_operand.vmem [shape: f32[2,256,56], index: 5, kind: output, shape index: {}]  }
   0x1   :  { %s2691_s20 = smov 0  }
   0x2 LB: > { %s27_s21 = sadd.s32 1, %s2647_s19  ;;  %p2433_p0 = scmp.ge.s32.totalorder %s2651_s20, 1  ;;  %s2651_s20 = sphi %s2691_s20, %s15_s20   ;;  %s2647_s19 = sphi %s2689_s19, %s5938_s19   ;;  %s2643_s18 = sphi %s2687_s18, %s5937_s18  }
   0x3   : > { %p29_p1 = scmp.ge.s32.totalorder %s27_s21, 2  ;;  %p208_p2 = scmp.lt.s32.totalorder %s2651_s20, 3 }
   0x5   : > { %s5940_s21 = smov (%p29_p1, %s27_s21), 0  ;;  %p209_p3 = pnand %p2433_p0, %p208_p2 }
   0x7   : > { %212 = sbr.rel (%p209_p3) target bundleno = 1125 (0x465), region = 40 }
   0xc   : > { %v320_v0 = vld [vmem:[%s5656_s1 + $0xc0] sm:$0xff]  ;;  %v317_v1 = vld [vmem:[%s5656_s1 + $0xa8] sm:$0xff]  ;;  %v318_v3 = vld [vmem:[%s5656_s1 + $0xb0] sm:$0xff]  ;;  %p245_p4 = scmp.lt.s32.totalorder %s2643_s18, 1  ;;  %vm331_vm0 = vcmask 588800   ;;  %s2653_s24 = smov 48  }
   0xd   : > { %v321_v2 = vld [vmem:[%s5656_s1 + $0xc8] sm:$0xff]  ;;  %435 = vmatpush.msra.mxu0 %v320_v0  ;;  %2538 = vmatpush.msra.mxu2 %v320_v0  ;;  %v314_v4 = vld [vmem:[%s5656_s1 + $0x90] sm:$0xff]  ;;  %v315_v5 = vld [vmem:[%s5656_s1 + $0x98] sm:$0xff]  ;;  %vm863_vm1 = vcmask 458112   ;;  %s2654_s12 = smov 64   ;;  %s2655_s29 = smov 32  }
   0xe   : > { %548 = vmatpush.msra.mxu1 %v321_v2  ;;  %2547 = vmatpush.msra.mxu3 %v321_v2  ;;  %v311_v6 = vld [vmem:[%s5656_s1 + $0x78] sm:$0xff]  ;;  %v312_v7 = vld [vmem:[%s5656_s1 + $0x80] sm:$0xff]  ;;  %s5942_s18 = smov (!%p245_p4, %s2643_s18), 1  ;;  %v309_v9 = vld [vmem:[%s5656_s1 + $0x68] sm:$0xff]  ;;  %s2656_s30 = smov 16   ;;  %vm1216_vm2 = vcmask 392448  }
   0xf   : > { %436 = vmatpush.msra.mxu0 %v317_v1  ;;  %2539 = vmatpush.msra.mxu2 %v317_v1  ;;  %v308_v8 = vld [vmem:[%s5656_s1 + $0x60] sm:$0xff]  ;;  %v305_v10 = vld [vmem:[%s5656_s1 + $0x48] sm:$0xff]  ;;  %v306_v11 = vld [vmem:[%s5656_s1 + $0x50] sm:$0xff]  ;;  %s2536_s25 = sshll.u32 %s5942_s18, 8  ;;  %vm1698_vm3 = vcmask 261248   ;;  %vm2309_vm4 = vcmask 130048  }
  0x10   : > { %549 = vmatpush.msra.mxu1 %v318_v3  ;;  %2548 = vmatpush.msra.mxu3 %v318_v3  ;;  %v302_v12 = vld [vmem:[%s5656_s1 + $0x30] sm:$0xff]  ;;  %v303_v13 = vld [vmem:[%s5656_s1 + $0x38] sm:$0xff]  ;;  %s2758_s9 = scalar_lea.vmem %s5655_s0, %s2536_s25  ;;  %v300_v15 = vld [vmem:[%s5656_s1 + $0x20] sm:$0xff]  ;;  %s3065_s10 = scalar_lea.vmem %s5660_s5, %s2536_s25 }
  0x11   : > { %437 = vmatpush.msra.mxu0 %v314_v4  ;;  %2540 = vmatpush.msra.mxu2 %v314_v4  ;;  %v299_v14 = vld [vmem:[%s5656_s1 + $0x18] sm:$0xff]  ;;  %v296_v16 = vld [vmem:[%s5656_s1] sm:$0xff]  ;;  %v2770_v18 = vld [vmem:[%s2758_s9 + $0x88] sm:$0xff] }
  0x12   : > { %550 = vmatpush.msra.mxu1 %v315_v5  ;;  %2549 = vmatpush.msra.mxu3 %v315_v5  ;;  %v2767_v17 = vld [vmem:[%s2758_s9] sm:$0xff]  ;;  %v297_v19 = vld [vmem:[%s5656_s1 + $0x8] sm:$0xff]  ;;  %v1264_v21 = vld [vmem:[%s5658_s3 + $0x78] sm:$0xff] }
  0x13   : > { %438 = vmatpush.msra.mxu0 %v311_v6  ;;  %2541 = vmatpush.msra.mxu2 %v311_v6  ;;  %v2776_v20 = vld [vmem:[%s2758_s9 + $0x80] sm:$0xff]  ;;  %v1263_v22 = vld [vmem:[%s5658_s3 + $0x70] sm:$0xff]  ;;  %v1262_v25 = vld [vmem:[%s5658_s3 + $0x68] sm:$0xff] }
  0x14   : > { %551 = vmatpush.msra.mxu1 %v312_v7  ;;  %2550 = vmatpush.msra.mxu3 %v312_v7  ;;  %v2793_v23 = vld [vmem:[%s2758_s9 + $0x10] sm:$0xff]  ;;  %v268_v24 = vld [vmem:[%s2758_s9 + $0x20] sm:$0xff]  ;;  %v2805_v26 = vld [vmem:[%s2758_s9 + $0x8] sm:$0xff] }
  0x15   : > { %439 = vmatpush.msra.mxu0 %v308_v8  ;;  %2542 = vmatpush.msra.mxu2 %v308_v8  ;;  %v2808_v27 = vld [vmem:[%s2758_s9 + $0x90] sm:$0xff]  ;;  %v1261_v28 = vld [vmem:[%s5658_s3 + $0x60] sm:$0xff]  ;;  %v1260_v29 = vld [vmem:[%s5658_s3 + $0x58] sm:$0xff] }
  0x16   : > { %552 = vmatpush.msra.mxu1 %v309_v9  ;;  %2551 = vmatpush.msra.mxu3 %v309_v9  ;;  %v2825_v30 = vld [vmem:[%s2758_s9 + $0x18] sm:$0xff]  ;;  %v1259_v31 = vld [vmem:[%s5658_s3 + $0x50] sm:$0xff]  ;;  %v269_v32 = vld [vmem:[%s2758_s9 + $0x28] sm:$0xff] }
  0x17   : > { %440 = vmatpush.msra.mxu0 %v305_v10  ;;  %2543 = vmatpush.msra.mxu2 %v305_v10  ;;  %v2837_v33 = vld [vmem:[%s2758_s9 + $0x98] sm:$0xff]  ;;  %v1258_v34 = vld [vmem:[%s5658_s3 + $0x48] sm:$0xff]  ;;  %v270_v35 = vld [vmem:[%s2758_s9 + $0x30] sm:$0xff] }
  0x18   : > { %553 = vmatpush.msra.mxu1 %v306_v11  ;;  %2552 = vmatpush.msra.mxu3 %v306_v11  ;;  %v2853_v36 = vld [vmem:[%s2758_s9 + $0xa0] sm:$0xff]  ;;  %v271_v37 = vld [vmem:[%s2758_s9 + $0x38] sm:$0xff]  ;;  %v2869_v39 = vld [vmem:[%s2758_s9 + $0xa8] sm:$0xff] }
  0x19   : > { %441 = vmatpush.msra.mxu0 %v302_v12  ;;  %2544 = vmatpush.msra.mxu2 %v302_v12  ;;  %v1257_v38 = vld [vmem:[%s5658_s3 + $0x40] sm:$0xff]  ;;  %v1256_v41 = vld [vmem:[%s5658_s3 + $0x38] sm:$0xff]  ;;  %v286_v42 = vld [vmem:[%s2758_s9 + $0xb0] sm:$0xff] }
  0x1a   : > { %554 = vmatpush.msra.mxu1 %v303_v13  ;;  %2553 = vmatpush.msra.mxu3 %v303_v13  ;;  %v272_v40 = vld [vmem:[%s2758_s9 + $0x40] sm:$0xff]  ;;  %v2884_v43 = vld [vmem:[%s2758_s9 + $0x50] sm:$0xff]  ;;  %v273_v44 = vld [vmem:[%s2758_s9 + $0x48] sm:$0xff] }
  0x1b   : > { %442 = vmatpush.msra.mxu0 %v299_v14  ;;  %2545 = vmatpush.msra.mxu2 %v299_v14  ;;  %v2892_v45 = vld [vmem:[%s2758_s9 + $0x58] sm:$0xff]  ;;  %v1255_v46 = vld [vmem:[%s5658_s3 + $0x30] sm:$0xff]  ;;  %v2905_v48 = vld [vmem:[%s2758_s9 + $0x68] sm:$0xff] }
  0x1c   : > { %555 = vmatpush.msra.mxu1 %v300_v15  ;;  %2554 = vmatpush.msra.mxu3 %v300_v15  ;;  %v287_v47 = vld [vmem:[%s2758_s9 + $0xb8] sm:$0xff]  ;;  %v2912_v49 = vld [vmem:[%s2758_s9 + $0x70] sm:$0xff]  ;;  %v2915_v50 = vld [vmem:[%s2758_s9 + $0x60] sm:$0xff] }
  0x1d   : > { %443 = vmatpush.msra.mxu0 %v296_v16  ;;  %2546 = vmatpush.msra.mxu2 %v296_v16  ;;  %v1254_v51 = vld [vmem:[%s5658_s3 + $0x28] sm:$0xff]  ;;  %v288_v52 = vld [vmem:[%s2758_s9 + $0xc0] sm:$0xff]  ;;  %v2932_v53 = vld [vmem:[%s2758_s9 + $0x78] sm:$0xff] }
  0x1e   : > { %2438 = vmatmul.msk.f32.vlgmr.msra.gmra.mxu0 %vm331_vm0, %v2767_v17  ;;  %2455 = vmatmul.msk.f32.vlgmr.msra.gmra.mxu2 %vm331_vm0, %v2770_v18  ;;  %v1253_v54 = vld [vmem:[%s5658_s3 + $0x20] sm:$0xff]  ;;  %v289_v55 = vld [vmem:[%s2758_s9 + $0xc8] sm:$0xff]  ;;  %v1252_v56 = vld [vmem:[%s5658_s3 + $0x18] sm:$0xff] }
  0x1f   : > { %556 = vmatpush.msra.mxu1 %v297_v19  ;;  %2555 = vmatpush.msra.mxu3 %v297_v19  ;;  %v1762_v57 = vld [vmem:[%s5659_s4 + $0xf8] sm:$0xff]  ;;  %v1761_v58 = vld [vmem:[%s5659_s4 + $0xf0] sm:$0xff]  ;;  %v1760_v60 = vld [vmem:[%s5659_s4 + $0xe8] sm:$0xff] }
  0x20   : > { %2470 = vmatmul.msk.f32.vlgmr.msra.gmra.mxu1 %vm331_vm0, %v2767_v17  ;;  %2486 = vmatmul.msk.f32.vlgmr.msra.gmra.mxu3 %vm331_vm0, %v2776_v20  ;;  %v290_v59 = vld [vmem:[%s2758_s9 + $0xd0] sm:$0xff]  ;;  %v1759_v61 = vld [vmem:[%s5659_s4 + $0xe0] sm:$0xff]  ;;  %v1758_v63 = vld [vmem:[%s5659_s4 + $0xd8] sm:$0xff] }
  0x21   : > { %1265 = vmatpush.msrb.mxu3 %v1264_v21  ;;  %771 = vrot.lane.b32.xlu1 %v2793_v23, %s2653_s24  ;;  %v1251_v62 = vld [vmem:[%s5658_s3 + $0x10] sm:$0xff]  ;;  %v291_v1 = vld [vmem:[%s2758_s9 + $0xd8] sm:$0xff]  ;;  %v1756_v2 = vld [vmem:[%s5659_s4 + $0xc8] sm:$0xff] }
  0x22   : > { %775 = vrot.lane.b32.xlu2 %v268_v24, %s2653_s24  ;;  %767 = vrot.lane.b32.xlu0 %v2767_v17, %s2653_s24  ;;  %v1757_v0 = vld [vmem:[%s5659_s4 + $0xd0] sm:$0xff]  ;;  %v1755_v3 = vld [vmem:[%s5659_s4 + $0xc0] sm:$0xff] }
  0x23   : > { %1266 = vmatpush.msrb.mxu3 %v1263_v22  ;;  %1876 = vmatpush.msrb.mxu1 %v1762_v57  ;;  %v1250_v4 = vld [vmem:[%s5658_s3 + $0x8] sm:$0xff]  ;;  %v1754_v5 = vld [vmem:[%s5659_s4 + $0xb8] sm:$0xff]  ;;  %v1753_v6 = vld [vmem:[%s5659_s4 + $0xb0] sm:$0xff] }
  0x24   : > { %v292_v7 = vld [vmem:[%s2758_s9 + $0xe0] sm:$0xff]  ;;  %v1752_v8 = vld [vmem:[%s5659_s4 + $0xa8] sm:$0xff]  ;;  %v1750_v11 = vld [vmem:[%s5659_s4 + $0x98] sm:$0xff] }
  0x25   : > { %1267 = vmatpush.msrb.mxu3 %v1262_v25  ;;  %1877 = vmatpush.msrb.mxu1 %v1761_v58  ;;  %v1751_v9 = vld [vmem:[%s5659_s4 + $0xa0] sm:$0xff]  ;;  %v293_v12 = vld [vmem:[%s2758_s9 + $0xe8] sm:$0xff]  ;;  %v1749_v13 = vld [vmem:[%s5659_s4 + $0x90] sm:$0xff] }
  0x26   : > { %2439 = vmatmul.msk.f32.gmra.mxu0 %vm331_vm0, %v2805_v26  ;;  %2456 = vmatmul.msk.f32.gmra.mxu2 %vm331_vm0, %v2808_v27  ;;  %v1249_v10 = vld [vmem:[%s5658_s3] sm:$0xff]  ;;  %v1748_v14 = vld [vmem:[%s5659_s4 + $0x88] sm:$0xff]  ;;  %v295_v15 = vld [vmem:[%s2758_s9 + $0xf8] sm:$0xff] }
  0x27   : > { %1268 = vmatpush.msrb.mxu3 %v1261_v28  ;;  %1878 = vmatpush.msrb.mxu1 %v1760_v60  ;;  %v1747_v16 = vld [vmem:[%s5659_s4 + $0x80] sm:$0xff]  ;;  %v3166_v60 = vld [vmem:[%s5659_s4 + $0x68] sm:$0xff] }
  0x28   : > { %2471 = vmatmul.msk.f32.gmra.mxu1 %vm331_vm0, %v2805_v26  ;;  %2487 = vmatmul.msk.f32.gmra.mxu3 %vm331_vm0, %v2770_v18  ;;  %v3080_v22 = vld [vmem:[%s5657_s2] sm:$0x7] }
  0x29   : > { %1269 = vmatpush.msrb.mxu3 %v1260_v29  ;;  %773 = vrot.lane.b32.xlu1 %v2825_v30, %s2653_s24 }
  0x2a   : > { %777 = vrot.lane.b32.xlu2 %v269_v32, %s2653_s24  ;;  %769 = vrot.lane.b32.xlu0 %v2805_v26, %s2653_s24 }
  0x2b   : > { %1270 = vmatpush.msrb.mxu3 %v1259_v31  ;;  %1879 = vmatpush.msrb.mxu1 %v1759_v61  ;;  %v3100_v31 = vld [vmem:[%s5659_s4 + $0x78] sm:$0xff] }
  0x2c   : > { %1763 = vmatpush.msrb.mxu0 %v3100_v31 }
  0x2d   : > { %1271 = vmatpush.msrb.mxu3 %v1258_v34  ;;  %1880 = vmatpush.msrb.mxu1 %v1758_v63 }
  0x2e   : > { %2440 = vmatmul.msk.f32.gmra.mxu0 %vm331_vm0, %v2793_v23  ;;  %2457 = vmatmul.msk.f32.gmra.mxu2 %vm331_vm0, %v2837_v33 }
  0x2f   : > { %1272 = vmatpush.msrb.mxu3 %v1257_v38  ;;  %1881 = vmatpush.msrb.mxu1 %v1757_v0 }
  0x30   : > { %2472 = vmatmul.msk.f32.gmra.mxu1 %vm331_vm0, %v2793_v23  ;;  %2488 = vmatmul.msk.f32.gmra.mxu3 %vm331_vm0, %v2808_v27 }
  0x31   : > { %781 = vrot.lane.b32.xlu1 %v271_v37, %s2653_s24  ;;  %1273 = vmatpush.msrb.mxu3 %v1256_v41 }
  0x32   : > { %779 = vrot.lane.b32.xlu0 %v270_v35, %s2653_s24  ;;  %783 = vrot.lane.b32.xlu2 %v272_v40, %s2653_s24 }
  0x33   : > { %1274 = vmatpush.msrb.mxu3 %v1255_v46  ;;  %1882 = vmatpush.msrb.mxu1 %v1756_v2 }
  0x35   : > { %1275 = vmatpush.msrb.mxu3 %v1254_v51  ;;  %1883 = vmatpush.msrb.mxu1 %v1755_v3 }
  0x36   : > { %2441 = vmatmul.msk.f32.gmra.mxu0 %vm331_vm0, %v2825_v30  ;;  %2458 = vmatmul.msk.f32.gmra.mxu2 %vm331_vm0, %v2853_v36 }
  0x37   : > { %1276 = vmatpush.msrb.mxu3 %v1253_v54  ;;  %1884 = vmatpush.msrb.mxu1 %v1754_v5 }
  0x38   : > { %2473 = vmatmul.msk.f32.gmra.mxu1 %vm331_vm0, %v2825_v30  ;;  %2489 = vmatmul.msk.f32.gmra.mxu3 %vm331_vm0, %v2837_v33 }
  0x39   : > { %787 = vrot.lane.b32.xlu1 %v2884_v43, %s2653_s24  ;;  %1277 = vmatpush.msrb.mxu3 %v1252_v56 }
  0x3a   : > { %785 = vrot.lane.b32.xlu0 %v273_v44, %s2653_s24  ;;  %789 = vrot.lane.b32.xlu2 %v2892_v45, %s2653_s24 }
  0x3b   : > { %1278 = vmatpush.msrb.mxu3 %v1251_v62  ;;  %1885 = vmatpush.msrb.mxu1 %v1753_v6 }
  0x3d   : > { %1279 = vmatpush.msrb.mxu3 %v1250_v4  ;;  %1886 = vmatpush.msrb.mxu1 %v1752_v8  ;;  %v3194_v8 = vld [vmem:[%s5659_s4 + $0x60] sm:$0xff] }
  0x3e   : > { %2442 = vmatmul.msk.f32.gmra.mxu0 %vm331_vm0, %v268_v24  ;;  %2459 = vmatmul.msk.f32.gmra.mxu2 %vm331_vm0, %v2869_v39 }
  0x3f   : > { %1887 = vmatpush.msrb.mxu1 %v1751_v9  ;;  %1280 = vmatpush.msrb.mxu3 %v1249_v10 }
  0x40   : > { %2474 = vmatmul.msk.f32.gmra.mxu1 %vm331_vm0, %v268_v24  ;;  %2490 = vmatmul.msk.f32.gmra.mxu3 %vm331_vm0, %v2853_v36  ;;  %v3088_v24 = vperm.slane %v3080_v22, 0 }
  0x41   : > { %793 = vrot.lane.b32.xlu1 %v2905_v48, %s2653_s24  ;;  %1888 = vmatpush.msrb.mxu1 %v1750_v11 }
  0x42   : > { %795 = vrot.lane.b32.xlu2 %v2912_v49, %s2653_s24  ;;  %791 = vrot.lane.b32.xlu0 %v2915_v50, %s2653_s24 }
  0x43   : > { %1889 = vmatpush.msrb.mxu1 %v1749_v13 }
  0x45   : > { %1890 = vmatpush.msrb.mxu1 %v1748_v14 }
  0x46   : > { %2443 = vmatmul.msk.f32.gmra.mxu0 %vm331_vm0, %v269_v32  ;;  %2460 = vmatmul.msk.f32.gmra.mxu2 %vm331_vm0, %v286_v42 }
  0x47   : > { %1891 = vmatpush.msrb.mxu1 %v1747_v16 }
  0x48   : > { %2475 = vmatmul.msk.f32.gmra.mxu1 %vm331_vm0, %v269_v32  ;;  %2491 = vmatmul.msk.f32.gmra.mxu3 %vm331_vm0, %v2869_v39 }
  0x49   : > { %799 = vrot.lane.b32.xlu1 %v2776_v20, %s2653_s24 }
  0x4a   : > { %801 = vrot.lane.b32.xlu2 %v2770_v18, %s2653_s24  ;;  %797 = vrot.lane.b32.xlu0 %v2932_v53, %s2653_s24  ;;  %v294_v18 = vld [vmem:[%s2758_s9 + $0xf0] sm:$0xff] }
  0x4e   : > { %2461 = vmatmul.msk.f32.gmra.mxu2 %vm331_vm0, %v287_v47  ;;  %2444 = vmatmul.msk.f32.gmra.mxu0 %vm331_vm0, %v270_v35 }
  0x50   : > { %2492 = vmatmul.msk.f32.gmra.mxu3 %vm331_vm0, %v286_v42  ;;  %2476 = vmatmul.msk.f32.gmra.mxu1 %vm331_vm0, %v270_v35 }
  0x51   : > { %805 = vrot.lane.b32.xlu1 %v2837_v33, %s2653_s24 }
  0x52   : > { %807 = vrot.lane.b32.xlu2 %v2853_v36, %s2653_s24  ;;  %803 = vrot.lane.b32.xlu0 %v2808_v27, %s2653_s24 }
  0x56   : > { %2462 = vmatmul.msk.f32.gmra.mxu2 %vm331_vm0, %v288_v52  ;;  %2445 = vmatmul.msk.f32.gmra.mxu0 %vm331_vm0, %v271_v37 }
  0x58   : > { %2493 = vmatmul.msk.f32.gmra.mxu3 %vm331_vm0, %v287_v47  ;;  %2477 = vmatmul.msk.f32.gmra.mxu1 %vm331_vm0, %v271_v37 }
  0x59   : > { %811 = vrot.lane.b32.xlu1 %v286_v42, %s2653_s24 }
  0x5a   : > { %813 = vrot.lane.b32.xlu2 %v287_v47, %s2653_s24  ;;  %809 = vrot.lane.b32.xlu0 %v2869_v39, %s2653_s24 }
  0x5e   : > { %2463 = vmatmul.msk.f32.gmra.mxu2 %vm331_vm0, %v289_v55  ;;  %2446 = vmatmul.msk.f32.gmra.mxu0 %vm331_vm0, %v272_v40 }
  0x60   : > { %2494 = vmatmul.msk.f32.gmra.mxu3 %vm331_vm0, %v288_v52  ;;  %2478 = vmatmul.msk.f32.gmra.mxu1 %vm331_vm0, %v272_v40 }
  0x61   : > { %817 = vrot.lane.b32.xlu1 %v289_v55, %s2653_s24 }
  0x62   : > { %819 = vrot.lane.b32.xlu2 %v290_v59, %s2653_s24  ;;  %815 = vrot.lane.b32.xlu0 %v288_v52, %s2653_s24 }
  0x66   : > { %2464 = vmatmul.msk.f32.gmra.mxu2 %vm331_vm0, %v290_v59  ;;  %2447 = vmatmul.msk.f32.gmra.mxu0 %vm331_vm0, %v273_v44 }
  0x68   : > { %2495 = vmatmul.msk.f32.gmra.mxu3 %vm331_vm0, %v289_v55  ;;  %2479 = vmatmul.msk.f32.gmra.mxu1 %vm331_vm0, %v273_v44 }
  0x69   : > { %823 = vrot.lane.b32.xlu1 %v292_v7, %s2653_s24 }
  0x6a   : > { %825 = vrot.lane.b32.xlu2 %v293_v12, %s2653_s24  ;;  %821 = vrot.lane.b32.xlu0 %v291_v1, %s2653_s24 }
  0x6e   : > { %2465 = vmatmul.msk.f32.gmra.mxu2 %vm331_vm0, %v291_v1  ;;  %2448 = vmatmul.msk.f32.gmra.mxu0 %vm331_vm0, %v2884_v43 }
  0x70   : > { %2496 = vmatmul.msk.f32.gmra.mxu3 %vm331_vm0, %v290_v59  ;;  %2480 = vmatmul.msk.f32.gmra.mxu1 %vm331_vm0, %v2884_v43 }
  0x71   : > { %829 = vrot.lane.b32.xlu1 %v295_v15, %s2653_s24 }
  0x72   : > { %827 = vrot.lane.b32.xlu0 %v294_v18, %s2653_s24 }
  0x76   : > { %2466 = vmatmul.msk.f32.gmra.mxu2 %vm331_vm0, %v292_v7  ;;  %2449 = vmatmul.msk.f32.gmra.mxu0 %vm331_vm0, %v2892_v45 }
  0x78   : > { %2497 = vmatmul.msk.f32.gmra.mxu3 %vm331_vm0, %v291_v1  ;;  %2481 = vmatmul.msk.f32.gmra.mxu1 %vm331_vm0, %v2892_v45 }
  0x7c   : > { %v776_v19 = vpop.permute.xlu2 %775 }
  0x7d   : > { %868 = vst.msk [vmem:[%s3065_s10 + $0x20] sm:$0xff] %vm863_vm1, %v776_v19 }
  0x7e   : > { %2467 = vmatmul.msk.f32.gmra.mxu2 %vm331_vm0, %v293_v12  ;;  %2450 = vmatmul.msk.f32.gmra.mxu0 %vm331_vm0, %v2915_v50 }
  0x80   : > { %2498 = vmatmul.msk.f32.gmra.mxu3 %vm331_vm0, %v292_v7  ;;  %2482 = vmatmul.msk.f32.gmra.mxu1 %vm331_vm0, %v2915_v50 }
  0x84   : > { %v778_v21 = vpop.permute.xlu2 %777 }
  0x85   : > { %869 = vst.msk [vmem:[%s3065_s10 + $0x28] sm:$0xff] %vm863_vm1, %v778_v21  ;;  %v3220_v21 = vld [vmem:[%s5659_s4 + $0x58] sm:$0xff] }
  0x86   : > { %2468 = vmatmul.msk.f32.gmra.mxu2 %vm331_vm0, %v294_v18  ;;  %2451 = vmatmul.msk.f32.gmra.mxu0 %vm331_vm0, %v2905_v48 }
  0x88   : > { %2499 = vmatmul.msk.f32.gmra.mxu3 %vm331_vm0, %v293_v12  ;;  %2483 = vmatmul.msk.f32.gmra.mxu1 %vm331_vm0, %v2905_v48  ;;  %v3138_v48 = vld [vmem:[%s5659_s4 + $0x70] sm:$0xff] }
  0x89   : > { %1764 = vmatpush.msrb.mxu0 %v3138_v48 }
  0x8b   : > { %1765 = vmatpush.msrb.mxu0 %v3166_v60 }
  0x8c   : > { %v784_v27 = vpop.permute.xlu2 %783 }
  0x8d   : > { %872 = vst.msk [vmem:[%s3065_s10 + $0x40] sm:$0xff] %vm863_vm1, %v784_v27  ;;  %1766 = vmatpush.msrb.mxu0 %v3194_v8 }
  0x8e   : > { %2469 = vmatmul.msk.f32.gmra.mxu2 %vm331_vm0, %v295_v15  ;;  %2452 = vmatmul.msk.f32.gmra.mxu0 %vm331_vm0, %v2912_v49 }
  0x8f   : > { %1767 = vmatpush.msrb.mxu0 %v3220_v21 }
  0x90   : > { %2500 = vmatmul.msk.f32.gmra.mxu3 %vm331_vm0, %v294_v18  ;;  %2484 = vmatmul.msk.f32.gmra.mxu1 %vm331_vm0, %v2912_v49 }
  0x93   : > { %v772_v32 = vpop.permute.xlu1 %771 }
  0x94   : > { %866 = vst.msk [vmem:[%s3065_s10 + $0x10] sm:$0xff] %vm863_vm1, %v772_v32  ;;  %v790_v38 = vpop.permute.xlu2 %789  ;;  %v768_v39 = vpop.permute.xlu0 %767 }
  0x95   : > { %875 = vst.msk [vmem:[%s3065_s10 + $0x58] sm:$0xff] %vm863_vm1, %v790_v38 }
  0x96   : > { %2453 = vmatmul.msk.f32.gmra.mxu0 %vm331_vm0, %v2932_v53  ;;  %864 = vst.msk [vmem:[%s3065_s10] sm:$0xff] %vm863_vm1, %v768_v39 }
  0x98   : > { %2501 = vmatmul.msk.f32.gmra.mxu3 %vm331_vm0, %v295_v15  ;;  %2485 = vmatmul.msk.f32.gmra.mxu1 %vm331_vm0, %v2932_v53 }
  0x9b   : > { %v445_v25 = vpop.f32.mrf.mxu0  ;;  %v774_v41 = vpop.permute.xlu1 %773 }
  0x9c   : > { %v446_v28 = vadd.f32 %v445_v25, %v3088_v24  ;;  %867 = vst.msk [vmem:[%s3065_s10 + $0x18] sm:$0xff] %vm863_vm1, %v774_v41  ;;  %v796_v49 = vpop.permute.xlu2 %795  ;;  %v770_v50 = vpop.permute.xlu0 %769 }
  0x9d   : > { %878 = vst.msk [vmem:[%s3065_s10 + $0x70] sm:$0xff] %vm863_vm1, %v796_v49  ;;  %v3151_v53 = vpop.f32.mrf.mxu1 }
  0x9e   : > { %v3093_v29 = vmax.f32 %v446_v28, 0.0  ;;  %2454 = vmatmul.msk.f32.gmra.mxu0 %vm331_vm0, %v2776_v20  ;;  %865 = vst.msk [vmem:[%s3065_s10 + $0x8] sm:$0xff] %vm863_vm1, %v770_v50 }
  0xa0   : > { %928 = vrot.lane.b32.xlu2 %v3093_v29, %s2654_s12  ;;  %1281 = vmatmul.f32.vlgmr.msrb.gmra.mxu3 %v3093_v29 }
  0xa1   : > { %1892 = vmatmul.f32.vlgmr.msrb.gmra.mxu1 %v3093_v29  ;;  %v496_v20 = vpop.f32.mrf.mxu2 }
  0xa2   : > { %v497_v33 = vadd.f32 %v496_v20, %v3088_v24 }
  0xa3   : > { %v448_v34 = vpop.f32.mrf.mxu0  ;;  %v3110_v35 = vpop.f32.mrf.mxu3 }
  0xa4   : > { %v3112_v36 = vmax.f32 %v497_v33, 0.0  ;;  %v449_v37 = vadd.f32 %v448_v34, %v3088_v24  ;;  %v782_v52 = vpop.permute.xlu1 %781  ;;  %v802_v61 = vpop.permute.xlu2 %801 }
  0xa5   : > { %871 = vst.msk [vmem:[%s3065_s10 + $0x38] sm:$0xff] %vm863_vm1, %v782_v52  ;;  %v780_v62 = vpop.permute.xlu0 %779  ;;  %v3181_v2 = vpop.f32.mrf.mxu1 }
  0xa6   : > { %v3117_v40 = vmax.f32 %v449_v37, 0.0  ;;  %962 = vrot.lane.b32.xlu1 %v3112_v36, %s2654_s12  ;;  %881 = vst.msk [vmem:[%s3065_s10 + $0x88] sm:$0xff] %vm863_vm1, %v802_v61 }
  0xa7   : > { %870 = vst.msk [vmem:[%s3065_s10 + $0x30] sm:$0xff] %vm863_vm1, %v780_v62 }
  0xa8   : > { %930 = vrot.lane.b32.xlu0 %v3117_v40, %s2654_s12  ;;  %1284 = vmatmul.f32.gmra.mxu3 %v3117_v40 }
  0xa9   : > { %1895 = vmatmul.f32.gmra.mxu1 %v3117_v40  ;;  %v499_v42 = vpop.f32.mrf.mxu2 }
  0xaa   : > { %v500_v43 = vadd.f32 %v499_v42, %v3088_v24 }
  0xab   : > { %v451_v44 = vpop.f32.mrf.mxu0  ;;  %v3130_v45 = vpop.f32.mrf.mxu3 }
  0xac   : > { %v3132_v46 = vmax.f32 %v500_v43, 0.0  ;;  %v452_v47 = vadd.f32 %v451_v44, %v3088_v24  ;;  %v788_v1 = vpop.permute.xlu1 %787  ;;  %v808_v9 = vpop.permute.xlu2 %807 }
  0xad   : > { %874 = vst.msk [vmem:[%s3065_s10 + $0x50] sm:$0xff] %vm863_vm1, %v788_v1  ;;  %v786_v10 = vpop.permute.xlu0 %785  ;;  %v3225_v28 = vpop.f32.mrf.mxu1 }
  0xae   : > { %v3143_v51 = vmax.f32 %v452_v47, 0.0  ;;  %964 = vrot.lane.b32.xlu2 %v3132_v46, %s2654_s12  ;;  %884 = vst.msk [vmem:[%s3065_s10 + $0xa0] sm:$0xff] %vm863_vm1, %v808_v9  ;;  %v3256_v47 = vld [vmem:[%s5659_s4 + $0x50] sm:$0xff] }
  0xaf   : > { %873 = vst.msk [vmem:[%s3065_s10 + $0x48] sm:$0xff] %vm863_vm1, %v786_v10  ;;  %1768 = vmatpush.msrb.mxu0 %v3256_v47 }
  0xb0   : > { %932 = vrot.lane.b32.xlu1 %v3143_v51, %s2654_s12  ;;  %1287 = vmatmul.f32.gmra.mxu3 %v3143_v51 }
  0xb1   : > { %1898 = vmatmul.f32.gmra.mxu1 %v3143_v51  ;;  %v502_v54 = vpop.f32.mrf.mxu2 }
  0xb2   : > { %v503_v55 = vadd.f32 %v502_v54, %v3088_v24 }
  0xb3   : > { %v454_v56 = vpop.f32.mrf.mxu0  ;;  %v3158_v57 = vpop.f32.mrf.mxu3 }
  0xb4   : > { %5719 = vst [vmem:[#allocation2_spill] sm:$0xff] %v3158_v57  ;;  %v3160_v58 = vmax.f32 %v503_v55, 0.0  ;;  %v455_v59 = vadd.f32 %v454_v56, %v3088_v24  ;;  %v794_v13 = vpop.permute.xlu1 %793  ;;  %v814_v25 = vpop.permute.xlu2 %813 }
  0xb5   : > { %877 = vst.msk [vmem:[%s3065_s10 + $0x68] sm:$0xff] %vm863_vm1, %v794_v13  ;;  %v792_v27 = vpop.permute.xlu0 %791  ;;  %v3259_v49 = vpop.f32.mrf.mxu1 }
  0xb6   : > { %v3171_v63 = vmax.f32 %v455_v59, 0.0  ;;  %966 = vrot.lane.b32.xlu0 %v3160_v58, %s2654_s12  ;;  %887 = vst.msk [vmem:[%s3065_s10 + $0xb8] sm:$0xff] %vm863_vm1, %v814_v25 }
  0xb7   : > { %876 = vst.msk [vmem:[%s3065_s10 + $0x60] sm:$0xff] %vm863_vm1, %v792_v27  ;;  %v3310_v27 = vld [vmem:[%s5659_s4 + $0x40] sm:$0xff] }
  0xb8   : > { %934 = vrot.lane.b32.xlu2 %v3171_v63, %s2654_s12  ;;  %1290 = vmatmul.f32.gmra.mxu3 %v3171_v63 }
  0xb9   : > { %1901 = vmatmul.f32.gmra.mxu1 %v3171_v63  ;;  %v505_v0 = vpop.f32.mrf.mxu2 }
  0xba   : > { %v506_v3 = vadd.f32 %v505_v0, %v3088_v24 }
  0xbb   : > { %v457_v4 = vpop.f32.mrf.mxu0  ;;  %v3186_v5 = vpop.f32.mrf.mxu3 }
  0xbc   : > { %5720 = vst [vmem:[#allocation3_spill] sm:$0xff] %v3186_v5  ;;  %v3188_v6 = vmax.f32 %v506_v3, 0.0  ;;  %v458_v7 = vadd.f32 %v457_v4, %v3088_v24  ;;  %v800_v33 = vpop.permute.xlu1 %799  ;;  %v820_v42 = vpop.permute.xlu2 %819  ;;  %v3284_v3 = vld [vmem:[%s5659_s4 + $0x48] sm:$0xff] }
  0xbd   : > { %880 = vst.msk [vmem:[%s3065_s10 + $0x80] sm:$0xff] %vm863_vm1, %v800_v33  ;;  %v798_v43 = vpop.permute.xlu0 %797  ;;  %1769 = vmatpush.msrb.mxu0 %v3284_v3  ;;  %v3291_v9 = vpop.f32.mrf.mxu1 }
  0xbe   : > { %v3199_v11 = vmax.f32 %v458_v7, 0.0  ;;  %968 = vrot.lane.b32.xlu1 %v3188_v6, %s2654_s12  ;;  %890 = vst.msk [vmem:[%s3065_s10 + $0xd0] sm:$0xff] %vm863_vm1, %v820_v42 }
  0xbf   : > { %879 = vst.msk [vmem:[%s3065_s10 + $0x78] sm:$0xff] %vm863_vm1, %v798_v43  ;;  %1770 = vmatpush.msrb.mxu0 %v3310_v27 }
  0xc0   : > { %936 = vrot.lane.b32.xlu0 %v3199_v11, %s2654_s12  ;;  %1293 = vmatmul.f32.gmra.mxu3 %v3199_v11 }
  0xc1   : > { %1904 = vmatmul.f32.gmra.mxu1 %v3199_v11  ;;  %v508_v12 = vpop.f32.mrf.mxu2 }
  0xc2   : > { %v509_v14 = vadd.f32 %v508_v12, %v3088_v24 }
  0xc3   : > { %v460_v15 = vpop.f32.mrf.mxu0  ;;  %v3212_v16 = vpop.f32.mrf.mxu3 }
  0xc4   : > { %5721 = vst [vmem:[#allocation4_spill] sm:$0xff] %v3212_v16  ;;  %v3214_v18 = vmax.f32 %v509_v14, 0.0  ;;  %v461_v19 = vadd.f32 %v460_v15, %v3088_v24  ;;  %v806_v52 = vpop.permute.xlu1 %805  ;;  %v826_v62 = vpop.permute.xlu2 %825 }
  0xc5   : > { %883 = vst.msk [vmem:[%s3065_s10 + $0x98] sm:$0xff] %vm863_vm1, %v806_v52  ;;  %v804_v0 = vpop.permute.xlu0 %803  ;;  %v3322_v42 = vpop.f32.mrf.mxu1 }
  0xc6   : > { %v3227_v32 = vmax.f32 %v461_v19, 0.0  ;;  %970 = vrot.lane.b32.xlu2 %v3214_v18, %s2654_s12  ;;  %893 = vst.msk [vmem:[%s3065_s10 + $0xe8] sm:$0xff] %vm863_vm1, %v826_v62 }
  0xc7   : > { %882 = vst.msk [vmem:[%s3065_s10 + $0x90] sm:$0xff] %vm863_vm1, %v804_v0 }
  0xc8   : > { %938 = vrot.lane.b32.xlu1 %v3227_v32, %s2654_s12  ;;  %1296 = vmatmul.f32.gmra.mxu3 %v3227_v32 }
  0xc9   : > { %1907 = vmatmul.f32.gmra.mxu1 %v3227_v32  ;;  %v511_v20 = vpop.f32.mrf.mxu2 }
  0xca   : > { %v512_v34 = vadd.f32 %v511_v20, %v3088_v24 }
  0xcb   : > { %v463_v37 = vpop.f32.mrf.mxu0  ;;  %v3240_v38 = vpop.f32.mrf.mxu3 }
  0xcc   : > { %5722 = vst [vmem:[#allocation5_spill] sm:$0xff] %v3240_v38  ;;  %v3242_v39 = vmax.f32 %v512_v34, 0.0  ;;  %v464_v41 = vadd.f32 %v463_v37, %v3088_v24  ;;  %v812_v7 = vpop.permute.xlu1 %811 }
  0xcd   : > { %886 = vst.msk [vmem:[%s3065_s10 + $0xb0] sm:$0xff] %vm863_vm1, %v812_v7  ;;  %v810_v19 = vpop.permute.xlu0 %809 }
  0xce   : > { %v3247_v44 = vmax.f32 %v464_v41, 0.0  ;;  %972 = vrot.lane.b32.xlu0 %v3242_v39, %s2654_s12  ;;  %885 = vst.msk [vmem:[%s3065_s10 + $0xa8] sm:$0xff] %vm863_vm1, %v810_v19  ;;  %v3353_v19 = vpop.f32.mrf.mxu1 }
  0xd0   : > { %940 = vrot.lane.b32.xlu2 %v3247_v44, %s2654_s12  ;;  %1299 = vmatmul.f32.gmra.mxu3 %v3247_v44 }
  0xd1   : > { %1910 = vmatmul.f32.gmra.mxu1 %v3247_v44  ;;  %v514_v50 = vpop.f32.mrf.mxu2 }
  0xd2   : > { %v515_v54 = vadd.f32 %v514_v50, %v3088_v24 }
  0xd3   : > { %v466_v55 = vpop.f32.mrf.mxu0  ;;  %v3268_v56 = vpop.f32.mrf.mxu3 }
  0xd4   : > { %5723 = vst [vmem:[#allocation6_spill] sm:$0xff] %v3268_v56  ;;  %v3270_v59 = vmax.f32 %v515_v54, 0.0  ;;  %v467_v61 = vadd.f32 %v466_v55, %v3088_v24  ;;  %v818_v33 = vpop.permute.xlu1 %817  ;;  %v3336_v55 = vld [vmem:[%s5659_s4 + $0x38] sm:$0xff] }
  0xd5   : > { %889 = vst.msk [vmem:[%s3065_s10 + $0xc8] sm:$0xff] %vm863_vm1, %v818_v33  ;;  %v816_v52 = vpop.permute.xlu0 %815  ;;  %1771 = vmatpush.msrb.mxu0 %v3336_v55  ;;  %v3362_v33 = vld [vmem:[%s5659_s4 + $0x30] sm:$0xff] }
  0xd6   : > { %v3275_v1 = vmax.f32 %v467_v61, 0.0  ;;  %974 = vrot.lane.b32.xlu1 %v3270_v59, %s2654_s12  ;;  %888 = vst.msk [vmem:[%s3065_s10 + $0xc0] sm:$0xff] %vm863_vm1, %v816_v52  ;;  %v319_v52 = vld [vmem:[%s5656_s1 + $0xb8] sm:$0xff] }
  0xd7   : > { %1772 = vmatpush.msrb.mxu0 %v3362_v33 }
  0xd8   : > { %942 = vrot.lane.b32.xlu0 %v3275_v1, %s2654_s12  ;;  %1302 = vmatmul.f32.gmra.mxu3 %v3275_v1 }
  0xd9   : > { %1913 = vmatmul.f32.gmra.mxu1 %v3275_v1  ;;  %v517_v4 = vpop.f32.mrf.mxu2 }
  0xda   : > { %v518_v10 = vadd.f32 %v517_v4, %v3088_v24 }
  0xdb   : > { %v469_v12 = vpop.f32.mrf.mxu0  ;;  %v3296_v13 = vpop.f32.mrf.mxu3 }
  0xdc   : > { %5724 = vst [vmem:[#allocation7_spill] sm:$0xff] %v3296_v13  ;;  %v3298_v14 = vmax.f32 %v518_v10, 0.0  ;;  %v470_v15 = vadd.f32 %v469_v12, %v3088_v24  ;;  %v824_v62 = vpop.permute.xlu1 %823 }
  0xdd   : > { %892 = vst.msk [vmem:[%s3065_s10 + $0xe0] sm:$0xff] %vm863_vm1, %v824_v62 }
  0xde   : > { %v3303_v25 = vmax.f32 %v470_v15, 0.0  ;;  %976 = vrot.lane.b32.xlu2 %v3298_v14, %s2654_s12  ;;  %v822_v15 = vpop.permute.xlu0 %821 }
  0xdf   : > { %891 = vst.msk [vmem:[%s3065_s10 + $0xd8] sm:$0xff] %vm863_vm1, %v822_v15 }
  0xe0   : > { %944 = vrot.lane.b32.xlu1 %v3303_v25, %s2654_s12  ;;  %1305 = vmatmul.f32.gmra.mxu3 %v3303_v25 }
  0xe1   : > { %1916 = vmatmul.f32.gmra.mxu1 %v3303_v25  ;;  %v520_v20 = vpop.f32.mrf.mxu2 }
  0xe2   : > { %v521_v34 = vadd.f32 %v520_v20, %v3088_v24 }
  0xe3   : > { %v472_v37 = vpop.f32.mrf.mxu0  ;;  %v3320_v41 = vpop.f32.mrf.mxu3 }
  0xe4   : > { %5725 = vst [vmem:[#allocation8_spill] sm:$0xff] %v3320_v41  ;;  %v3324_v43 = vmax.f32 %v521_v34, 0.0  ;;  %v473_v50 = vadd.f32 %v472_v37, %v3088_v24  ;;  %v322_v34 = vld [vmem:[%s5656_s1 + $0xd0] sm:$0xff] }
  0xe5   : > { %661 = vmatpush.msrb.mxu2 %v322_v34 }
  0xe6   : > { %v3329_v54 = vmax.f32 %v473_v50, 0.0  ;;  %978 = vrot.lane.b32.xlu0 %v3324_v43, %s2654_s12  ;;  %v830_v50 = vpop.permute.xlu1 %829  ;;  %v828_v34 = vpop.permute.xlu0 %827 }
  0xe7   : > { %895 = vst.msk [vmem:[%s3065_s10 + $0xf8] sm:$0xff] %vm863_vm1, %v830_v50  ;;  %662 = vmatpush.msrb.mxu2 %v319_v52  ;;  %v3398_v52 = vld [vmem:[%s5659_s4 + $0x28] sm:$0xff] }
  0xe8   : > { %946 = vrot.lane.b32.xlu2 %v3329_v54, %s2654_s12  ;;  %1308 = vmatmul.f32.gmra.mxu3 %v3329_v54  ;;  %894 = vst.msk [vmem:[%s3065_s10 + $0xf0] sm:$0xff] %vm863_vm1, %v828_v34 }
  0xe9   : > { %1919 = vmatmul.f32.gmra.mxu1 %v3329_v54  ;;  %v523_v61 = vpop.f32.mrf.mxu2  ;;  %1773 = vmatpush.msrb.mxu0 %v3398_v52 }
  0xea   : > { %v524_v0 = vadd.f32 %v523_v61, %v3088_v24 }
  0xeb   : > { %v475_v4 = vpop.f32.mrf.mxu0  ;;  %v3346_v7 = vpop.f32.mrf.mxu3 }
  0xec   : > { %5726 = vst [vmem:[#allocation9_spill] sm:$0xff] %v3346_v7  ;;  %v3348_v10 = vmax.f32 %v524_v0, 0.0  ;;  %v476_v12 = vadd.f32 %v475_v4, %v3088_v24  ;;  %v316_v4 = vld [vmem:[%s5656_s1 + $0xa0] sm:$0xff] }
  0xed   : > { %663 = vmatpush.msrb.mxu2 %v316_v4  ;;  %v304_v7 = vld [vmem:[%s5656_s1 + $0x40] sm:$0xff] }
  0xee   : > { %v3355_v20 = vmax.f32 %v476_v12, 0.0  ;;  %980 = vrot.lane.b32.xlu1 %v3348_v10, %s2654_s12 }
  0xf0   : > { %948 = vrot.lane.b32.xlu0 %v3355_v20, %s2654_s12  ;;  %1311 = vmatmul.f32.gmra.mxu3 %v3355_v20 }
  0xf1   : > { %1922 = vmatmul.f32.gmra.mxu1 %v3355_v20  ;;  %v526_v37 = vpop.f32.mrf.mxu2 }
  0xf2   : > { %v527_v61 = vadd.f32 %v526_v37, %v3088_v24  ;;  %v313_v37 = vld [vmem:[%s5656_s1 + $0x88] sm:$0xff] }
  0xf3   : > { %v478_v62 = vpop.f32.mrf.mxu0  ;;  %v3378_v0 = vpop.f32.mrf.mxu3  ;;  %664 = vmatpush.msrb.mxu2 %v313_v37 }
  0xf4   : > { %5727 = vst [vmem:[#allocation10_spill] sm:$0xff] %v3378_v0  ;;  %v3383_v12 = vmax.f32 %v527_v61, 0.0  ;;  %v479_v15 = vadd.f32 %v478_v62, %v3088_v24  ;;  %v310_v61 = vld [vmem:[%s5656_s1 + $0x70] sm:$0xff]  ;;  %v3404_v62 = vpop.f32.mrf.mxu1 }
  0xf5   : > { %665 = vmatpush.msrb.mxu2 %v310_v61  ;;  %v301_v61 = vld [vmem:[%s5656_s1 + $0x28] sm:$0xff] }
  0xf6   : > { %v3391_v50 = vmax.f32 %v479_v15, 0.0  ;;  %982 = vrot.lane.b32.xlu2 %v3383_v12, %s2654_s12  ;;  %v307_v15 = vld [vmem:[%s5656_s1 + $0x58] sm:$0xff] }
  0xf7   : > { %666 = vmatpush.msrb.mxu2 %v307_v15  ;;  %v298_v15 = vld [vmem:[%s5656_s1 + $0x10] sm:$0xff] }
  0xf8   : > { %950 = vrot.lane.b32.xlu1 %v3391_v50, %s2654_s12  ;;  %1314 = vmatmul.f32.gmra.mxu3 %v3391_v50 }
  0xf9   : > { %1925 = vmatmul.f32.gmra.mxu1 %v3391_v50  ;;  %v529_v4 = vpop.f32.mrf.mxu2  ;;  %667 = vmatpush.msrb.mxu2 %v304_v7  ;;  %v3445_v7 = vld [vmem:[%s5659_s4 + $0x18] sm:$0xff] }
  0xfa   : > { %v530_v34 = vadd.f32 %v529_v4, %v3088_v24  ;;  %v3432_v4 = vld [vmem:[%s5659_s4 + $0x20] sm:$0xff] }
  0xfb   : > { %v481_v37 = vpop.f32.mrf.mxu0  ;;  %v3414_v0 = vpop.f32.mrf.mxu3  ;;  %668 = vmatpush.msrb.mxu2 %v301_v61  ;;  %1774 = vmatpush.msrb.mxu0 %v3432_v4 }
  0xfc   : > { %5728 = vst [vmem:[#allocation11_spill] sm:$0xff] %v3414_v0  ;;  %v3419_v41 = vmax.f32 %v530_v34, 0.0  ;;  %v482_v13 = vadd.f32 %v481_v37, %v3088_v24  ;;  %v3447_v34 = vpop.f32.mrf.mxu1 }
  0xfd   : > { %669 = vmatpush.msrb.mxu2 %v298_v15  ;;  %1775 = vmatpush.msrb.mxu0 %v3445_v7  ;;  %v3458_v15 = vld [vmem:[%s5659_s4 + $0x10] sm:$0xff] }
  0xfe   : > { %v3425_v56 = vmax.f32 %v482_v13, 0.0  ;;  %984 = vrot.lane.b32.xlu0 %v3419_v41, %s2654_s12  ;;  %2502 = vmatmul.msk.f32.vlgmr.msrb.gmra.mxu2 %vm331_vm0, %v2767_v17  ;;  %v3468_v17 = vld [vmem:[%s5659_s4 + $0x8] sm:$0xff] }
  0xff   : > { %2556 = vmatpush.msra.mxu2 %v3100_v31  ;;  %1776 = vmatpush.msrb.mxu0 %v3458_v15  ;;  %v3479_v31 = vld [vmem:[%s5659_s4] sm:$0xff] }
 0x100   : > { %952 = vrot.lane.b32.xlu2 %v3425_v56, %s2654_s12  ;;  %1317 = vmatmul.f32.gmra.mxu3 %v3425_v56 }
 0x101   : > { %1928 = vmatmul.f32.gmra.mxu1 %v3425_v56  ;;  %v532_v13 = vpop.f32.mrf.mxu2  ;;  %2557 = vmatpush.msra.mxu2 %v3138_v48 }
 0x102   : > { %v533_v37 = vadd.f32 %v532_v13, %v3088_v24  ;;  %1777 = vmatpush.msrb.mxu0 %v3468_v17 }
 0x103   : > { %v484_v61 = vpop.f32.mrf.mxu0  ;;  %v3453_v0 = vpop.f32.mrf.mxu3  ;;  %2558 = vmatpush.msra.mxu2 %v3166_v60 }
 0x104   : > { %5729 = vst [vmem:[#allocation12_spill] sm:$0xff] %v3453_v0  ;;  %v3461_v38 = vmax.f32 %v533_v37, 0.0  ;;  %v485_v16 = vadd.f32 %v484_v61, %v3088_v24  ;;  %1778 = vmatpush.msrb.mxu0 %v3479_v31  ;;  %v3493_v60 = vpop.f32.mrf.mxu1 }
 0x105   : > { %2559 = vmatpush.msra.mxu2 %v3194_v8  ;;  %v929_v8 = vpop.permute.xlu2 %928 }
 0x106   : > { %v3471_v13 = vmax.f32 %v485_v16, 0.0  ;;  %986 = vrot.lane.b32.xlu1 %v3461_v38, %s2654_s12  ;;  %2503 = vmatmul.msk.f32.gmra.mxu2 %vm331_vm0, %v2805_v26 }
 0x107   : > { %2560 = vmatpush.msra.mxu2 %v3220_v21 }
 0x108   : > { %954 = vrot.lane.b32.xlu0 %v3471_v13, %s2654_s12  ;;  %1320 = vmatmul.f32.gmra.mxu3 %v3471_v13 }
 0x109   : > { %1931 = vmatmul.f32.gmra.mxu1 %v3471_v13  ;;  %v535_v48 = vpop.f32.mrf.mxu2  ;;  %2561 = vmatpush.msra.mxu2 %v3256_v47 }
 0x10a   : > { %v536_v16 = vadd.f32 %v535_v48, %v3088_v24 }
 0x10b   : > { %v487_v37 = vpop.f32.mrf.mxu0  ;;  %v3490_v61 = vpop.f32.mrf.mxu3  ;;  %2562 = vmatpush.msra.mxu2 %v3284_v3  ;;  %v3522_v3 = vmax.f32 %v3093_v29, %v929_v8 }
 0x10c   : > { %5730 = vst [vmem:[#allocation13_spill] sm:$0xff] %v3490_v61  ;;  %v3495_v0 = vmax.f32 %v536_v16, 0.0  ;;  %v488_v5 = vadd.f32 %v487_v37, %v3088_v24  ;;  %v3519_v37 = vpop.f32.mrf.mxu1 }
 0x10d   : > { %2563 = vmatpush.msra.mxu2 %v3310_v27  ;;  %v965_v29 = vpop.permute.xlu2 %964 }
 0x10e   : > { %v3499_v57 = vmax.f32 %v488_v5, 0.0  ;;  %988 = vrot.lane.b32.xlu2 %v3495_v0, %s2654_s12  ;;  %2504 = vmatmul.msk.f32.gmra.mxu2 %vm331_vm0, %v2793_v23 }
 0x10f   : > { %2564 = vmatpush.msra.mxu2 %v3336_v55 }
 0x110   : > { %956 = vrot.lane.b32.xlu1 %v3499_v57, %s2654_s12  ;;  %1323 = vmatmul.f32.gmra.mxu3 %v3499_v57 }
 0x111   : > { %1934 = vmatmul.f32.gmra.mxu1 %v3499_v57  ;;  %v538_v26 = vpop.f32.mrf.mxu2  ;;  %2565 = vmatpush.msra.mxu2 %v3362_v33 }
 0x112   : > { %v539_v21 = vadd.f32 %v538_v26, %v3088_v24 }
 0x113   : > { %v490_v5 = vpop.f32.mrf.mxu0  ;;  %v3512_v48 = vpop.f32.mrf.mxu3  ;;  %2566 = vmatpush.msra.mxu2 %v3398_v52 }
 0x114   : > { %5731 = vst [vmem:[#allocation14_spill] sm:$0xff] %v3512_v48  ;;  %v3515_v47 = vmax.f32 %v539_v21, 0.0  ;;  %v491_v16 = vadd.f32 %v490_v5, %v3088_v24  ;;  %v3546_v5 = vperm.slane %v3080_v22, 1  ;;  %v3561_v52 = vpop.f32.mrf.mxu1  ;;  %v2600_v22 = vld [vmem:[%s2758_s9 + $0x20] sm:$0xff] }
 0x115   : > { %2567 = vmatpush.msra.mxu2 %v3432_v4 }
 0x116   : > { %v3524_v26 = vmax.f32 %v491_v16, 0.0  ;;  %990 = vrot.lane.b32.xlu0 %v3515_v47, %s2654_s12  ;;  %2505 = vmatmul.msk.f32.gmra.mxu2 %vm331_vm0, %v2825_v30  ;;  %v3549_v16 = vmax.f32 %v3132_v46, %v965_v29  ;;  %v562_v29 = vadd.f32 %v3181_v2, %v3546_v5 }
 0x117   : > { %2568 = vmatpush.msra.mxu2 %v3445_v7 }
 0x118   : > { %958 = vrot.lane.b32.xlu2 %v3524_v26, %s2654_s12  ;;  %1024 = vrot.lane.b32.xlu1 %v3522_v3, %s2655_s29  ;;  %v963_v23 = vpop.permute.xlu1 %962 }
 0x119   : > { %1326 = vmatmul.f32.gmra.mxu3 %v3524_v26  ;;  %1937 = vmatmul.f32.gmra.mxu1 %v3524_v26  ;;  %v3541_v33 = vmax.f32 %v3112_v36, %v963_v23 }
 0x11a   : > { %v931_v27 = vpop.permute.xlu0 %930  ;;  %2569 = vmatpush.msra.mxu2 %v3458_v15 }
 0x11b   : > { %v493_v55 = vpop.f32.mrf.mxu0  ;;  %v3537_v8 = vpop.f32.mrf.mxu3  ;;  %v3552_v30 = vmax.f32 %v3117_v40, %v931_v27 }
 0x11c   : > { %5732 = vst [vmem:[#allocation15_spill] sm:$0xff] %v3537_v8  ;;  %v494_v21 = vadd.f32 %v493_v55, %v3088_v24  ;;  %v559_v24 = vadd.f32 %v3151_v53, %v3546_v5  ;;  %v935_v40 = vpop.permute.xlu2 %934  ;;  %2570 = vmatpush.msra.mxu2 %v3468_v17  ;;  %v2601_v17 = vld [vmem:[%s2758_s9 + $0x28] sm:$0xff] }
 0x11d   : > { %v3574_v7 = vmax.f32 %v3171_v63, %v935_v40  ;;  %v3589_v63 = vpop.f32.mrf.mxu1 }
 0x11e   : > { %v3554_v8 = vmax.f32 %v494_v21, 0.0  ;;  %1058 = vrot.lane.b32.xlu0 %v3541_v33, %s2655_s29  ;;  %2506 = vmatmul.msk.f32.gmra.mxu2 %vm331_vm0, %v2600_v22 }
 0x11f   : > { %2571 = vmatpush.msra.mxu2 %v3479_v31 }
 0x120   : > { %1026 = vrot.lane.b32.xlu2 %v3552_v30, %s2655_s29  ;;  %1060 = vrot.lane.b32.xlu1 %v3549_v16, %s2655_s29 }
 0x121   : > { %1329 = vmatmul.f32.gmra.mxu3 %v3554_v8  ;;  %1940 = vmatmul.f32.gmra.mxu1 %v3554_v8 }
 0x122   : > { %v933_v15 = vpop.permute.xlu1 %932 }
 0x123   : > { %v1282_v4 = vpop.f32.mrf.mxu3  ;;  %v3595_v27 = vmax.f32 %v3143_v51, %v933_v15  ;;  %v2602_v51 = vld [vmem:[%s2758_s9 + $0x30] sm:$0xff] }
 0x124   : > { %v1283_v53 = vadd.f32 %v1282_v4, %v559_v24 }
 0x125   : > { %v3613_v4 = vpop.f32.mrf.mxu1 }
 0x126   : > { %v3576_v23 = vmax.f32 %v1283_v53, 0.0  ;;  %960 = vrot.lane.b32.xlu0 %v3554_v8, %s2654_s12  ;;  %2507 = vmatmul.msk.f32.gmra.mxu2 %vm331_vm0, %v2601_v17  ;;  %v2603_v17 = vld [vmem:[%s2758_s9 + $0x38] sm:$0xff] }
 0x128   : > { %1030 = vrot.lane.b32.xlu1 %v3574_v7, %s2655_s29  ;;  %1410 = vrot.lane.b32.xlu2 %v3576_v23, %s2654_s12  ;;  %v967_v2 = vpop.permute.xlu0 %966 }
 0x129   : > { %1332 = vmatmul.f32.gmra.mxu3 %v3112_v36  ;;  %1943 = vmatmul.f32.gmra.mxu1 %v3112_v36  ;;  %v3598_v21 = vmax.f32 %v3160_v58, %v967_v2  ;;  %v565_v36 = vadd.f32 %v3225_v28, %v3546_v5 }
 0x12a   : > { %1779 = vmatmul.f32.vlgmr.msrb.gmra.mxu0 %v3576_v23 }
 0x12b   : > { %v1285_v31 = vpop.f32.mrf.mxu3 }
 0x12c   : > { %v1286_v55 = vadd.f32 %v1285_v31, %v562_v29 }
 0x12e   : > { %v3600_v24 = vmax.f32 %v1286_v55, 0.0  ;;  %1028 = vrot.lane.b32.xlu0 %v3595_v27, %s2655_s29  ;;  %2508 = vmatmul.msk.f32.gmra.mxu2 %vm331_vm0, %v2602_v51  ;;  %v3636_v55 = vpop.f32.mrf.mxu1 }
 0x130   : > { %1062 = vrot.lane.b32.xlu2 %v3598_v21, %s2655_s29  ;;  %v969_v15 = vpop.permute.xlu1 %968 }
 0x131   : > { %1335 = vmatmul.f32.gmra.mxu3 %v3132_v46  ;;  %1946 = vmatmul.f32.gmra.mxu1 %v3132_v46  ;;  %v568_v46 = vadd.f32 %v3259_v49, %v3546_v5  ;;  %v3634_v49 = vmax.f32 %v3188_v6, %v969_v15 }
 0x132   : > { %1782 = vmatmul.f32.gmra.mxu0 %v3600_v24  ;;  %v937_v22 = vpop.permute.xlu0 %936 }
 0x133   : > { %v1288_v40 = vpop.f32.mrf.mxu3  ;;  %v3616_v28 = vmax.f32 %v3199_v11, %v937_v22  ;;  %v971_v11 = vpop.permute.xlu2 %970 }
 0x134   : > { %v1289_v53 = vadd.f32 %v1288_v40, %v565_v36  ;;  %v3639_v36 = vmax.f32 %v3214_v18, %v971_v11 }
 0x136   : > { %v3618_v29 = vmax.f32 %v1289_v53, 0.0  ;;  %1412 = vrot.lane.b32.xlu0 %v3600_v24, %s2654_s12  ;;  %2509 = vmatmul.msk.f32.gmra.mxu2 %vm331_vm0, %v2603_v17  ;;  %v2604_v53 = vld [vmem:[%s2758_s9 + $0x40] sm:$0xff] }
 0x138   : > { %1414 = vrot.lane.b32.xlu1 %v3618_v29, %s2654_s12  ;;  %1032 = vrot.lane.b32.xlu2 %v3616_v28, %s2655_s29 }
 0x139   : > { %1338 = vmatmul.f32.gmra.mxu3 %v3160_v58  ;;  %1949 = vmatmul.f32.gmra.mxu1 %v3160_v58  ;;  %v571_v58 = vadd.f32 %v3291_v9, %v3546_v5 }
 0x13a   : > { %1785 = vmatmul.f32.gmra.mxu0 %v3618_v29  ;;  %v939_v22 = vpop.permute.xlu1 %938 }
 0x13b   : > { %v1291_v2 = vpop.f32.mrf.mxu3  ;;  %v941_v40 = vpop.permute.xlu2 %940  ;;  %v3657_v15 = vmax.f32 %v3227_v32, %v939_v22 }
 0x13c   : > { %v1292_v31 = vadd.f32 %v1291_v2, %v568_v46  ;;  %v3660_v17 = vmax.f32 %v3247_v44, %v941_v40  ;;  %v2605_v44 = vld [vmem:[%s2758_s9 + $0x48] sm:$0xff] }
 0x13e   : > { %v3641_v51 = vmax.f32 %v1292_v31, 0.0  ;;  %1064 = vrot.lane.b32.xlu0 %v3634_v49, %s2655_s29  ;;  %2510 = vmatmul.msk.f32.gmra.mxu2 %vm331_vm0, %v2604_v53  ;;  %v574_v31 = vadd.f32 %v3322_v42, %v3546_v5  ;;  %v3671_v53 = vpop.f32.mrf.mxu1 }
 0x140   : > { %1066 = vrot.lane.b32.xlu1 %v3639_v36, %s2655_s29  ;;  %1416 = vrot.lane.b32.xlu2 %v3641_v51, %s2654_s12  ;;  %v973_v46 = vpop.permute.xlu0 %972 }
 0x141   : > { %1341 = vmatmul.f32.gmra.mxu3 %v3188_v6  ;;  %1952 = vmatmul.f32.gmra.mxu1 %v3188_v6  ;;  %v3663_v2 = vmax.f32 %v3242_v39, %v973_v46 }
 0x142   : > { %1788 = vmatmul.f32.gmra.mxu0 %v3641_v51 }
 0x143   : > { %v1294_v9 = vpop.f32.mrf.mxu3  ;;  %v977_v32 = vpop.permute.xlu2 %976 }
 0x144   : > { %v1295_v11 = vadd.f32 %v1294_v9, %v571_v58 }
 0x146   : > { %v3665_v6 = vmax.f32 %v1295_v11, 0.0  ;;  %1034 = vrot.lane.b32.xlu0 %v3657_v15, %s2655_s29  ;;  %2511 = vmatmul.msk.f32.gmra.mxu2 %vm331_vm0, %v2605_v44 }
 0x148   : > { %1036 = vrot.lane.b32.xlu1 %v3660_v17, %s2655_s29  ;;  %1068 = vrot.lane.b32.xlu2 %v3663_v2, %s2655_s29  ;;  %v975_v9 = vpop.permute.xlu1 %974 }
 0x149   : > { %1344 = vmatmul.f32.gmra.mxu3 %v3214_v18  ;;  %1955 = vmatmul.f32.gmra.mxu1 %v3214_v18  ;;  %v577_v18 = vadd.f32 %v3353_v19, %v3546_v5  ;;  %v3703_v44 = vmax.f32 %v3270_v59, %v975_v9 }
 0x14a   : > { %1791 = vmatmul.f32.gmra.mxu0 %v3665_v6  ;;  %v943_v42 = vpop.permute.xlu0 %942 }
 0x14b   : > { %v1297_v58 = vpop.f32.mrf.mxu3  ;;  %v3683_v40 = vmax.f32 %v3275_v1, %v943_v42  ;;  %v3697_v1 = vpop.f32.mrf.mxu1 }
 0x14c   : > { %v1298_v22 = vadd.f32 %v1297_v58, %v574_v31  ;;  %v947_v11 = vpop.permute.xlu2 %946  ;;  %v2606_v31 = vld [vmem:[%s2758_s9 + $0x50] sm:$0xff]  ;;  %v3706_v58 = vmax.f32 %v3298_v14, %v977_v32 }
 0x14d   : > { %v3729_v61 = vmax.f32 %v3329_v54, %v947_v11  ;;  %v2608_v54 = vld [vmem:[%s2758_s9 + $0x60] sm:$0xff] }
 0x14e   : > { %v3685_v46 = vmax.f32 %v1298_v22, 0.0  ;;  %1418 = vrot.lane.b32.xlu0 %v3665_v6, %s2654_s12  ;;  %2512 = vmatmul.msk.f32.gmra.mxu2 %vm331_vm0, %v2606_v31  ;;  %5733 = vst [vmem:[#allocation16_spill] sm:$0xff] %v3706_v58 }
 0x150   : > { %1420 = vrot.lane.b32.xlu1 %v3685_v46, %s2654_s12  ;;  %1038 = vrot.lane.b32.xlu2 %v3683_v40, %s2655_s29 }
 0x151   : > { %1347 = vmatmul.f32.gmra.mxu3 %v3242_v39  ;;  %1958 = vmatmul.f32.gmra.mxu1 %v3242_v39  ;;  %v580_v39 = vadd.f32 %v3404_v62, %v3546_v5 }
 0x152   : > { %1794 = vmatmul.f32.gmra.mxu0 %v3685_v46  ;;  %v945_v9 = vpop.permute.xlu1 %944 }
 0x153   : > { %v1300_v19 = vpop.f32.mrf.mxu3 }
 0x154   : > { %v1301_v42 = vadd.f32 %v1300_v19, %v577_v18  ;;  %v983_v32 = vpop.permute.xlu2 %982  ;;  %v2607_v18 = vld [vmem:[%s2758_s9 + $0x58] sm:$0xff]  ;;  %v3723_v19 = vpop.f32.mrf.mxu1 }
 0x156   : > { %v3708_v22 = vmax.f32 %v1301_v42, 0.0  ;;  %1070 = vrot.lane.b32.xlu0 %v3703_v44, %s2655_s29  ;;  %2513 = vmatmul.msk.f32.gmra.mxu2 %vm331_vm0, %v2607_v18  ;;  %v3726_v42 = vmax.f32 %v3303_v25, %v945_v9  ;;  %v583_v18 = vadd.f32 %v3447_v34, %v3546_v5 }
 0x158   : > { %1072 = vrot.lane.b32.xlu1 %v3706_v58, %s2655_s29  ;;  %1422 = vrot.lane.b32.xlu2 %v3708_v22, %s2654_s12  ;;  %v979_v31 = vpop.permute.xlu0 %978 }
 0x159   : > { %1350 = vmatmul.f32.gmra.mxu3 %v3270_v59  ;;  %1961 = vmatmul.f32.gmra.mxu1 %v3270_v59  ;;  %v3732_v59 = vmax.f32 %v3324_v43, %v979_v31 }
 0x15a   : > { %1797 = vmatmul.f32.gmra.mxu0 %v3708_v22 }
 0x15b   : > { %v1303_v62 = vpop.f32.mrf.mxu3 }
 0x15c   : > { %v1304_v48 = vadd.f32 %v1303_v62, %v580_v39  ;;  %v953_v25 = vpop.permute.xlu2 %952  ;;  %v3749_v39 = vpop.f32.mrf.mxu1 }
 0x15e   : > { %v3734_v58 = vmax.f32 %v1304_v48, 0.0  ;;  %1040 = vrot.lane.b32.xlu0 %v3726_v42, %s2655_s29  ;;  %2514 = vmatmul.msk.f32.gmra.mxu2 %vm331_vm0, %v2608_v54 }
 0x160   : > { %1042 = vrot.lane.b32.xlu1 %v3729_v61, %s2655_s29  ;;  %1074 = vrot.lane.b32.xlu2 %v3732_v59, %s2655_s29  ;;  %v981_v62 = vpop.permute.xlu1 %980 }
 0x161   : > { %1353 = vmatmul.f32.gmra.mxu3 %v3298_v14  ;;  %1964 = vmatmul.f32.gmra.mxu1 %v3298_v14  ;;  %v586_v14 = vadd.f32 %v3493_v60, %v3546_v5  ;;  %v3770_v60 = vmax.f32 %v3348_v10, %v981_v62  ;;  %v2610_v62 = vld [vmem:[%s2758_s9 + $0x70] sm:$0xff] }
 0x162   : > { %1800 = vmatmul.f32.gmra.mxu0 %v3734_v58  ;;  %v949_v48 = vpop.permute.xlu0 %948 }
 0x163   : > { %v1306_v11 = vpop.f32.mrf.mxu3  ;;  %v3752_v9 = vmax.f32 %v3355_v20, %v949_v48  ;;  %5735 = vst [vmem:[#allocation18_spill] sm:$0xff] %v3770_v60 }
 0x164   : > { %v1307_v34 = vadd.f32 %v1306_v11, %v583_v18  ;;  %v2609_v18 = vld [vmem:[%s2758_s9 + $0x68] sm:$0xff]  ;;  %v3773_v11 = vmax.f32 %v3383_v12, %v983_v32 }
 0x166   : > { %v3754_v31 = vmax.f32 %v1307_v34, 0.0  ;;  %1424 = vrot.lane.b32.xlu0 %v3734_v58, %s2654_s12  ;;  %2515 = vmatmul.msk.f32.gmra.mxu2 %vm331_vm0, %v2609_v18  ;;  %5736 = vst [vmem:[#allocation19_spill] sm:$0xff] %v3773_v11 }
 0x168   : > { %5734 = vst [vmem:[#allocation17_spill] sm:$0xff] %v3754_v31  ;;  %1426 = vrot.lane.b32.xlu1 %v3754_v31, %s2654_s12  ;;  %1044 = vrot.lane.b32.xlu2 %v3752_v9, %s2655_s29  ;;  %v989_v20 = vpop.permute.xlu2 %988 }
 0x169   : > { %1356 = vmatmul.f32.gmra.mxu3 %v3324_v43  ;;  %1967 = vmatmul.f32.gmra.mxu1 %v3324_v43  ;;  %v589_v43 = vadd.f32 %v3519_v37, %v3546_v5 }
 0x16a   : > { %1803 = vmatmul.f32.gmra.mxu0 %v3754_v31  ;;  %v3781_v31 = vpop.f32.mrf.mxu1 }
 0x16b   : > { %v1309_v54 = vpop.f32.mrf.mxu3 }
 0x16c   : > { %v1310_v48 = vadd.f32 %v1309_v54, %v586_v14  ;;  %v951_v14 = vpop.permute.xlu1 %950 }
 0x16d   : > { %v3793_v54 = vmax.f32 %v3391_v50, %v951_v14 }
 0x16e   : > { %v3775_v34 = vmax.f32 %v1310_v48, 0.0  ;;  %1076 = vrot.lane.b32.xlu0 %v3770_v60, %s2655_s29  ;;  %2516 = vmatmul.msk.f32.gmra.mxu2 %vm331_vm0, %v2610_v62  ;;  %v592_v62 = vadd.f32 %v3561_v52, %v3546_v5 }
 0x170   : > { %1078 = vrot.lane.b32.xlu1 %v3773_v11, %s2655_s29  ;;  %1428 = vrot.lane.b32.xlu2 %v3775_v34, %s2654_s12  ;;  %v985_v37 = vpop.permute.xlu0 %984  ;;  %v3796_v11 = vmax.f32 %v3425_v56, %v953_v25  ;;  %v2611_v25 = vld [vmem:[%s2758_s9 + $0x78] sm:$0xff] }
 0x171   : > { %1359 = vmatmul.f32.gmra.mxu3 %v3348_v10  ;;  %1970 = vmatmul.f32.gmra.mxu1 %v3348_v10  ;;  %v3799_v60 = vmax.f32 %v3419_v41, %v985_v37 }
 0x172   : > { %1806 = vmatmul.f32.gmra.mxu0 %v3775_v34  ;;  %v959_v32 = vpop.permute.xlu2 %958  ;;  %v3813_v56 = vpop.f32.mrf.mxu1 }
 0x173   : > { %v1312_v18 = vpop.f32.mrf.mxu3 }
 0x174   : > { %v1313_v48 = vadd.f32 %v1312_v18, %v589_v43 }
 0x176   : > { %v3801_v10 = vmax.f32 %v1313_v48, 0.0  ;;  %1046 = vrot.lane.b32.xlu0 %v3793_v54, %s2655_s29  ;;  %2517 = vmatmul.msk.f32.gmra.mxu2 %vm331_vm0, %v2611_v25 }
 0x178   : > { %5737 = vst [vmem:[#allocation20_spill] sm:$0xff] %v3801_v10  ;;  %1048 = vrot.lane.b32.xlu1 %v3796_v11, %s2655_s29  ;;  %1080 = vrot.lane.b32.xlu2 %v3799_v60, %s2655_s29  ;;  %v987_v14 = vpop.permute.xlu1 %986 }
 0x179   : > { %1362 = vmatmul.f32.gmra.mxu3 %v3383_v12  ;;  %1973 = vmatmul.f32.gmra.mxu1 %v3383_v12  ;;  %v595_v12 = vadd.f32 %v3589_v63, %v3546_v5  ;;  %v3839_v63 = vmax.f32 %v3461_v38, %v987_v14  ;;  %v2613_v14 = vld [vmem:[%s2758_s9 + $0x88] sm:$0xff] }
 0x17a   : > { %1809 = vmatmul.f32.gmra.mxu0 %v3801_v10  ;;  %v1027_v50 = vpop.permute.xlu2 %1026  ;;  %v955_v52 = vpop.permute.xlu0 %954 }
 0x17b   : > { %v1315_v43 = vpop.f32.mrf.mxu3  ;;  %v3819_v18 = vmax.f32 %v3471_v13, %v955_v52  ;;  %5739 = vst [vmem:[#allocation22_spill] sm:$0xff] %v3839_v63 }
 0x17c   : > { %v1316_v37 = vadd.f32 %v1315_v43, %v592_v62  ;;  %v2612_v62 = vld [vmem:[%s2758_s9 + $0x80] sm:$0xff] }
 0x17e   : > { %v3821_v48 = vmax.f32 %v1316_v37, 0.0  ;;  %1430 = vrot.lane.b32.xlu0 %v3801_v10, %s2654_s12  ;;  %2518 = vmatmul.msk.f32.gmra.mxu2 %vm331_vm0, %v2612_v62  ;;  %v3841_v37 = vpop.f32.mrf.mxu1  ;;  %v3844_v10 = vmax.f32 %v3495_v0, %v989_v20  ;;  %v598_v62 = vadd.f32 %v3613_v4, %v3546_v5 }
 0x180   : > { %5738 = vst [vmem:[#allocation21_spill] sm:$0xff] %v3821_v48  ;;  %1432 = vrot.lane.b32.xlu1 %v3821_v48, %s2654_s12  ;;  %1050 = vrot.lane.b32.xlu2 %v3819_v18, %s2655_s29 }
 0x181   : > { %1365 = vmatmul.f32.gmra.mxu3 %v3419_v41  ;;  %1976 = vmatmul.f32.gmra.mxu1 %v3419_v41  ;;  %5740 = vst [vmem:[#allocation23_spill] sm:$0xff] %v3844_v10 }
 0x182   : > { %1812 = vmatmul.f32.gmra.mxu0 %v3821_v48  ;;  %v3834_v13 = vpop.permute.xlu2 %1410  ;;  %v957_v52 = vpop.permute.xlu1 %956 }
 0x183   : > { %v1318_v25 = vpop.f32.mrf.mxu3  ;;  %v3864_v4 = vmax.f32 %v3499_v57, %v957_v52  ;;  %v601_v57 = vadd.f32 %v3636_v55, %v3546_v5 }
 0x184   : > { %v1319_v43 = vadd.f32 %v1318_v25, %v595_v12 }
 0x186   : > { %v3846_v41 = vmax.f32 %v1319_v43, 0.0  ;;  %1082 = vrot.lane.b32.xlu0 %v3839_v63, %s2655_s29  ;;  %2519 = vmatmul.msk.f32.gmra.mxu2 %vm331_vm0, %v2613_v14  ;;  %v3867_v43 = vmax.f32 %v3524_v26, %v959_v32  ;;  %v2614_v32 = vld [vmem:[%s2758_s9 + $0x90] sm:$0xff]  ;;  %v3895_v14 = vmax.f32 %v3552_v30, %v1027_v50  ;;  %v2615_v50 = vld [vmem:[%s2758_s9 + $0x98] sm:$0xff] }
 0x188   : > { %5741 = vst [vmem:[#allocation24_spill] sm:$0xff] %v3846_v41  ;;  %v991_v48 = vpop.permute.xlu0 %990  ;;  %1084 = vrot.lane.b32.xlu1 %v3844_v10, %s2655_s29  ;;  %1434 = vrot.lane.b32.xlu2 %v3846_v41, %s2654_s12 }
 0x189   : > { %1368 = vmatmul.f32.gmra.mxu3 %v3461_v38  ;;  %1979 = vmatmul.f32.gmra.mxu1 %v3461_v38  ;;  %5742 = vst [vmem:[#allocation25_spill] sm:$0xff] %v3867_v43  ;;  %v3870_v10 = vmax.f32 %v3515_v47, %v991_v48 }
 0x18a   : > { %1815 = vmatmul.f32.gmra.mxu0 %v3846_v41  ;;  %v3859_v20 = vpop.permute.xlu2 %1062  ;;  %v1025_v38 = vpop.permute.xlu1 %1024 }
 0x18b   : > { %v1321_v12 = vpop.f32.mrf.mxu3  ;;  %v3876_v41 = vpop.f32.mrf.mxu1  ;;  %v3892_v55 = vmax.f32 %v3522_v3, %v1025_v38  ;;  %v604_v3 = vadd.f32 %v3671_v53, %v3546_v5 }
 0x18c   : > { %v1322_v25 = vadd.f32 %v1321_v12, %v598_v62 }
 0x18e   : > { %v3872_v63 = vmax.f32 %v1322_v25, 0.0  ;;  %1052 = vrot.lane.b32.xlu0 %v3864_v4, %s2655_s29  ;;  %2520 = vmatmul.msk.f32.gmra.mxu2 %vm331_vm0, %v2614_v32 }
 0x190   : > { %5743 = vst [vmem:[#allocation26_spill] sm:$0xff] %v3872_v63  ;;  %v1059_v52 = vpop.permute.xlu0 %1058  ;;  %1054 = vrot.lane.b32.xlu1 %v3867_v43, %s2655_s29  ;;  %1086 = vrot.lane.b32.xlu2 %v3870_v10, %s2655_s29 }
 0x191   : > { %1371 = vmatmul.f32.gmra.mxu3 %v3495_v0  ;;  %1982 = vmatmul.f32.gmra.mxu1 %v3495_v0  ;;  %v3898_v12 = vmax.f32 %v3541_v33, %v1059_v52 }
 0x192   : > { %1818 = vmatmul.f32.gmra.mxu0 %v3872_v63  ;;  %v3887_v26 = vpop.permute.xlu2 %1032  ;;  %v1061_v25 = vpop.permute.xlu1 %1060 }
 0x193   : > { %v1324_v48 = vpop.f32.mrf.mxu3  ;;  %v3910_v30 = vpop.f32.mrf.mxu1 }
 0x194   : > { %v1325_v62 = vadd.f32 %v1324_v48, %v601_v57 }
 0x196   : > { %v3900_v0 = vmax.f32 %v1325_v62, 0.0  ;;  %1120 = vrot.lane.b32.xlu0 %v3892_v55, %s2656_s30  ;;  %2521 = vmatmul.msk.f32.gmra.mxu2 %vm331_vm0, %v2615_v50 }
 0x198   : > { %5744 = vst [vmem:[#allocation27_spill] sm:$0xff] %v3900_v0  ;;  %v961_v32 = vpop.permute.xlu0 %960  ;;  %1122 = vrot.lane.b32.xlu1 %v3895_v14, %s2656_s30  ;;  %1154 = vrot.lane.b32.xlu2 %v3898_v12, %s2656_s30 }
 0x199   : > { %1374 = vmatmul.f32.gmra.mxu3 %v3515_v47  ;;  %1985 = vmatmul.f32.gmra.mxu1 %v3515_v47  ;;  %v3920_v52 = vmax.f32 %v3554_v8, %v961_v32  ;;  %v607_v8 = vadd.f32 %v3110_v35, %v3546_v5  ;;  %v3938_v32 = vmax.f32 %v3549_v16, %v1061_v25 }
 0x19a   : > { %1821 = vmatmul.f32.gmra.mxu0 %v3900_v0  ;;  %v3915_v33 = vpop.permute.xlu2 %1416  ;;  %v1031_v47 = vpop.permute.xlu1 %1030 }
 0x19b   : > { %5745 = vst [vmem:[#allocation28_spill] sm:$0xff] %v3920_v52 }
 0x19c   : > { %v1327_v38 = vpop.f32.mrf.mxu3 }
 0x19d   : > { %v1328_v57 = vadd.f32 %v1327_v38, %v604_v3  ;;  %v2616_v3 = vld [vmem:[%s2758_s9 + $0xa0] sm:$0xff] }
 0x19e   : > { %1436 = vrot.lane.b32.xlu0 %v3872_v63, %s2654_s12  ;;  %2522 = vmatmul.msk.f32.gmra.mxu2 %vm331_vm0, %v2616_v3 }
 0x19f   : > { %v3924_v53 = vmax.f32 %v1328_v57, 0.0  ;;  %v3942_v57 = vmax.f32 %v3576_v23, %v3834_v13  ;;  %v2617_v23 = vld [vmem:[%s2758_s9 + $0xa8] sm:$0xff]  ;;  %v3963_v13 = vmax.f32 %v3574_v7, %v1031_v47  ;;  %v2618_v47 = vld [vmem:[%s2758_s9 + $0xb0] sm:$0xff] }
 0x1a0   : > { %v1029_v48 = vpop.permute.xlu0 %1028  ;;  %1438 = vrot.lane.b32.xlu1 %v3900_v0, %s2654_s12  ;;  %1056 = vrot.lane.b32.xlu2 %v3920_v52, %s2655_s29 }
 0x1a1   : > { %5746 = vst [vmem:[#allocation29_spill] sm:$0xff] %v3924_v53  ;;  %v3945_v0 = vmax.f32 %v3595_v27, %v1029_v48  ;;  %v610_v27 = vadd.f32 %v3130_v45, %v3546_v5 }
 0x1a2   : > { %1824 = vmatmul.f32.gmra.mxu0 %v3924_v53  ;;  %v3931_v62 = vpop.permute.xlu2 %1068  ;;  %5747 = vst [vmem:[#allocation30_spill] sm:$0xff] %v3942_v57 }
 0x1a4   : > { %v1330_v50 = vpop.f32.mrf.mxu3 }
 0x1a5   : > { %v1331_v38 = vadd.f32 %v1330_v50, %v607_v8  ;;  %v3967_v8 = vmax.f32 %v3598_v21, %v3859_v20  ;;  %v5750_v21 = vld [vmem:[#allocation2_spill] sm:$0xff] }
 0x1a6   : > { %1156 = vrot.lane.b32.xlu0 %v3938_v32, %s2656_s30  ;;  %2523 = vmatmul.msk.f32.gmra.mxu2 %vm331_vm0, %v2617_v23  ;;  %v613_v20 = vadd.f32 %v5750_v21, %v3546_v5  ;;  %v3984_v23 = vpop.f32.mrf.mxu2 }
 0x1a7   : > { %v3949_v63 = vmax.f32 %v1331_v38, 0.0  ;;  %5751 = vst [vmem:[#allocation2_spill] sm:$0xff] %v3984_v23 }
 0x1a8   : > { %v1413_v3 = vpop.permute.xlu0 %1412  ;;  %1124 = vrot.lane.b32.xlu2 %v3945_v0, %s2656_s30  ;;  %1506 = vrot.lane.b32.xlu1 %v3942_v57, %s2655_s29 }
 0x1a9   : > { %5748 = vst [vmem:[#allocation31_spill] sm:$0xff] %v3949_v63  ;;  %v3991_v57 = vmax.f32 %v3600_v24, %v1413_v3  ;;  %v5754_v24 = vld [vmem:[#allocation3_spill] sm:$0xff] }
 0x1aa   : > { %1827 = vmatmul.f32.gmra.mxu0 %v3949_v63  ;;  %v1415_v35 = vpop.permute.xlu1 %1414  ;;  %v3956_v16 = vpop.permute.xlu2 %1038  ;;  %v616_v3 = vadd.f32 %v5754_v24, %v3546_v5 }
 0x1ab   : > { %5752 = vst [vmem:[#allocation33_spill] sm:$0xff] %v3991_v57 }
 0x1ac   : > { %v1333_v25 = vpop.f32.mrf.mxu3 }
 0x1ad   : > { %v1334_v48 = vadd.f32 %v1333_v25, %v610_v27 }
 0x1ae   : > { %1126 = vrot.lane.b32.xlu0 %v3963_v13, %s2656_s30  ;;  %2524 = vmatmul.msk.f32.gmra.mxu2 %vm331_vm0, %v2618_v47 }
 0x1af   : > { %v3971_v50 = vmax.f32 %v1334_v48, 0.0  ;;  %v3988_v48 = vmax.f32 %v3616_v28, %v3887_v26  ;;  %v2619_v26 = vld [vmem:[%s2758_s9 + $0xb8] sm:$0xff] }
 0x1b0   : > { %v1065_v38 = vpop.permute.xlu0 %1064  ;;  %1440 = vrot.lane.b32.xlu2 %v3924_v53, %s2654_s12  ;;  %1158 = vrot.lane.b32.xlu1 %v3967_v8, %s2656_s30 }
 0x1b1   : > { %5749 = vst [vmem:[#allocation32_spill] sm:$0xff] %v3971_v50 }
 0x1b2   : > { %1830 = vmatmul.f32.gmra.mxu0 %v3971_v50  ;;  %v1067_v45 = vpop.permute.xlu1 %1066  ;;  %v3978_v7 = vpop.permute.xlu2 %1422 }
 0x1b3   : > { %v4036_v24 = vmax.f32 %v3639_v36, %v1067_v45 }
 0x1b4   : > { %v1336_v27 = vpop.f32.mrf.mxu3 }
 0x1b5   : > { %v1337_v25 = vadd.f32 %v1336_v27, %v613_v20  ;;  %v4009_v20 = vmax.f32 %v3618_v29, %v1415_v35  ;;  %v2620_v35 = vld [vmem:[%s2758_s9 + $0xc0] sm:$0xff] }
 0x1b6   : > { %1442 = vrot.lane.b32.xlu0 %v3949_v63, %s2654_s12  ;;  %2525 = vmatmul.msk.f32.gmra.mxu2 %vm331_vm0, %v2619_v26  ;;  %v1780_v63 = vpop.f32.mrf.mxu0 }
 0x1b7   : > { %v3995_v53 = vmax.f32 %v1337_v25, 0.0  ;;  %5755 = vst [vmem:[#allocation3_spill] sm:$0xff] %v4009_v20  ;;  %v4011_v25 = vpop.f32.mrf.mxu2 }
 0x1b8   : > { %v1035_v47 = vpop.permute.xlu0 %1034  ;;  %1508 = vrot.lane.b32.xlu2 %v3991_v57, %s2655_s29  ;;  %1128 = vrot.lane.b32.xlu1 %v3988_v48, %s2656_s30  ;;  %5756 = vst [vmem:[#allocation35_spill] sm:$0xff] %v4011_v25  ;;  %v4014_v57 = vmax.f32 %v3634_v49, %v1065_v38  ;;  %v5758_v38 = vld [vmem:[#allocation4_spill] sm:$0xff]  ;;  %v4040_v25 = vmax.f32 %v3641_v51, %v3915_v33  ;;  %v5763_v33 = vld [vmem:[#allocation5_spill] sm:$0xff] }
 0x1b9   : > { %5753 = vst [vmem:[#allocation34_spill] sm:$0xff] %v3995_v53  ;;  %v622_v45 = vadd.f32 %v5763_v33, %v3546_v5 }
 0x1ba   : > { %1833 = vmatmul.f32.gmra.mxu0 %v3995_v53  ;;  %v1037_v21 = vpop.permute.xlu1 %1036  ;;  %v4002_v28 = vpop.permute.xlu2 %1074  ;;  %5759 = vst [vmem:[#allocation4_spill] sm:$0xff] %v4040_v25 }
 0x1bc   : > { %v1339_v27 = vpop.f32.mrf.mxu3 }
 0x1bd   : > { %v1340_v23 = vadd.f32 %v1339_v27, %v616_v3 }
 0x1be   : > { %1510 = vrot.lane.b32.xlu0 %v4009_v20, %s2655_s29  ;;  %2526 = vmatmul.msk.f32.gmra.mxu2 %vm331_vm0, %v2620_v35  ;;  %v4043_v20 = vadd.f32 %v3697_v1, %v1780_v63  ;;  %v1783_v36 = vpop.f32.mrf.mxu0  ;;  %v2621_v63 = vld [vmem:[%s2758_s9 + $0xc8] sm:$0xff] }
 0x1bf   : > { %v4018_v52 = vmax.f32 %v1340_v23, 0.0  ;;  %v619_v23 = vadd.f32 %v5758_v38, %v3546_v5  ;;  %v4047_v35 = vpop.f32.mrf.mxu2 }
 0x1c0   : > { %v4020_v26 = vpop.permute.xlu0 %1418  ;;  %1160 = vrot.lane.b32.xlu2 %v4014_v57, %s2656_s30  ;;  %1444 = vrot.lane.b32.xlu1 %v3971_v50, %s2654_s12  ;;  %5760 = vst [vmem:[#allocation37_spill] sm:$0xff] %v4043_v20 }
 0x1c1   : > { %5757 = vst [vmem:[#allocation36_spill] sm:$0xff] %v4018_v52 }
 0x1c2   : > { %1836 = vmatmul.f32.gmra.mxu0 %v4018_v52  ;;  %v4027_v29 = vpop.permute.xlu1 %1420  ;;  %v4029_v49 = vpop.permute.xlu2 %1044  ;;  %5761 = vst [vmem:[#allocation38_spill] sm:$0xff] %v4047_v35  ;;  %v4071_v35 = vmax.f32 %v3663_v2, %v3931_v62  ;;  %v2622_v62 = vld [vmem:[%s2758_s9 + $0xd0] sm:$0xff] }
 0x1c4   : > { %v1342_v3 = vpop.f32.mrf.mxu3 }
 0x1c5   : > { %v1343_v27 = vadd.f32 %v1342_v3, %v619_v23  ;;  %v4067_v23 = vadd.f32 %v3723_v19, %v1783_v36 }
 0x1c6   : > { %1162 = vrot.lane.b32.xlu0 %v4036_v24, %s2656_s30  ;;  %2527 = vmatmul.msk.f32.gmra.mxu2 %vm331_vm0, %v2621_v63  ;;  %v1786_v33 = vpop.f32.mrf.mxu0 }
 0x1c7   : > { %v4049_v50 = vmax.f32 %v1343_v27, 0.0  ;;  %5764 = vst [vmem:[#allocation5_spill] sm:$0xff] %v4067_v23  ;;  %v4086_v19 = vpop.f32.mrf.mxu2 }
 0x1c8   : > { %v4051_v38 = vpop.permute.xlu0 %1070  ;;  %1512 = vrot.lane.b32.xlu1 %v4040_v25, %s2655_s29  ;;  %1989 = vrot.lane.b32.xlu2 %v4043_v20, %s2654_s12  ;;  %v4074_v25 = vmax.f32 %v3657_v15, %v1035_v47  ;;  %5765 = vst [vmem:[#allocation40_spill] sm:$0xff] %v4086_v19  ;;  %v5766_v47 = vld [vmem:[#allocation6_spill] sm:$0xff]  ;;  %v4101_v19 = vadd.f32 %v3749_v39, %v1786_v33  ;;  %v2623_v39 = vld [vmem:[%s2758_s9 + $0xd8] sm:$0xff] }
 0x1c9   : > { %5762 = vst [vmem:[#allocation39_spill] sm:$0xff] %v4049_v50  ;;  %v625_v36 = vadd.f32 %v5766_v47, %v3546_v5 }
 0x1ca   : > { %1839 = vmatmul.f32.gmra.mxu0 %v4049_v50  ;;  %v4058_v51 = vpop.permute.xlu1 %1072  ;;  %v4060_v1 = vpop.permute.xlu2 %1428  ;;  %5768 = vst [vmem:[#allocation41_spill] sm:$0xff] %v4101_v19 }
 0x1cc   : > { %v1345_v3 = vpop.f32.mrf.mxu3 }
 0x1cd   : > { %v1346_v27 = vadd.f32 %v1345_v3, %v622_v45  ;;  %v4098_v45 = vmax.f32 %v3660_v17, %v1037_v21 }
 0x1ce   : > { %1991 = vrot.lane.b32.xlu0 %v4067_v23, %s2654_s12  ;;  %2528 = vmatmul.msk.f32.gmra.mxu2 %vm331_vm0, %v2622_v62  ;;  %v5770_v62 = vld [vmem:[#allocation7_spill] sm:$0xff] }
 0x1cf   : > { %v4078_v63 = vmax.f32 %v1346_v27, 0.0  ;;  %5767 = vst [vmem:[#allocation6_spill] sm:$0xff] %v4098_v45  ;;  %v628_v47 = vadd.f32 %v5770_v62, %v3546_v5 }
 0x1d0   : > { %v4080_v20 = vpop.permute.xlu0 %1040  ;;  %1164 = vrot.lane.b32.xlu1 %v4071_v35, %s2656_s30  ;;  %1130 = vrot.lane.b32.xlu2 %v4074_v25, %s2656_s30 }
 0x1d2   : > { %1842 = vmatmul.f32.gmra.mxu0 %v4078_v63  ;;  %v4089_v2 = vpop.permute.xlu1 %1042  ;;  %v4091_v15 = vpop.permute.xlu2 %1080 }
 0x1d4   : > { %v1348_v3 = vpop.f32.mrf.mxu3 }
 0x1d5   : > { %v1349_v27 = vadd.f32 %v1348_v3, %v625_v36  ;;  %v4122_v36 = vpop.f32.mrf.mxu2 }
 0x1d6   : > { %1132 = vrot.lane.b32.xlu0 %v4098_v45, %s2656_s30  ;;  %2529 = vmatmul.msk.f32.gmra.mxu2 %vm331_vm0, %v2623_v39  ;;  %5771 = vst [vmem:[#allocation7_spill] sm:$0xff] %v4122_v36 }
 0x1d7   : > { %v4105_v23 = vmax.f32 %v1349_v27, 0.0  ;;  %v4126_v27 = vmax.f32 %v3683_v40, %v3956_v16 }
 0x1d8   : > { %v4107_v43 = vpop.permute.xlu0 %1424  ;;  %1446 = vrot.lane.b32.xlu2 %v3995_v53, %s2654_s12  ;;  %1993 = vrot.lane.b32.xlu1 %v4101_v19, %s2654_s12  ;;  %v4130_v19 = vmax.f32 %v3665_v6, %v4020_v26  ;;  %v2624_v6 = vld [vmem:[%s2758_s9 + $0xe0] sm:$0xff]  ;;  %v5775_v26 = vld [vmem:[#allocation8_spill] sm:$0xff] }
 0x1d9   : > { %5769 = vst [vmem:[#allocation42_spill] sm:$0xff] %v4105_v23  ;;  %v631_v62 = vadd.f32 %v5775_v26, %v3546_v5  ;;  %v5779_v26 = vld [vmem:[#allocation16_spill] sm:$0xff] }
 0x1da   : > { %1845 = vmatmul.f32.gmra.mxu0 %v4105_v23  ;;  %v4114_v17 = vpop.permute.xlu1 %1426  ;;  %v4116_v21 = vpop.permute.xlu2 %1050  ;;  %5772 = vst [vmem:[#allocation43_spill] sm:$0xff] %v4126_v27 }
 0x1db   : > { %5773 = vst [vmem:[#allocation44_spill] sm:$0xff] %v4130_v19 }
 0x1dc   : > { %v1351_v33 = vpop.f32.mrf.mxu3 }
 0x1dd   : > { %v1352_v3 = vadd.f32 %v1351_v33, %v628_v47  ;;  %v4153_v47 = vmax.f32 %v3685_v46, %v4027_v29  ;;  %v4155_v36 = vpop.f32.mrf.mxu2 }
 0x1de   : > { %1448 = vrot.lane.b32.xlu0 %v4018_v52, %s2654_s12  ;;  %2530 = vmatmul.msk.f32.gmra.mxu2 %vm331_vm0, %v2624_v6  ;;  %5777 = vst [vmem:[#allocation46_spill] sm:$0xff] %v4155_v36  ;;  %v4159_v52 = vmax.f32 %v3703_v44, %v4051_v38  ;;  %v2625_v44 = vld [vmem:[%s2758_s9 + $0xe8] sm:$0xff]  ;;  %v5778_v38 = vld [vmem:[#allocation9_spill] sm:$0xff] }
 0x1df   : > { %v4134_v53 = vmax.f32 %v1352_v3, 0.0  ;;  %5776 = vst [vmem:[#allocation8_spill] sm:$0xff] %v4153_v47  ;;  %v1789_v3 = vpop.f32.mrf.mxu0 }
 0x1e0   : > { %v4136_v39 = vpop.permute.xlu0 %1076  ;;  %1514 = vrot.lane.b32.xlu2 %v4130_v19, %s2655_s29  ;;  %1134 = vrot.lane.b32.xlu1 %v4126_v27, %s2656_s30 }
 0x1e1   : > { %5774 = vst [vmem:[#allocation45_spill] sm:$0xff] %v4134_v53 }
 0x1e2   : > { %1848 = vmatmul.f32.gmra.mxu0 %v4134_v53  ;;  %v4143_v40 = vpop.permute.xlu1 %1078  ;;  %v4145_v16 = vpop.permute.xlu2 %1434 }
 0x1e4   : > { %v1354_v33 = vpop.f32.mrf.mxu3 }
 0x1e5   : > { %v1355_v19 = vadd.f32 %v1354_v33, %v631_v62  ;;  %v4182_v62 = vmax.f32 %v5779_v26, %v4058_v51 }
 0x1e6   : > { %1516 = vrot.lane.b32.xlu0 %v4153_v47, %s2655_s29  ;;  %2531 = vmatmul.msk.f32.gmra.mxu2 %vm331_vm0, %v2625_v44  ;;  %v4186_v47 = vmax.f32 %v3708_v22, %v3978_v7  ;;  %v2626_v7 = vld [vmem:[%s2758_s9 + $0xf0] sm:$0xff] }
 0x1e7   : > { %v4163_v6 = vmax.f32 %v1355_v19, 0.0  ;;  %v634_v19 = vadd.f32 %v5778_v38, %v3546_v5  ;;  %v1792_v44 = vpop.f32.mrf.mxu0  ;;  %v4193_v38 = vpop.f32.mrf.mxu2 }
 0x1e8   : > { %v4165_v27 = vpop.permute.xlu0 %1046  ;;  %1166 = vrot.lane.b32.xlu2 %v4159_v52, %s2656_s30  ;;  %1450 = vrot.lane.b32.xlu1 %v4049_v50, %s2654_s12  ;;  %v4189_v50 = vadd.f32 %v3781_v31, %v1789_v3  ;;  %5781 = vst [vmem:[#allocation16_spill] sm:$0xff] %v4193_v38  ;;  %v4212_v26 = vadd.f32 %v3813_v56, %v1792_v44 }
 0x1ea   : > { %1851 = vmatmul.f32.gmra.mxu0 %v4163_v6  ;;  %v4172_v46 = vpop.permute.xlu1 %1048  ;;  %v4174_v29 = vpop.permute.xlu2 %1086  ;;  %5780 = vst [vmem:[#allocation9_spill] sm:$0xff] %v4189_v50 }
 0x1ec   : > { %v1357_v33 = vpop.f32.mrf.mxu3 }
 0x1ed   : > { %v1358_v36 = vadd.f32 %v1357_v33, %v634_v19 }
 0x1ee   : > { %1168 = vrot.lane.b32.xlu0 %v4182_v62, %s2656_s30  ;;  %2532 = vmatmul.msk.f32.gmra.mxu2 %vm331_vm0, %v2626_v7  ;;  %v4222_v7 = vmax.f32 %v3726_v42, %v4080_v20  ;;  %v2627_v20 = vld [vmem:[%s2758_s9 + $0xf8] sm:$0xff] }
 0x1ef   : > { %v4195_v45 = vmax.f32 %v1358_v36, 0.0  ;;  %v5782_v36 = vld [vmem:[#allocation10_spill] sm:$0xff]  ;;  %v1795_v44 = vpop.f32.mrf.mxu0 }
 0x1f0   : > { %v4197_v51 = vpop.permute.xlu0 %1430  ;;  %1518 = vrot.lane.b32.xlu1 %v4186_v47, %s2655_s29  ;;  %1995 = vrot.lane.b32.xlu2 %v4189_v50, %s2654_s12  ;;  %v637_v3 = vadd.f32 %v5782_v36, %v3546_v5  ;;  %5783 = vst [vmem:[#allocation10_spill] sm:$0xff] %v4212_v26  ;;  %v4218_v50 = vmax.f32 %v3732_v59, %v4002_v28  ;;  %v4234_v59 = vpop.f32.mrf.mxu2 }
 0x1f1   : > { %5784 = vst [vmem:[#allocation47_spill] sm:$0xff] %v4234_v59  ;;  %v4247_v36 = vmax.f32 %v3729_v61, %v4089_v2 }
 0x1f2   : > { %1854 = vmatmul.f32.gmra.mxu0 %v4195_v45  ;;  %v4204_v22 = vpop.permute.xlu1 %1432  ;;  %v1155_v31 = vpop.permute.xlu2 %1154 }
 0x1f3   : > { %v1201_v19 = vmax.f32 %v3898_v12, %v1155_v31 }
 0x1f4   : > { %v1360_v33 = vpop.f32.mrf.mxu3 }
 0x1f5   : > { %1234 = vst.msk [vmem:[%s3065_s10 + $0x88] sm:$0xff] %vm1216_vm2, %v1201_v19  ;;  %v1361_v38 = vadd.f32 %v1360_v33, %v637_v3  ;;  %v4250_v33 = vadd.f32 %v3841_v37, %v1795_v44  ;;  %v5787_v37 = vld [vmem:[#allocation12_spill] sm:$0xff] }
 0x1f6   : > { %1997 = vrot.lane.b32.xlu0 %v4212_v26, %s2654_s12  ;;  %2533 = vmatmul.msk.f32.gmra.mxu2 %vm331_vm0, %v2627_v20  ;;  %v643_v44 = vadd.f32 %v5787_v37, %v3546_v5 }
 0x1f7   : > { %v4226_v12 = vmax.f32 %v1361_v38, 0.0  ;;  %v5785_v38 = vld [vmem:[#allocation11_spill] sm:$0xff]  ;;  %v1798_v20 = vpop.f32.mrf.mxu0 }
 0x1f8   : > { %v4228_v56 = vpop.permute.xlu0 %1082  ;;  %1170 = vrot.lane.b32.xlu1 %v4218_v50, %s2656_s30  ;;  %1136 = vrot.lane.b32.xlu2 %v4222_v7, %s2656_s30  ;;  %v640_v31 = vadd.f32 %v5785_v38, %v3546_v5  ;;  %5786 = vst [vmem:[#allocation11_spill] sm:$0xff] %v4250_v33 }
 0x1fa   : > { %1857 = vmatmul.f32.gmra.mxu0 %v4226_v12  ;;  %v4237_v42 = vpop.permute.xlu1 %1084  ;;  %v4239_v28 = vpop.permute.xlu2 %1056 }
 0x1fc   : > { %v1363_v3 = vpop.f32.mrf.mxu3 }
 0x1fd   : > { %v1364_v19 = vadd.f32 %v1363_v3, %v640_v31 }
 0x1fe   : > { %1138 = vrot.lane.b32.xlu0 %v4247_v36, %s2656_s30 }
 0x1ff   : > { %v4254_v59 = vmax.f32 %v1364_v19, 0.0  ;;  %v4272_v19 = vmax.f32 %v3752_v9, %v4029_v49 }
 0x200   : > { %v4256_v26 = vpop.permute.xlu0 %1052  ;;  %1452 = vrot.lane.b32.xlu2 %v4078_v63, %s2654_s12  ;;  %1999 = vrot.lane.b32.xlu1 %v4250_v33, %s2654_s12  ;;  %v4276_v33 = vmax.f32 %v3734_v58, %v4107_v43  ;;  %v5789_v43 = vld [vmem:[#allocation13_spill] sm:$0xff] }
 0x202   : > { %1860 = vmatmul.f32.gmra.mxu0 %v4254_v59  ;;  %v4263_v61 = vpop.permute.xlu1 %1054  ;;  %v1125_v2 = vpop.permute.xlu2 %1124  ;;  %5788 = vst [vmem:[#allocation12_spill] sm:$0xff] %v4276_v33 }
 0x203   : > { %v1186_v38 = vmax.f32 %v3945_v0, %v1125_v2  ;;  %v646_v2 = vadd.f32 %v5789_v43, %v3546_v5 }
 0x204   : > { %v1366_v31 = vpop.f32.mrf.mxu3 }
 0x205   : > { %1219 = vst.msk [vmem:[%s3065_s10 + $0x10] sm:$0xff] %vm1216_vm2, %v1186_v38  ;;  %v1367_v3 = vadd.f32 %v1366_v31, %v643_v44  ;;  %v5790_v38 = vld [vmem:[#allocation17_spill] sm:$0xff] }
 0x206   : > { %1454 = vrot.lane.b32.xlu0 %v4105_v23, %s2654_s12  ;;  %v4297_v31 = vmax.f32 %v5790_v38, %v4114_v17 }
 0x207   : > { %v4280_v37 = vmax.f32 %v1367_v3, 0.0 }
 0x208   : > { %v1121_v0 = vpop.permute.xlu0 %1120  ;;  %1520 = vrot.lane.b32.xlu2 %v4276_v33, %s2655_s29  ;;  %1140 = vrot.lane.b32.xlu1 %v4272_v19, %s2656_s30  ;;  %5791 = vst [vmem:[#allocation13_spill] sm:$0xff] %v4297_v31  ;;  %v1801_v33 = vpop.f32.mrf.mxu0 }
 0x209   : > { %v1184_v9 = vmax.f32 %v3892_v55, %v1121_v0  ;;  %v5792_v0 = vld [vmem:[#allocation18_spill] sm:$0xff] }
 0x20a   : > { %1863 = vmatmul.f32.gmra.mxu0 %v4280_v37  ;;  %v1123_v49 = vpop.permute.xlu1 %1122  ;;  %v4288_v58 = vpop.permute.xlu2 %1440  ;;  %v4303_v23 = vmax.f32 %v5792_v0, %v4136_v39  ;;  %v5793_v39 = vld [vmem:[#allocation14_spill] sm:$0xff]  ;;  %v4331_v0 = vadd.f32 %v3876_v41, %v1798_v20 }
 0x20b   : > { %1217 = vst.msk [vmem:[%s3065_s10] sm:$0xff] %vm1216_vm2, %v1184_v9  ;;  %v1185_v44 = vmax.f32 %v3895_v14, %v1123_v49  ;;  %v649_v49 = vadd.f32 %v5793_v39, %v3546_v5 }
 0x20c   : > { %v1369_v3 = vpop.f32.mrf.mxu3  ;;  %5795 = vst [vmem:[#allocation17_spill] sm:$0xff] %v4331_v0 }
 0x20d   : > { %1218 = vst.msk [vmem:[%s3065_s10 + $0x8] sm:$0xff] %vm1216_vm2, %v1185_v44  ;;  %v1370_v55 = vadd.f32 %v1369_v3, %v646_v2  ;;  %v5794_v2 = vld [vmem:[#allocation19_spill] sm:$0xff] }
 0x20e   : > { %1522 = vrot.lane.b32.xlu0 %v4297_v31, %s2655_s29  ;;  %v4324_v44 = vmax.f32 %v5794_v2, %v4143_v40  ;;  %v1917_v40 = vpop.f32.mrf.mxu1 }
 0x20f   : > { %v4307_v43 = vmax.f32 %v1370_v55, 0.0  ;;  %v4328_v55 = vmax.f32 %v3775_v34, %v4060_v1  ;;  %v4341_v34 = vpop.f32.mrf.mxu2 }
 0x210   : > { %v4309_v9 = vpop.permute.xlu0 %1436  ;;  %1172 = vrot.lane.b32.xlu2 %v4303_v23, %s2656_s30  ;;  %1456 = vrot.lane.b32.xlu1 %v4134_v53, %s2654_s12  ;;  %v1804_v31 = vpop.f32.mrf.mxu0  ;;  %5796 = vst [vmem:[#allocation18_spill] sm:$0xff] %v4341_v34  ;;  %v4363_v34 = vmax.f32 %v3793_v54, %v4165_v27 }
 0x212   : > { %1866 = vmatmul.f32.gmra.mxu0 %v4307_v43  ;;  %v4316_v14 = vpop.permute.xlu1 %1438  ;;  %v4318_v17 = vpop.permute.xlu2 %1508 }
 0x214   : > { %v1372_v38 = vpop.f32.mrf.mxu3 }
 0x215   : > { %v1373_v3 = vadd.f32 %v1372_v38, %v649_v49  ;;  %v5797_v49 = vld [vmem:[#allocation15_spill] sm:$0xff] }
 0x216   : > { %1174 = vrot.lane.b32.xlu0 %v4324_v44, %s2656_s30  ;;  %v652_v2 = vadd.f32 %v5797_v49, %v3546_v5  ;;  %v1920_v27 = vpop.f32.mrf.mxu1 }
 0x217   : > { %v4335_v39 = vmax.f32 %v1373_v3, 0.0  ;;  %v4353_v3 = vadd.f32 %v3910_v30, %v1801_v33  ;;  %v4377_v33 = vpop.f32.mrf.mxu2 }
 0x218   : > { %v1157_v53 = vpop.permute.xlu0 %1156  ;;  %1524 = vrot.lane.b32.xlu1 %v4328_v55, %s2655_s29  ;;  %2001 = vrot.lane.b32.xlu2 %v4331_v0, %s2654_s12  ;;  %5799 = vst [vmem:[#allocation19_spill] sm:$0xff] %v4377_v33 }
 0x219   : > { %v1202_v41 = vmax.f32 %v3938_v32, %v1157_v53  ;;  %5798 = vst [vmem:[#allocation14_spill] sm:$0xff] %v4353_v3  ;;  %v4359_v32 = vmax.f32 %v3799_v60, %v4091_v15 }
 0x21a   : > { %1869 = vmatmul.f32.gmra.mxu0 %v4335_v39  ;;  %v4345_v1 = vpop.permute.xlu1 %1506  ;;  %v1161_v20 = vpop.permute.xlu2 %1160 }
 0x21b   : > { %1235 = vst.msk [vmem:[%s3065_s10 + $0x90] sm:$0xff] %vm1216_vm2, %v1202_v41  ;;  %v1204_v38 = vmax.f32 %v4014_v57, %v1161_v20  ;;  %v1807_v57 = vpop.f32.mrf.mxu0  ;;  %v4384_v41 = vmax.f32 %v3796_v11, %v4172_v46  ;;  %v4388_v20 = vadd.f32 %v1917_v40, %v1804_v31 }
 0x21c   : > { %v1375_v0 = vpop.f32.mrf.mxu3  ;;  %v4457_v33 = vadd.f32 %v1920_v27, %v1807_v57 }
 0x21d   : > { %1237 = vst.msk [vmem:[%s3065_s10 + $0xa0] sm:$0xff] %vm1216_vm2, %v1204_v38  ;;  %v1376_v53 = vadd.f32 %v1375_v0, %v652_v2  ;;  %v4406_v38 = vmax.f32 %v3819_v18, %v4116_v21  ;;  %v5803_v21 = vld [vmem:[#allocation21_spill] sm:$0xff] }
 0x21e   : > { %2003 = vrot.lane.b32.xlu0 %v4353_v3, %s2654_s12  ;;  %5800 = vst [vmem:[#allocation15_spill] sm:$0xff] %v4388_v20  ;;  %v1923_v31 = vpop.f32.mrf.mxu1 }
 0x21f   : > { %v4367_v5 = vmax.f32 %v1376_v53, 0.0  ;;  %v4400_v40 = vpop.f32.mrf.mxu2  ;;  %v5802_v53 = vld [vmem:[#allocation20_spill] sm:$0xff]  ;;  %5808 = vst [vmem:[#allocation21_spill] sm:$0xff] %v4457_v33 }
 0x220   : > { %v1127_v30 = vpop.permute.xlu0 %1126  ;;  %1176 = vrot.lane.b32.xlu1 %v4359_v32, %s2656_s30  ;;  %1142 = vrot.lane.b32.xlu2 %v4363_v34, %s2656_s30  ;;  %5801 = vst [vmem:[#allocation48_spill] sm:$0xff] %v4400_v40 }
 0x221   : > { %1872 = vmatmul.f32.vlgmr.msra.gmra.mxu2 %v4367_v5  ;;  %v1187_v60 = vmax.f32 %v3963_v13, %v1127_v30  ;;  %v4410_v30 = vmax.f32 %v5802_v53, %v4197_v51  ;;  %v4428_v51 = vmax.f32 %v5803_v21, %v4204_v22 }
 0x222   : > { %v1159_v54 = vpop.permute.xlu1 %1158  ;;  %v4375_v15 = vpop.permute.xlu2 %1989 }
 0x223   : > { %1220 = vst.msk [vmem:[%s3065_s10 + $0x18] sm:$0xff] %vm1216_vm2, %v1187_v60  ;;  %v1203_v0 = vmax.f32 %v3967_v8, %v1159_v54  ;;  %v1810_v11 = vpop.f32.mrf.mxu0  ;;  %v5804_v54 = vld [vmem:[#allocation22_spill] sm:$0xff] }
 0x225   : > { %1236 = vst.msk [vmem:[%s3065_s10 + $0x98] sm:$0xff] %vm1216_vm2, %v1203_v0  ;;  %v4432_v0 = vmax.f32 %v5804_v54, %v4228_v56  ;;  %v5806_v56 = vld [vmem:[#allocation23_spill] sm:$0xff]  ;;  %v5807_v54 = vld [vmem:[#allocation24_spill] sm:$0xff] }
 0x226   : > { %1144 = vrot.lane.b32.xlu0 %v4384_v41, %s2656_s30  ;;  %v4451_v21 = vmax.f32 %v5806_v56, %v4237_v42  ;;  %v4455_v40 = vmax.f32 %v5807_v54, %v4145_v16  ;;  %v4471_v54 = vadd.f32 %v1923_v31, %v1810_v11  ;;  %v5811_v11 = vld [vmem:[#allocation6_spill] sm:$0xff] }
 0x228   : > { %v4392_v13 = vpop.permute.xlu0 %1442  ;;  %1458 = vrot.lane.b32.xlu2 %v4163_v6, %s2654_s12  ;;  %2005 = vrot.lane.b32.xlu1 %v4388_v20, %s2654_s12  ;;  %5810 = vst [vmem:[#allocation23_spill] sm:$0xff] %v4471_v54  ;;  %v5820_v20 = vld [vmem:[#allocation26_spill] sm:$0xff] }
 0x229   : > { %v4526_v3 = vmax.f32 %v5820_v20, %v4309_v9  ;;  %v5821_v9 = vld [vmem:[#allocation27_spill] sm:$0xff] }
 0x22a   : > { %v1129_v8 = vpop.permute.xlu1 %1128  ;;  %v1131_v49 = vpop.permute.xlu2 %1130  ;;  %v4544_v20 = vmax.f32 %v5821_v9, %v4316_v14 }
 0x22b   : > { %v1188_v46 = vmax.f32 %v3988_v48, %v1129_v8  ;;  %v1189_v2 = vmax.f32 %v4074_v25, %v1131_v49  ;;  %v1813_v60 = vpop.f32.mrf.mxu0  ;;  %v1926_v8 = vpop.f32.mrf.mxu1 }
 0x22c   : > { %v4436_v49 = vpop.f32.mrf.mxu2 }
 0x22d   : > { %1221 = vst.msk [vmem:[%s3065_s10 + $0x20] sm:$0xff] %vm1216_vm2, %v1188_v46 }
 0x22e   : > { %1222 = vst.msk [vmem:[%s3065_s10 + $0x28] sm:$0xff] %vm1216_vm2, %v1189_v2  ;;  %1460 = vrot.lane.b32.xlu0 %v4195_v45, %s2654_s12 }
 0x22f   : > { %5805 = vst [vmem:[#allocation20_spill] sm:$0xff] %v4436_v49  ;;  %v4477_v49 = vmax.f32 %v3870_v10, %v4174_v29 }
 0x230   : > { %v4416_v48 = vpop.permute.xlu0 %1510  ;;  %1526 = vrot.lane.b32.xlu2 %v4410_v30, %s2655_s29  ;;  %1146 = vrot.lane.b32.xlu1 %v4406_v38, %s2656_s30 }
 0x232   : > { %v4422_v18 = vpop.permute.xlu1 %1444  ;;  %v4424_v25 = vpop.permute.xlu2 %1446 }
 0x233   : > { %v1929_v42 = vpop.f32.mrf.mxu1 }
 0x236   : > { %1528 = vrot.lane.b32.xlu0 %v4428_v51, %s2655_s29 }
 0x238   : > { %v1163_v46 = vpop.permute.xlu0 %1162  ;;  %1178 = vrot.lane.b32.xlu2 %v4432_v0, %s2656_s30  ;;  %1462 = vrot.lane.b32.xlu1 %v4226_v12, %s2654_s12 }
 0x239   : > { %v1205_v22 = vmax.f32 %v4036_v24, %v1163_v46  ;;  %v1816_v24 = vpop.f32.mrf.mxu0 }
 0x23a   : > { %v4443_v2 = vpop.permute.xlu1 %1512  ;;  %v4445_v53 = vpop.permute.xlu2 %1514 }
 0x23b   : > { %1238 = vst.msk [vmem:[%s3065_s10 + $0xa8] sm:$0xff] %vm1216_vm2, %v1205_v22  ;;  %v4467_v22 = vpop.f32.mrf.mxu2 }
 0x23c   : > { %5809 = vst [vmem:[#allocation22_spill] sm:$0xff] %v4467_v22  ;;  %v5819_v22 = vld [vmem:[#allocation28_spill] sm:$0xff] }
 0x23e   : > { %1180 = vrot.lane.b32.xlu0 %v4451_v21, %s2656_s30 }
 0x240   : > { %v4461_v46 = vpop.permute.xlu0 %1991  ;;  %1530 = vrot.lane.b32.xlu1 %v4455_v40, %s2655_s29  ;;  %2007 = vrot.lane.b32.xlu2 %v4457_v33, %s2654_s12  ;;  %v4481_v33 = vmax.f32 %v3864_v4, %v4256_v26  ;;  %v1932_v4 = vpop.f32.mrf.mxu1 }
 0x242   : > { %v1165_v16 = vpop.permute.xlu1 %1164  ;;  %v1167_v56 = vpop.permute.xlu2 %1166 }
 0x243   : > { %v1206_v57 = vmax.f32 %v4071_v35, %v1165_v16  ;;  %v1207_v27 = vmax.f32 %v4159_v52, %v1167_v56  ;;  %v1819_v52 = vpop.f32.mrf.mxu0  ;;  %v4496_v26 = vpop.f32.mrf.mxu2  ;;  %v5815_v16 = vld [vmem:[#allocation25_spill] sm:$0xff] }
 0x244   : > { %5814 = vst [vmem:[#allocation49_spill] sm:$0xff] %v4496_v26  ;;  %v4502_v56 = vmax.f32 %v5815_v16, %v4263_v61  ;;  %v5817_v26 = vld [vmem:[#allocation43_spill] sm:$0xff] }
 0x245   : > { %1239 = vst.msk [vmem:[%s3065_s10 + $0xb0] sm:$0xff] %vm1216_vm2, %v1206_v57  ;;  %v4504_v57 = vadd.f32 %v1926_v8, %v1813_v60 }
 0x246   : > { %1240 = vst.msk [vmem:[%s3065_s10 + $0xb8] sm:$0xff] %vm1216_vm2, %v1207_v27  ;;  %2009 = vrot.lane.b32.xlu0 %v4471_v54, %s2654_s12  ;;  %v4522_v54 = vmax.f32 %v5819_v22, %v4239_v28 }
 0x247   : > { %5816 = vst [vmem:[#allocation25_spill] sm:$0xff] %v4504_v57 }
 0x248   : > { %v1133_v35 = vpop.permute.xlu0 %1132  ;;  %1182 = vrot.lane.b32.xlu1 %v4477_v49, %s2656_s30  ;;  %1148 = vrot.lane.b32.xlu2 %v4481_v33, %s2656_s30  ;;  %v1935_v60 = vpop.f32.mrf.mxu1 }
 0x249   : > { %v1190_v10 = vmax.f32 %v5811_v11, %v1133_v35 }
 0x24a   : > { %v4492_v29 = vpop.permute.xlu1 %1993  ;;  %v4494_v31 = vpop.permute.xlu2 %1995 }
 0x24b   : > { %5812 = vst [vmem:[#allocation24_spill] sm:$0xff] %v4492_v29  ;;  %v4516_v8 = vpop.f32.mrf.mxu2 }
 0x24c   : > { %5813 = vst [vmem:[#allocation6_spill] sm:$0xff] %v4494_v31  ;;  %v5830_v31 = vld [vmem:[#allocation31_spill] sm:$0xff] }
 0x24d   : > { %1223 = vst.msk [vmem:[%s3065_s10 + $0x30] sm:$0xff] %vm1216_vm2, %v1190_v10  ;;  %v1822_v10 = vpop.f32.mrf.mxu0  ;;  %v4591_v29 = vmax.f32 %v5830_v31, %v4392_v13 }
 0x24e   : > { %1150 = vrot.lane.b32.xlu0 %v4502_v56, %s2656_s30  ;;  %5818 = vst [vmem:[#allocation43_spill] sm:$0xff] %v4516_v8 }
 0x250   : > { %v4508_v27 = vpop.permute.xlu0 %1448  ;;  %1464 = vrot.lane.b32.xlu2 %v4254_v59, %s2654_s12  ;;  %2011 = vrot.lane.b32.xlu1 %v4504_v57, %s2654_s12 }
 0x252   : > { %v1135_v35 = vpop.permute.xlu1 %1134  ;;  %v1137_v11 = vpop.permute.xlu2 %1136 }
 0x253   : > { %v1191_v61 = vmax.f32 %v5817_v26, %v1135_v35  ;;  %v1192_v16 = vmax.f32 %v4222_v7, %v1137_v11  ;;  %v4546_v35 = vadd.f32 %v1929_v42, %v1816_v24  ;;  %v1938_v11 = vpop.f32.mrf.mxu1  ;;  %v4563_v24 = vadd.f32 %v1932_v4, %v1819_v52  ;;  %v5825_v42 = vld [vmem:[#allocation29_spill] sm:$0xff] }
 0x255   : > { %1224 = vst.msk [vmem:[%s3065_s10 + $0x38] sm:$0xff] %vm1216_vm2, %v1191_v61  ;;  %v1825_v22 = vpop.f32.mrf.mxu0  ;;  %v4550_v61 = vpop.f32.mrf.mxu2 }
 0x256   : > { %1225 = vst.msk [vmem:[%s3065_s10 + $0x40] sm:$0xff] %vm1216_vm2, %v1192_v16  ;;  %1466 = vrot.lane.b32.xlu0 %v4280_v37, %s2654_s12 }
 0x257   : > { %5822 = vst [vmem:[#allocation28_spill] sm:$0xff] %v4546_v35 }
 0x258   : > { %v4532_v26 = vpop.permute.xlu0 %1516  ;;  %1532 = vrot.lane.b32.xlu2 %v4526_v3, %s2655_s29  ;;  %1152 = vrot.lane.b32.xlu1 %v4522_v54, %s2656_s30  ;;  %5823 = vst [vmem:[#allocation26_spill] sm:$0xff] %v4550_v61  ;;  %v4567_v61 = vmax.f32 %v5825_v42, %v4288_v58  ;;  %v5828_v42 = vld [vmem:[#allocation30_spill] sm:$0xff] }
 0x259   : > { %5824 = vst [vmem:[#allocation27_spill] sm:$0xff] %v4563_v24 }
 0x25a   : > { %v4538_v7 = vpop.permute.xlu1 %1450  ;;  %v4540_v28 = vpop.permute.xlu2 %1452 }
 0x25d   : > { %v1828_v57 = vpop.f32.mrf.mxu0  ;;  %v4577_v52 = vpop.f32.mrf.mxu2 }
 0x25e   : > { %1534 = vrot.lane.b32.xlu0 %v4544_v20, %s2655_s29  ;;  %5827 = vst [vmem:[#allocation50_spill] sm:$0xff] %v4577_v52 }
 0x260   : > { %v1169_v16 = vpop.permute.xlu0 %1168  ;;  %1468 = vrot.lane.b32.xlu1 %v4307_v43, %s2654_s12  ;;  %2013 = vrot.lane.b32.xlu2 %v4546_v35, %s2654_s12 }
 0x261   : > { %v1208_v8 = vmax.f32 %v4182_v62, %v1169_v16  ;;  %v1941_v62 = vpop.f32.mrf.mxu1 }
 0x262   : > { %v4557_v14 = vpop.permute.xlu1 %1518  ;;  %v4559_v9 = vpop.permute.xlu2 %1520 }
 0x263   : > { %1241 = vst.msk [vmem:[%s3065_s10 + $0xc0] sm:$0xff] %vm1216_vm2, %v1208_v8 }
 0x265   : > { %v4606_v31 = vpop.f32.mrf.mxu2 }
 0x266   : > { %2015 = vrot.lane.b32.xlu0 %v4563_v24, %s2654_s12  ;;  %v4583_v24 = vmax.f32 %v5828_v42, %v4345_v1  ;;  %5832 = vst [vmem:[#allocation51_spill] sm:$0xff] %v4606_v31  ;;  %v5837_v31 = vld [vmem:[#allocation37_spill] sm:$0xff] }
 0x268   : > { %v4571_v35 = vpop.permute.xlu0 %1997  ;;  %1536 = vrot.lane.b32.xlu1 %v4567_v61, %s2655_s29  ;;  %1470 = vrot.lane.b32.xlu2 %v4335_v39, %s2654_s12 }
 0x269   : > { %5826 = vst [vmem:[#allocation29_spill] sm:$0xff] %v4571_v35  ;;  %v4587_v35 = vadd.f32 %v1935_v60, %v1822_v10  ;;  %v1944_v13 = vpop.f32.mrf.mxu1 }
 0x26a   : > { %v1171_v4 = vpop.permute.xlu1 %1170  ;;  %v1173_v8 = vpop.permute.xlu2 %1172 }
 0x26b   : > { %v1209_v58 = vmax.f32 %v4218_v50, %v1171_v4  ;;  %v1210_v16 = vmax.f32 %v4303_v23, %v1173_v8  ;;  %5829 = vst [vmem:[#allocation30_spill] sm:$0xff] %v4587_v35  ;;  %v1831_v23 = vpop.f32.mrf.mxu0  ;;  %v5833_v4 = vld [vmem:[#allocation33_spill] sm:$0xff] }
 0x26c   : > { %v4612_v8 = vmax.f32 %v5833_v4, %v4318_v17 }
 0x26d   : > { %1242 = vst.msk [vmem:[%s3065_s10 + $0xc8] sm:$0xff] %vm1216_vm2, %v1209_v58  ;;  %v4614_v58 = vadd.f32 %v1938_v11, %v1825_v22  ;;  %v5835_v11 = vld [vmem:[#allocation32_spill] sm:$0xff]  ;;  %v4630_v52 = vpop.f32.mrf.mxu2 }
 0x26e   : > { %1243 = vst.msk [vmem:[%s3065_s10 + $0xd0] sm:$0xff] %vm1216_vm2, %v1210_v16  ;;  %1602 = vrot.lane.b32.xlu0 %v4583_v24, %s2656_s30 }
 0x26f   : > { %5834 = vst [vmem:[#allocation33_spill] sm:$0xff] %v4614_v58 }
 0x270   : > { %v1139_v50 = vpop.permute.xlu0 %1138  ;;  %1538 = vrot.lane.b32.xlu2 %v4591_v29, %s2655_s29  ;;  %2017 = vrot.lane.b32.xlu1 %v4587_v35, %s2654_s12  ;;  %5836 = vst [vmem:[#allocation32_spill] sm:$0xff] %v4630_v52  ;;  %v4636_v35 = vmax.f32 %v5837_v31, %v4375_v15  ;;  %v5841_v31 = vld [vmem:[#allocation34_spill] sm:$0xff]  ;;  %v5847_v52 = vld [vmem:[#allocation36_spill] sm:$0xff] }
 0x271   : > { %v1193_v1 = vmax.f32 %v4247_v36, %v1139_v50  ;;  %v1947_v4 = vpop.f32.mrf.mxu1 }
 0x272   : > { %v4602_v10 = vpop.permute.xlu1 %1999  ;;  %v4604_v60 = vpop.permute.xlu2 %2001  ;;  %5838 = vst [vmem:[#allocation37_spill] sm:$0xff] %v4636_v35 }
 0x273   : > { %5831 = vst [vmem:[#allocation31_spill] sm:$0xff] %v4604_v60  ;;  %v1834_v50 = vpop.f32.mrf.mxu0 }
 0x274   : > { %1226 = vst.msk [vmem:[%s3065_s10 + $0x48] sm:$0xff] %vm1216_vm2, %v1193_v1  ;;  %v4628_v1 = vmax.f32 %v5835_v11, %v4422_v18 }
 0x276   : > { %1472 = vrot.lane.b32.xlu0 %v4367_v5, %s2654_s12 }
 0x278   : > { %v4618_v36 = vpop.permute.xlu0 %1454  ;;  %1604 = vrot.lane.b32.xlu1 %v4612_v8, %s2656_s30  ;;  %2019 = vrot.lane.b32.xlu2 %v4614_v58, %s2654_s12  ;;  %v5839_v58 = vld [vmem:[#allocation3_spill] sm:$0xff] }
 0x279   : > { %v4640_v60 = vmax.f32 %v5839_v58, %v4416_v48  ;;  %v4656_v48 = vadd.f32 %v1941_v62, %v1828_v57  ;;  %v4660_v58 = vmax.f32 %v5841_v31, %v4424_v25 }
 0x27a   : > { %v1141_v16 = vpop.permute.xlu1 %1140  ;;  %v1143_v42 = vpop.permute.xlu2 %1142 }
 0x27b   : > { %v1194_v17 = vmax.f32 %v4272_v19, %v1141_v16  ;;  %v1195_v22 = vmax.f32 %v4363_v34, %v1143_v42  ;;  %5840 = vst [vmem:[#allocation3_spill] sm:$0xff] %v4656_v48  ;;  %v1837_v18 = vpop.f32.mrf.mxu0  ;;  %v5842_v16 = vld [vmem:[#allocation5_spill] sm:$0xff] }
 0x27c   : > { %v4664_v42 = vmax.f32 %v5842_v16, %v4461_v46  ;;  %v5845_v46 = vld [vmem:[#allocation4_spill] sm:$0xff]  ;;  %v4685_v16 = vadd.f32 %v1944_v13, %v1831_v23 }
 0x27d   : > { %1227 = vst.msk [vmem:[%s3065_s10 + $0x50] sm:$0xff] %vm1216_vm2, %v1194_v17  ;;  %v1950_v17 = vpop.f32.mrf.mxu1  ;;  %v4683_v31 = vmax.f32 %v5845_v46, %v4443_v2  ;;  %v5849_v46 = vld [vmem:[#allocation39_spill] sm:$0xff] }
 0x27e   : > { %1228 = vst.msk [vmem:[%s3065_s10 + $0x58] sm:$0xff] %vm1216_vm2, %v1195_v22  ;;  %1540 = vrot.lane.b32.xlu0 %v4628_v1, %s2655_s29  ;;  %v4668_v22 = vpop.f32.mrf.mxu2 }
 0x27f   : > { %5843 = vst [vmem:[#allocation34_spill] sm:$0xff] %v4664_v42 }
 0x280   : > { %v4646_v19 = vpop.permute.xlu0 %1522  ;;  %2085 = vrot.lane.b32.xlu1 %v4636_v35, %s2655_s29  ;;  %1606 = vrot.lane.b32.xlu2 %v4640_v60, %s2656_s30  ;;  %5844 = vst [vmem:[#allocation5_spill] sm:$0xff] %v4668_v22  ;;  %v4689_v22 = vmax.f32 %v5847_v52, %v4508_v27  ;;  %v4705_v35 = vmax.f32 %v5849_v46, %v4538_v7 }
 0x281   : > { %5846 = vst [vmem:[#allocation4_spill] sm:$0xff] %v4685_v16 }
 0x282   : > { %v4652_v34 = vpop.permute.xlu1 %1456  ;;  %v4654_v15 = vpop.permute.xlu2 %1458 }
 0x285   : > { %v1953_v2 = vpop.f32.mrf.mxu1 }
 0x286   : > { %2021 = vrot.lane.b32.xlu0 %v4656_v48, %s2654_s12  ;;  %v4699_v23 = vpop.f32.mrf.mxu2 }
 0x287   : > { %5848 = vst [vmem:[#allocation36_spill] sm:$0xff] %v4699_v23 }
 0x288   : > { %v1175_v11 = vpop.permute.xlu0 %1174  ;;  %1542 = vrot.lane.b32.xlu1 %v4660_v58, %s2655_s29  ;;  %2087 = vrot.lane.b32.xlu2 %v4664_v42, %s2655_s29  ;;  %v4709_v42 = vadd.f32 %v1947_v4, %v1834_v50 }
 0x289   : > { %v1211_v25 = vmax.f32 %v4324_v44, %v1175_v11  ;;  %v1840_v44 = vpop.f32.mrf.mxu0 }
 0x28a   : > { %v4675_v57 = vpop.permute.xlu1 %1524  ;;  %v4677_v62 = vpop.permute.xlu2 %1526 }
 0x28b   : > { %1244 = vst.msk [vmem:[%s3065_s10 + $0xd8] sm:$0xff] %vm1216_vm2, %v1211_v25 }
 0x28e   : > { %1608 = vrot.lane.b32.xlu0 %v4683_v31, %s2656_s30 }
 0x290   : > { %v4693_v11 = vpop.permute.xlu0 %2003  ;;  %1544 = vrot.lane.b32.xlu2 %v4689_v22, %s2655_s29  ;;  %2023 = vrot.lane.b32.xlu1 %v4685_v16, %s2654_s12  ;;  %v5850_v16 = vld [vmem:[#allocation44_spill] sm:$0xff] }
 0x291   : > { %v4713_v48 = vmax.f32 %v5850_v16, %v4445_v53  ;;  %v1956_v53 = vpop.f32.mrf.mxu1  ;;  %v4728_v16 = vpop.f32.mrf.mxu2 }
 0x292   : > { %v1177_v13 = vpop.permute.xlu1 %1176  ;;  %v1179_v25 = vpop.permute.xlu2 %1178  ;;  %5851 = vst [vmem:[#allocation39_spill] sm:$0xff] %v4728_v16  ;;  %v5854_v16 = vld [vmem:[#allocation42_spill] sm:$0xff] }
 0x293   : > { %v1212_v27 = vmax.f32 %v4359_v32, %v1177_v13  ;;  %v1213_v52 = vmax.f32 %v4432_v0, %v1179_v25  ;;  %v1843_v0 = vpop.f32.mrf.mxu0  ;;  %v4732_v13 = vadd.f32 %v1950_v17, %v1837_v18  ;;  %v5852_v25 = vld [vmem:[#allocation8_spill] sm:$0xff]  ;;  %v4762_v23 = vmax.f32 %v5854_v16, %v4618_v36 }
 0x294   : > { %v5856_v16 = vld [vmem:[#allocation12_spill] sm:$0xff] }
 0x295   : > { %1245 = vst.msk [vmem:[%s3065_s10 + $0xe0] sm:$0xff] %vm1216_vm2, %v1212_v27  ;;  %v4736_v27 = vmax.f32 %v5852_v25, %v4532_v26  ;;  %v4758_v25 = vadd.f32 %v1953_v2, %v1840_v44  ;;  %v4776_v2 = vadd.f32 %v1956_v53, %v1843_v0 }
 0x296   : > { %1246 = vst.msk [vmem:[%s3065_s10 + $0xe8] sm:$0xff] %vm1216_vm2, %v1213_v52  ;;  %1546 = vrot.lane.b32.xlu0 %v4705_v35, %s2655_s29  ;;  %v4740_v52 = vmax.f32 %v4078_v63, %v4540_v28  ;;  %v4752_v63 = vmax.f32 %v4186_v47, %v4557_v14  ;;  %v5855_v14 = vld [vmem:[#allocation45_spill] sm:$0xff] }
 0x297   : > { %v4774_v44 = vmax.f32 %v5855_v14, %v4652_v34  ;;  %v5858_v14 = vld [vmem:[#allocation13_spill] sm:$0xff] }
 0x298   : > { %v1145_v32 = vpop.permute.xlu0 %1144  ;;  %1610 = vrot.lane.b32.xlu1 %v4713_v48, %s2656_s30  ;;  %2025 = vrot.lane.b32.xlu2 %v4709_v42, %s2654_s12 }
 0x299   : > { %v1196_v7 = vmax.f32 %v4384_v41, %v1145_v32  ;;  %v1959_v28 = vpop.f32.mrf.mxu1 }
 0x29a   : > { %v4724_v50 = vpop.permute.xlu1 %2005  ;;  %v4726_v4 = vpop.permute.xlu2 %2007 }
 0x29b   : > { %1229 = vst.msk [vmem:[%s3065_s10 + $0x60] sm:$0xff] %vm1216_vm2, %v1196_v7  ;;  %v1846_v46 = vpop.f32.mrf.mxu0  ;;  %v4754_v7 = vpop.f32.mrf.mxu2 }
 0x29c   : > { %5853 = vst [vmem:[#allocation44_spill] sm:$0xff] %v4754_v7 }
 0x29e   : > { %2027 = vrot.lane.b32.xlu0 %v4732_v13, %s2654_s12 }
 0x2a0   : > { %v1461_v41 = vpop.permute.xlu0 %1460  ;;  %1548 = vrot.lane.b32.xlu1 %v4740_v52, %s2655_s29  ;;  %1612 = vrot.lane.b32.xlu2 %v4736_v27, %s2656_s30 }
 0x2a1   : > { %v4827_v7 = vmax.f32 %v4195_v45, %v1461_v41 }
 0x2a2   : > { %v1147_v18 = vpop.permute.xlu1 %1146  ;;  %v1149_v17 = vpop.permute.xlu2 %1148 }
 0x2a3   : > { %v1197_v26 = vmax.f32 %v4406_v38, %v1147_v18  ;;  %v1198_v32 = vmax.f32 %v4481_v33, %v1149_v17  ;;  %v1849_v36 = vpop.f32.mrf.mxu0  ;;  %v4780_v18 = vmax.f32 %v5856_v16, %v4559_v9  ;;  %v1962_v17 = vpop.f32.mrf.mxu1  ;;  %v4795_v9 = vadd.f32 %v1959_v28, %v1846_v46 }
 0x2a4   : > { %v4799_v16 = vmax.f32 %v5858_v14, %v4646_v19  ;;  %v4824_v14 = vadd.f32 %v1962_v17, %v1849_v36 }
 0x2a5   : > { %1230 = vst.msk [vmem:[%s3065_s10 + $0x68] sm:$0xff] %vm1216_vm2, %v1197_v26  ;;  %v4784_v26 = vpop.f32.mrf.mxu2 }
 0x2a6   : > { %1231 = vst.msk [vmem:[%s3065_s10 + $0x70] sm:$0xff] %vm1216_vm2, %v1198_v32  ;;  %1614 = vrot.lane.b32.xlu0 %v4752_v63, %s2656_s30 }
 0x2a7   : > { %5857 = vst [vmem:[#allocation8_spill] sm:$0xff] %v4784_v26  ;;  %v4803_v26 = vmax.f32 %v4163_v6, %v4654_v15  ;;  %v4820_v15 = vmax.f32 %v4328_v55, %v4675_v57 }
 0x2a8   : > { %v1529_v33 = vpop.permute.xlu0 %1528  ;;  %1550 = vrot.lane.b32.xlu2 %v4762_v23, %s2655_s29  ;;  %2029 = vrot.lane.b32.xlu1 %v4758_v25, %s2654_s12  ;;  %5860 = vst [vmem:[#allocation45_spill] sm:$0xff] %v4824_v14 }
 0x2aa   : > { %v1463_v47 = vpop.permute.xlu1 %1462  ;;  %v1465_v38 = vpop.permute.xlu2 %1464 }
 0x2ab   : > { %v1965_v46 = vpop.f32.mrf.mxu1  ;;  %v4843_v45 = vmax.f32 %v4226_v12, %v1463_v47 }
 0x2ad   : > { %v4813_v28 = vpop.f32.mrf.mxu2 }
 0x2ae   : > { %1552 = vrot.lane.b32.xlu0 %v4774_v44, %s2655_s29  ;;  %5859 = vst [vmem:[#allocation42_spill] sm:$0xff] %v4813_v28 }
 0x2b0   : > { %v1181_v32 = vpop.permute.xlu0 %1180  ;;  %1616 = vrot.lane.b32.xlu1 %v4780_v18, %s2656_s30  ;;  %2031 = vrot.lane.b32.xlu2 %v4776_v2, %s2654_s12 }
 0x2b1   : > { %v1214_v34 = vmax.f32 %v4451_v21, %v1181_v32  ;;  %v1852_v21 = vpop.f32.mrf.mxu0 }
 0x2b2   : > { %v1531_v0 = vpop.permute.xlu1 %1530  ;;  %v4791_v53 = vpop.permute.xlu2 %1532  ;;  %v4845_v41 = vadd.f32 %v1965_v46, %v1852_v21  ;;  %v4867_v46 = vmax.f32 %v4428_v51, %v1529_v33 }
 0x2b3   : > { %1247 = vst.msk [vmem:[%s3065_s10 + $0xf0] sm:$0xff] %vm1216_vm2, %v1214_v34  ;;  %v1968_v17 = vpop.f32.mrf.mxu1  ;;  %v4881_v51 = vmax.f32 %v4455_v40, %v1531_v0 }
 0x2b6   : > { %2033 = vrot.lane.b32.xlu0 %v4795_v9, %s2654_s12 }
 0x2b8   : > { %v4807_v32 = vpop.permute.xlu0 %2009  ;;  %1554 = vrot.lane.b32.xlu1 %v4803_v26, %s2655_s29  ;;  %1618 = vrot.lane.b32.xlu2 %v4799_v16, %s2656_s30 }
 0x2ba   : > { %v1183_v19 = vpop.permute.xlu1 %1182  ;;  %v4815_v34 = vpop.permute.xlu2 %2013 }
 0x2bb   : > { %v1215_v6 = vmax.f32 %v4477_v49, %v1183_v19  ;;  %v1855_v49 = vpop.f32.mrf.mxu0  ;;  %v4838_v19 = vpop.f32.mrf.mxu2 }
 0x2bc   : > { %5861 = vst [vmem:[#allocation12_spill] sm:$0xff] %v4838_v19  ;;  %v4860_v21 = vadd.f32 %v1968_v17, %v1855_v49  ;;  %v4870_v19 = vmax.f32 %v4254_v59, %v1465_v38 }
 0x2bd   : > { %1248 = vst.msk [vmem:[%s3065_s10 + $0xf8] sm:$0xff] %vm1216_vm2, %v1215_v6  ;;  %v4849_v6 = vmax.f32 %v4410_v30, %v4677_v62  ;;  %v1971_v30 = vpop.f32.mrf.mxu1 }
 0x2be   : > { %1620 = vrot.lane.b32.xlu0 %v4820_v15, %s2656_s30 }
 0x2c0   : > { %v1151_v28 = vpop.permute.xlu0 %1150  ;;  %1556 = vrot.lane.b32.xlu2 %v4827_v7, %s2655_s29  ;;  %2035 = vrot.lane.b32.xlu1 %v4824_v14, %s2654_s12 }
 0x2c1   : > { %v1199_v55 = vmax.f32 %v4502_v56, %v1151_v28 }
 0x2c2   : > { %v4836_v57 = vpop.permute.xlu1 %2011  ;;  %v1471_v36 = vpop.permute.xlu2 %1470 }
 0x2c3   : > { %1232 = vst.msk [vmem:[%s3065_s10 + $0x78] sm:$0xff] %vm1216_vm2, %v1199_v55  ;;  %v1858_v12 = vpop.f32.mrf.mxu0  ;;  %v4862_v62 = vpop.f32.mrf.mxu2 }
 0x2c4   : > { %5862 = vst [vmem:[#allocation13_spill] sm:$0xff] %v4862_v62  ;;  %v4883_v59 = vadd.f32 %v1971_v30, %v1858_v12  ;;  %v4908_v30 = vmax.f32 %v4526_v3, %v4791_v53 }
 0x2c5   : > { %v1974_v17 = vpop.f32.mrf.mxu1 }
 0x2c6   : > { %1558 = vrot.lane.b32.xlu0 %v4843_v45, %s2655_s29 }
 0x2c8   : > { %v1467_v56 = vpop.permute.xlu0 %1466  ;;  %1622 = vrot.lane.b32.xlu1 %v4849_v6, %s2656_s30  ;;  %2037 = vrot.lane.b32.xlu2 %v4845_v41, %s2654_s12 }
 0x2c9   : > { %v4886_v38 = vmax.f32 %v4280_v37, %v1467_v56 }
 0x2ca   : > { %v1153_v28 = vpop.permute.xlu1 %1152  ;;  %v4857_v55 = vpop.permute.xlu2 %1538 }
 0x2cb   : > { %v1200_v47 = vmax.f32 %v4522_v54, %v1153_v28  ;;  %v1861_v33 = vpop.f32.mrf.mxu0  ;;  %v4890_v28 = vpop.f32.mrf.mxu2 }
 0x2cc   : > { %5863 = vst [vmem:[#allocation52_spill] sm:$0xff] %v4890_v28  ;;  %v4904_v12 = vadd.f32 %v1974_v17, %v1861_v33  ;;  %v4928_v17 = vmax.f32 %v4335_v39, %v1471_v36 }
 0x2cd   : > { %1233 = vst.msk [vmem:[%s3065_s10 + $0x80] sm:$0xff] %vm1216_vm2, %v1200_v47 }
 0x2ce   : > { %2039 = vrot.lane.b32.xlu0 %v4860_v21, %s2654_s12 }
 0x2d0   : > { %v1535_v14 = vpop.permute.xlu0 %1534  ;;  %1560 = vrot.lane.b32.xlu1 %v4870_v19, %s2655_s29  ;;  %1624 = vrot.lane.b32.xlu2 %v4867_v46, %s2656_s30 }
 0x2d2   : > { %v1469_v54 = vpop.permute.xlu1 %1468  ;;  %v4878_v49 = vpop.permute.xlu2 %2019 }
 0x2d3   : > { %v4900_v56 = vmax.f32 %v4307_v43, %v1469_v54  ;;  %v1864_v28 = vpop.f32.mrf.mxu0  ;;  %v1977_v43 = vpop.f32.mrf.mxu1 }
 0x2d4   : > { %v4925_v53 = vadd.f32 %v1977_v43, %v1864_v28 }
 0x2d6   : > { %1626 = vrot.lane.b32.xlu0 %v4881_v51, %s2656_s30 }
 0x2d8   : > { %v4892_v47 = vpop.permute.xlu0 %2015  ;;  %1562 = vrot.lane.b32.xlu2 %v4886_v38, %s2655_s29  ;;  %2041 = vrot.lane.b32.xlu1 %v4883_v59, %s2654_s12 }
 0x2da   : > { %v1537_v40 = vpop.permute.xlu1 %1536  ;;  %v1607_v0 = vpop.permute.xlu2 %1606 }
 0x2db   : > { %v1668_v37 = vmax.f32 %v4640_v60, %v1607_v0  ;;  %v4916_v60 = vpop.f32.mrf.mxu2  ;;  %v4931_v0 = vmax.f32 %v4544_v20, %v1535_v14  ;;  %v1980_v43 = vpop.f32.mrf.mxu1  ;;  %v4943_v20 = vmax.f32 %v4567_v61, %v1537_v40 }
 0x2dc   : > { %5864 = vst [vmem:[#allocation53_spill] sm:$0xff] %v4916_v60 }
 0x2dd   : > { %1701 = vst.msk [vmem:[%s3065_s10 + $0x10] sm:$0xff] %vm1698_vm3, %v1668_v37 }
 0x2de   : > { %1564 = vrot.lane.b32.xlu0 %v4900_v56, %s2655_s29 }
 0x2e0   : > { %v1603_v62 = vpop.permute.xlu0 %1602  ;;  %1628 = vrot.lane.b32.xlu1 %v4908_v30, %s2656_s30  ;;  %2043 = vrot.lane.b32.xlu2 %v4904_v12, %s2654_s12 }
 0x2e1   : > { %v1666_v54 = vmax.f32 %v4583_v24, %v1603_v62  ;;  %v1867_v24 = vpop.f32.mrf.mxu0 }
 0x2e2   : > { %v4919_v33 = vpop.permute.xlu1 %2017  ;;  %v4921_v3 = vpop.permute.xlu2 %2087  ;;  %v4947_v14 = vadd.f32 %v1980_v43, %v1867_v24  ;;  %v5869_v24 = vld [vmem:[#allocation24_spill] sm:$0xff] }
 0x2e3   : > { %1699 = vst.msk [vmem:[%s3065_s10] sm:$0xff] %vm1698_vm3, %v1666_v54  ;;  %v4939_v54 = vpop.f32.mrf.mxu2 }
 0x2e4   : > { %5865 = vst [vmem:[#allocation54_spill] sm:$0xff] %v4939_v54  ;;  %v4972_v54 = vmax.f32 %v4591_v29, %v4857_v55  ;;  %v5875_v55 = vld [vmem:[#allocation6_spill] sm:$0xff] }
 0x2e5   : > { %5866 = vst [vmem:[#allocation55_spill] sm:$0xff] %v4947_v14 }
 0x2e6   : > { %2045 = vrot.lane.b32.xlu0 %v4925_v53, %s2654_s12 }
 0x2e8   : > { %v1473_v37 = vpop.permute.xlu0 %1472  ;;  %1566 = vrot.lane.b32.xlu1 %v4928_v17, %s2655_s29  ;;  %1630 = vrot.lane.b32.xlu2 %v4931_v0, %s2656_s30 }
 0x2e9   : > { %v4950_v36 = vmax.f32 %v4367_v5, %v1473_v37  ;;  %v1870_v40 = vpop.f32.mrf.mxu0  ;;  %v1983_v37 = vpop.f32.mrf.mxu1 }
 0x2ea   : > { %v1605_v62 = vpop.permute.xlu1 %1604  ;;  %v1545_v28 = vpop.permute.xlu2 %1544 }
 0x2eb   : > { %v1667_v39 = vmax.f32 %v4612_v8, %v1605_v62  ;;  %5867 = vst [vmem:[#allocation56_spill] sm:$0xff] %v4950_v36  ;;  %v5870_v62 = vld [vmem:[#allocation41_spill] sm:$0xff]  ;;  %v4966_v43 = vpop.f32.mrf.mxu2 }
 0x2ec   : > { %v4964_v5 = vmax.f32 %v5870_v62, %v5869_v24  ;;  %5872 = vst [vmem:[#allocation41_spill] sm:$0xff] %v4966_v43  ;;  %v5876_v43 = vld [vmem:[#allocation9_spill] sm:$0xff] }
 0x2ed   : > { %1700 = vst.msk [vmem:[%s3065_s10 + $0x8] sm:$0xff] %vm1698_vm3, %v1667_v39  ;;  %v4968_v39 = vadd.f32 %v1983_v37, %v1870_v40  ;;  %v5874_v37 = vld [vmem:[#allocation11_spill] sm:$0xff] }
 0x2ee   : > { %1632 = vrot.lane.b32.xlu0 %v4943_v20, %s2656_s30  ;;  %5871 = vst [vmem:[#allocation24_spill] sm:$0xff] %v4964_v5  ;;  %v4985_v29 = vmax.f32 %v5874_v37, %v4602_v10  ;;  %v5881_v37 = vld [vmem:[#allocation31_spill] sm:$0xff] }
 0x2ef   : > { %5873 = vst [vmem:[#allocation58_spill] sm:$0xff] %v4968_v39 }
 0x2f0   : > { %v1541_v60 = vpop.permute.xlu0 %1540  ;;  %1568 = vrot.lane.b32.xlu2 %v4950_v36, %s2655_s29  ;;  %2047 = vrot.lane.b32.xlu1 %v4947_v14, %s2654_s12 }
 0x2f1   : > { %v4994_v36 = vmax.f32 %v4628_v1, %v1541_v60  ;;  %v5878_v60 = vld [vmem:[#allocation29_spill] sm:$0xff] }
 0x2f2   : > { %v4958_v8 = vpop.permute.xlu1 %2085  ;;  %v4960_v61 = vpop.permute.xlu2 %2025 }
 0x2f3   : > { %5868 = vst [vmem:[#allocation57_spill] sm:$0xff] %v4958_v8 }
 0x2f6   : > { %2089 = vrot.lane.b32.xlu0 %v4964_v5, %s2655_s29  ;;  %v4991_v5 = vmax.f32 %v5876_v43, %v5875_v55  ;;  %v5882_v55 = vld [vmem:[#allocation17_spill] sm:$0xff] }
 0x2f8   : > { %v4976_v8 = vpop.permute.xlu0 %2021  ;;  %1634 = vrot.lane.b32.xlu1 %v4972_v54, %s2656_s30  ;;  %2049 = vrot.lane.b32.xlu2 %v4968_v39, %s2654_s12  ;;  %v4998_v39 = vpop.f32.mrf.mxu2 }
 0x2f9   : > { %5877 = vst [vmem:[#allocation11_spill] sm:$0xff] %v4998_v39  ;;  %v5018_v39 = vmax.f32 %v5882_v55, %v5881_v37  ;;  %v5884_v37 = vld [vmem:[#allocation14_spill] sm:$0xff] }
 0x2fa   : > { %v1543_v24 = vpop.permute.xlu1 %1542  ;;  %v1613_v62 = vpop.permute.xlu2 %1612  ;;  %v5035_v55 = vmax.f32 %v5884_v37, %v4693_v11 }
 0x2fb   : > { %v1671_v40 = vmax.f32 %v4736_v27, %v1613_v62  ;;  %v5010_v1 = vmax.f32 %v4660_v58, %v1543_v24  ;;  %v5879_v62 = vld [vmem:[#allocation10_spill] sm:$0xff]  ;;  %5883 = vst [vmem:[#allocation9_spill] sm:$0xff] %v5018_v39 }
 0x2fd   : > { %1704 = vst.msk [vmem:[%s3065_s10 + $0x28] sm:$0xff] %vm1698_vm3, %v1671_v40  ;;  %v5014_v40 = vmax.f32 %v5879_v62, %v5878_v60 }
 0x2fe   : > { %2095 = vrot.lane.b32.xlu0 %v4985_v29, %s2655_s29 }
 0x2ff   : > { %5880 = vst [vmem:[#allocation6_spill] sm:$0xff] %v5014_v40 }
 0x300   : > { %v1609_v14 = vpop.permute.xlu0 %1608  ;;  %2091 = vrot.lane.b32.xlu1 %v4991_v5, %s2655_s29  ;;  %1636 = vrot.lane.b32.xlu2 %v4994_v36, %s2656_s30  ;;  %v1873_v58 = vpop.f32.mrf.mxu2 }
 0x301   : > { %v1669_v10 = vmax.f32 %v4683_v31, %v1609_v14 }
 0x302   : > { %v5005_v27 = vpop.permute.xlu1 %2023  ;;  %v1551_v43 = vpop.permute.xlu2 %1550 }
 0x303   : > { %1702 = vst.msk [vmem:[%s3065_s10 + $0x18] sm:$0xff] %vm1698_vm3, %v1669_v10  ;;  %v1986_v10 = vpop.f32.mrf.mxu1 }
 0x304   : > { %v5029_v62 = vadd.f32 %v1986_v10, %v1873_v58 }
 0x306   : > { %1638 = vrot.lane.b32.xlu0 %v5010_v1, %s2656_s30 }
 0x308   : > { %v1547_v31 = vpop.permute.xlu0 %1546  ;;  %2097 = vrot.lane.b32.xlu1 %v5018_v39, %s2655_s29  ;;  %2093 = vrot.lane.b32.xlu2 %v5014_v40, %s2655_s29  ;;  %v5038_v39 = vmax.f32 %v4689_v22, %v1545_v28  ;;  %v5886_v28 = vld [vmem:[#allocation21_spill] sm:$0xff] }
 0x309   : > { %v5057_v10 = vmax.f32 %v5886_v28, %v4726_v4  ;;  %v5887_v4 = vld [vmem:[#allocation23_spill] sm:$0xff] }
 0x30a   : > { %v1611_v14 = vpop.permute.xlu1 %1610  ;;  %v5026_v24 = vpop.permute.xlu2 %2031 }
 0x30b   : > { %v1670_v60 = vmax.f32 %v4713_v48, %v1611_v14  ;;  %v5885_v14 = vld [vmem:[#allocation15_spill] sm:$0xff] }
 0x30c   : > { %v5051_v22 = vmax.f32 %v5885_v14, %v4724_v50 }
 0x30d   : > { %1703 = vst.msk [vmem:[%s3065_s10 + $0x20] sm:$0xff] %vm1698_vm3, %v1670_v60  ;;  %v5060_v60 = vmax.f32 %v4705_v35, %v1547_v31  ;;  %v5076_v31 = vmax.f32 %v5887_v4, %v4807_v32  ;;  %v5100_v4 = vmax.f32 %v4762_v23, %v1551_v43  ;;  %v5892_v23 = vld [vmem:[#allocation33_spill] sm:$0xff] }
 0x30e   : > { %2051 = vrot.lane.b32.xlu0 %v5029_v62, %s2654_s12  ;;  %v5117_v43 = vmax.f32 %v5892_v23, %v4878_v49  ;;  %v5136_v49 = vmax.f32 %v4709_v42, %v4960_v61  ;;  %v5894_v61 = vld [vmem:[#allocation4_spill] sm:$0xff] }
 0x310   : > { %v5042_v40 = vpop.permute.xlu0 %2027  ;;  %1640 = vrot.lane.b32.xlu1 %v5038_v39, %s2656_s30  ;;  %2099 = vrot.lane.b32.xlu2 %v5035_v55, %s2655_s29 }
 0x312   : > { %v1549_v48 = vpop.permute.xlu1 %1548  ;;  %v1619_v58 = vpop.permute.xlu2 %1618 }
 0x313   : > { %v1674_v11 = vmax.f32 %v4799_v16, %v1619_v58  ;;  %v5072_v35 = vmax.f32 %v4740_v52, %v1549_v48  ;;  %v5889_v48 = vld [vmem:[#allocation25_spill] sm:$0xff] }
 0x315   : > { %1707 = vst.msk [vmem:[%s3065_s10 + $0x40] sm:$0xff] %vm1698_vm3, %v1674_v11  ;;  %v5888_v11 = vld [vmem:[#allocation28_spill] sm:$0xff] }
 0x316   : > { %2101 = vrot.lane.b32.xlu0 %v5051_v22, %s2655_s29  ;;  %v5080_v14 = vmax.f32 %v5888_v11, %v4815_v34  ;;  %v5890_v34 = vld [vmem:[#allocation27_spill] sm:$0xff] }
 0x318   : > { %v1615_v37 = vpop.permute.xlu0 %1614  ;;  %2103 = vrot.lane.b32.xlu1 %v5057_v10, %s2655_s29  ;;  %1642 = vrot.lane.b32.xlu2 %v5060_v60, %s2656_s30 }
 0x319   : > { %v1672_v50 = vmax.f32 %v4752_v63, %v1615_v37  ;;  %v5091_v37 = vmax.f32 %v5889_v48, %v4836_v57 }
 0x31a   : > { %v2030_v16 = vpop.permute.xlu1 %2029  ;;  %v1557_v58 = vpop.permute.xlu2 %1556 }
 0x31b   : > { %1705 = vst.msk [vmem:[%s3065_s10 + $0x30] sm:$0xff] %vm1698_vm3, %v1672_v50  ;;  %v5097_v50 = vmax.f32 %v5890_v34, %v4892_v47  ;;  %v5891_v47 = vld [vmem:[#allocation30_spill] sm:$0xff]  ;;  %v5160_v23 = vmax.f32 %v4827_v7, %v1557_v58  ;;  %v5176_v7 = vmax.f32 %v4776_v2, %v5026_v24 }
 0x31e   : > { %1644 = vrot.lane.b32.xlu0 %v5072_v35, %s2656_s30 }
 0x320   : > { %v1553_v28 = vpop.permute.xlu0 %1552  ;;  %2109 = vrot.lane.b32.xlu1 %v5080_v14, %s2655_s29  ;;  %2105 = vrot.lane.b32.xlu2 %v5076_v31, %s2655_s29 }
 0x321   : > { %v5120_v48 = vmax.f32 %v4774_v44, %v1553_v28  ;;  %v5893_v28 = vld [vmem:[#allocation3_spill] sm:$0xff] }
 0x322   : > { %v1617_v52 = vpop.permute.xlu1 %1616  ;;  %v2038_v63 = vpop.permute.xlu2 %2037 }
 0x323   : > { %v1673_v32 = vmax.f32 %v4780_v18, %v1617_v52 }
 0x325   : > { %1706 = vst.msk [vmem:[%s3065_s10 + $0x38] sm:$0xff] %vm1698_vm3, %v1673_v32  ;;  %v5111_v32 = vmax.f32 %v5891_v47, %v4919_v33 }
 0x326   : > { %2107 = vrot.lane.b32.xlu0 %v5091_v37, %s2655_s29 }
 0x328   : > { %v2034_v11 = vpop.permute.xlu0 %2033  ;;  %1646 = vrot.lane.b32.xlu1 %v5100_v4, %s2656_s30  ;;  %2111 = vrot.lane.b32.xlu2 %v5097_v50, %s2655_s29 }
 0x329   : > { %v5197_v24 = vmax.f32 %v4795_v9, %v2034_v11 }
 0x32a   : > { %v1555_v18 = vpop.permute.xlu1 %1554  ;;  %v1625_v57 = vpop.permute.xlu2 %1624 }
 0x32b   : > { %v1677_v52 = vmax.f32 %v4867_v46, %v1625_v57  ;;  %v5132_v44 = vmax.f32 %v4803_v26, %v1555_v18  ;;  %v5151_v18 = vmax.f32 %v5894_v61, %v5005_v27 }
 0x32d   : > { %1710 = vst.msk [vmem:[%s3065_s10 + $0x58] sm:$0xff] %vm1698_vm3, %v1677_v52  ;;  %v5140_v52 = vmax.f32 %v5893_v28, %v4976_v8  ;;  %v5157_v8 = vmax.f32 %v4732_v13, %v5042_v40  ;;  %v5170_v13 = vmax.f32 %v4758_v25, %v2030_v16 }
 0x32e   : > { %2113 = vrot.lane.b32.xlu0 %v5111_v32, %s2655_s29 }
 0x330   : > { %v1621_v34 = vpop.permute.xlu0 %1620  ;;  %2115 = vrot.lane.b32.xlu1 %v5117_v43, %s2655_s29  ;;  %1648 = vrot.lane.b32.xlu2 %v5120_v48, %s2656_s30 }
 0x331   : > { %v1675_v46 = vmax.f32 %v4820_v15, %v1621_v34 }
 0x332   : > { %v2036_v33 = vpop.permute.xlu1 %2035  ;;  %v1563_v57 = vpop.permute.xlu2 %1562 }
 0x333   : > { %1708 = vst.msk [vmem:[%s3065_s10 + $0x48] sm:$0xff] %vm1698_vm3, %v1675_v46  ;;  %v5212_v9 = vmax.f32 %v4886_v38, %v1563_v57 }
 0x336   : > { %1650 = vrot.lane.b32.xlu0 %v5132_v44, %s2656_s30 }
 0x338   : > { %v1559_v47 = vpop.permute.xlu0 %1558  ;;  %2121 = vrot.lane.b32.xlu1 %v5136_v49, %s2655_s29  ;;  %2117 = vrot.lane.b32.xlu2 %v5140_v52, %s2655_s29 }
 0x339   : > { %v5179_v40 = vmax.f32 %v4843_v45, %v1559_v47  ;;  %v5194_v45 = vmax.f32 %v4845_v41, %v2038_v63  ;;  %v5895_v41 = vld [vmem:[#allocation45_spill] sm:$0xff] }
 0x33a   : > { %v1623_v26 = vpop.permute.xlu1 %1622  ;;  %v2044_v15 = vpop.permute.xlu2 %2043  ;;  %v5207_v63 = vmax.f32 %v5895_v41, %v2036_v33 }
 0x33b   : > { %v1676_v42 = vmax.f32 %v4849_v6, %v1623_v26 }
 0x33d   : > { %1709 = vst.msk [vmem:[%s3065_s10 + $0x50] sm:$0xff] %vm1698_vm3, %v1676_v42 }
 0x33e   : > { %2119 = vrot.lane.b32.xlu0 %v5151_v18, %s2655_s29 }
 0x340   : > { %v2040_v34 = vpop.permute.xlu0 %2039  ;;  %1652 = vrot.lane.b32.xlu1 %v5160_v23, %s2656_s30  ;;  %2123 = vrot.lane.b32.xlu2 %v5157_v8, %s2655_s29 }
 0x341   : > { %v5215_v11 = vmax.f32 %v4860_v21, %v2040_v34  ;;  %v5230_v21 = vmax.f32 %v4904_v12, %v2044_v15  ;;  %v5896_v12 = vld [vmem:[#allocation34_spill] sm:$0xff] }
 0x342   : > { %v1561_v6 = vpop.permute.xlu1 %1560  ;;  %v1631_v27 = vpop.permute.xlu2 %1630  ;;  %v5249_v15 = vmax.f32 %v5896_v12, %v4921_v3  ;;  %v5897_v3 = vld [vmem:[#allocation55_spill] sm:$0xff] }
 0x343   : > { %v1680_v46 = vmax.f32 %v4931_v0, %v1631_v27  ;;  %v5191_v2 = vmax.f32 %v4870_v19, %v1561_v6 }
 0x345   : > { %1713 = vst.msk [vmem:[%s3065_s10 + $0x70] sm:$0xff] %vm1698_vm3, %v1680_v46 }
 0x346   : > { %2125 = vrot.lane.b32.xlu0 %v5170_v13, %s2655_s29 }
 0x348   : > { %v1627_v58 = vpop.permute.xlu0 %1626  ;;  %2127 = vrot.lane.b32.xlu1 %v5176_v7, %s2655_s29  ;;  %1654 = vrot.lane.b32.xlu2 %v5179_v40, %s2656_s30 }
 0x349   : > { %v1678_v25 = vmax.f32 %v4881_v51, %v1627_v58 }
 0x34a   : > { %v2042_v0 = vpop.permute.xlu1 %2041  ;;  %v1569_v16 = vpop.permute.xlu2 %1568 }
 0x34b   : > { %1711 = vst.msk [vmem:[%s3065_s10 + $0x60] sm:$0xff] %vm1698_vm3, %v1678_v25  ;;  %v5225_v38 = vmax.f32 %v4883_v59, %v2042_v0  ;;  %v5899_v0 = vld [vmem:[#allocation24_spill] sm:$0xff] }
 0x34e   : > { %1656 = vrot.lane.b32.xlu0 %v5191_v2, %s2656_s30 }
 0x350   : > { %v1565_v28 = vpop.permute.xlu0 %1564  ;;  %2133 = vrot.lane.b32.xlu1 %v5194_v45, %s2655_s29  ;;  %2129 = vrot.lane.b32.xlu2 %v5197_v24, %s2655_s29 }
 0x351   : > { %v5233_v57 = vmax.f32 %v4900_v56, %v1565_v28 }
 0x352   : > { %v1629_v51 = vpop.permute.xlu1 %1628  ;;  %v2050_v19 = vpop.permute.xlu2 %2049 }
 0x353   : > { %v1679_v47 = vmax.f32 %v4908_v30, %v1629_v51 }
 0x355   : > { %1712 = vst.msk [vmem:[%s3065_s10 + $0x68] sm:$0xff] %vm1698_vm3, %v1679_v47 }
 0x356   : > { %2131 = vrot.lane.b32.xlu0 %v5207_v63, %s2655_s29 }
 0x358   : > { %v2046_v26 = vpop.permute.xlu0 %2045  ;;  %1658 = vrot.lane.b32.xlu1 %v5212_v9, %s2656_s30  ;;  %2135 = vrot.lane.b32.xlu2 %v5215_v11, %s2655_s29 }
 0x359   : > { %v5252_v6 = vmax.f32 %v4925_v53, %v2046_v26  ;;  %v5898_v53 = vld [vmem:[#allocation56_spill] sm:$0xff]  ;;  %v5901_v26 = vld [vmem:[#allocation37_spill] sm:$0xff] }
 0x35a   : > { %v1567_v30 = vpop.permute.xlu1 %1566  ;;  %v1637_v33 = vpop.permute.xlu2 %1636  ;;  %v5267_v25 = vmax.f32 %v5898_v53, %v1569_v16  ;;  %v5900_v16 = vld [vmem:[#allocation57_spill] sm:$0xff] }
 0x35b   : > { %v1683_v42 = vmax.f32 %v4994_v36, %v1637_v33  ;;  %v5245_v56 = vmax.f32 %v4928_v17, %v1567_v30  ;;  %v5281_v30 = vmax.f32 %v5901_v26, %v5900_v16  ;;  %v5902_v33 = vld [vmem:[#allocation58_spill] sm:$0xff] }
 0x35d   : > { %1716 = vst.msk [vmem:[%s3065_s10 + $0x88] sm:$0xff] %vm1698_vm3, %v1683_v42  ;;  %v5286_v42 = vmax.f32 %v5902_v33, %v2050_v19  ;;  %v5903_v19 = vld [vmem:[#allocation6_spill] sm:$0xff] }
 0x35e   : > { %2137 = vrot.lane.b32.xlu0 %v5225_v38, %s2655_s29 }
 0x360   : > { %v1633_v61 = vpop.permute.xlu0 %1632  ;;  %2139 = vrot.lane.b32.xlu1 %v5230_v21, %s2655_s29  ;;  %1660 = vrot.lane.b32.xlu2 %v5233_v57, %s2656_s30 }
 0x361   : > { %v1681_v59 = vmax.f32 %v4943_v20, %v1633_v61 }
 0x362   : > { %v2048_v36 = vpop.permute.xlu1 %2047  ;;  %v2094_v34 = vpop.permute.xlu2 %2093 }
 0x363   : > { %1714 = vst.msk [vmem:[%s3065_s10 + $0x78] sm:$0xff] %vm1698_vm3, %v1681_v59  ;;  %v5262_v58 = vmax.f32 %v5897_v3, %v2048_v36 }
 0x366   : > { %1662 = vrot.lane.b32.xlu0 %v5245_v56, %s2656_s30 }
 0x368   : > { %v2090_v27 = vpop.permute.xlu0 %2089  ;;  %2183 = vrot.lane.b32.xlu1 %v5249_v15, %s2656_s30  ;;  %2141 = vrot.lane.b32.xlu2 %v5252_v6, %s2655_s29 }
 0x369   : > { %v5270_v28 = vmax.f32 %v5899_v0, %v2090_v27  ;;  %v5304_v27 = vmax.f32 %v5903_v19, %v2094_v34 }
 0x36a   : > { %v1635_v17 = vpop.permute.xlu1 %1634  ;;  %v2100_v20 = vpop.permute.xlu2 %2099 }
 0x36b   : > { %v1682_v46 = vmax.f32 %v4972_v54, %v1635_v17  ;;  %v5322_v0 = vmax.f32 %v5035_v55, %v2100_v20 }
 0x36d   : > { %1715 = vst.msk [vmem:[%s3065_s10 + $0x80] sm:$0xff] %vm1698_vm3, %v1682_v46 }
 0x36e   : > { %2143 = vrot.lane.b32.xlu0 %v5262_v58, %s2655_s29 }
 0x370   : > { %v2096_v51 = vpop.permute.xlu0 %2095  ;;  %1664 = vrot.lane.b32.xlu1 %v5267_v25, %s2656_s30  ;;  %2185 = vrot.lane.b32.xlu2 %v5270_v28, %s2656_s30 }
 0x371   : > { %v5289_v61 = vmax.f32 %v4985_v29, %v2096_v51 }
 0x372   : > { %v2092_v54 = vpop.permute.xlu1 %2091  ;;  %v1643_v47 = vpop.permute.xlu2 %1642 }
 0x373   : > { %v1686_v41 = vmax.f32 %v5060_v60, %v1643_v47  ;;  %v5301_v29 = vmax.f32 %v4991_v5, %v2092_v54  ;;  %v5904_v5 = vld [vmem:[#allocation9_spill] sm:$0xff] }
 0x375   : > { %1719 = vst.msk [vmem:[%s3065_s10 + $0xa0] sm:$0xff] %vm1698_vm3, %v1686_v41 }
 0x376   : > { %2181 = vrot.lane.b32.xlu0 %v5281_v30, %s2656_s30 }
 0x378   : > { %v1639_v59 = vpop.permute.xlu0 %1638  ;;  %2191 = vrot.lane.b32.xlu2 %v5289_v61, %s2656_s30  ;;  %2145 = vrot.lane.b32.xlu1 %v5286_v42, %s2655_s29 }
 0x379   : > { %v1684_v60 = vmax.f32 %v5010_v1, %v1639_v59 }
 0x37a   : > { %v2098_v36 = vpop.permute.xlu1 %2097  ;;  %v2106_v12 = vpop.permute.xlu2 %2105 }
 0x37b   : > { %1717 = vst.msk [vmem:[%s3065_s10 + $0x90] sm:$0xff] %vm1698_vm3, %v1684_v60  ;;  %v5317_v34 = vmax.f32 %v5904_v5, %v2098_v36  ;;  %v5340_v55 = vmax.f32 %v5076_v31, %v2106_v12 }
 0x37e   : > { %2187 = vrot.lane.b32.xlu0 %v5301_v29, %s2656_s30 }
 0x380   : > { %v2052_v17 = vpop.permute.xlu0 %2051  ;;  %2189 = vrot.lane.b32.xlu1 %v5304_v27, %s2656_s30 }
 0x381   : > { %v5311_v46 = vmax.f32 %v5029_v62, %v2052_v17 }
 0x382   : > { %v1641_v1 = vpop.permute.xlu1 %1640  ;;  %v2112_v3 = vpop.permute.xlu2 %2111 }
 0x383   : > { %v1685_v53 = vmax.f32 %v5038_v39, %v1641_v1  ;;  %2147 = vrot.lane.b32.xlu2 %v5311_v46, %s2655_s29  ;;  %v5353_v31 = vmax.f32 %v5097_v50, %v2112_v3 }
 0x385   : > { %1718 = vst.msk [vmem:[%s3065_s10 + $0x98] sm:$0xff] %vm1698_vm3, %v1685_v53 }
 0x386   : > { %2193 = vrot.lane.b32.xlu0 %v5317_v34, %s2656_s30 }
 0x388   : > { %v2102_v62 = vpop.permute.xlu0 %2101  ;;  %2195 = vrot.lane.b32.xlu1 %v5322_v0, %s2656_s30 }
 0x389   : > { %v5329_v39 = vmax.f32 %v5051_v22, %v2102_v62 }
 0x38a   : > { %v2104_v51 = vpop.permute.xlu1 %2103  ;;  %v1649_v54 = vpop.permute.xlu2 %1648 }
 0x38b   : > { %v5332_v47 = vmax.f32 %v5057_v10, %v2104_v51  ;;  %v1689_v41 = vmax.f32 %v5120_v48, %v1649_v54  ;;  %2197 = vrot.lane.b32.xlu2 %v5329_v39, %s2656_s30 }
 0x38d   : > { %1722 = vst.msk [vmem:[%s3065_s10 + $0xb8] sm:$0xff] %vm1698_vm3, %v1689_v41 }
 0x38e   : > { %2199 = vrot.lane.b32.xlu0 %v5332_v47, %s2656_s30 }
 0x390   : > { %v1645_v22 = vpop.permute.xlu0 %1644  ;;  %2201 = vrot.lane.b32.xlu1 %v5340_v55, %s2656_s30 }
 0x391   : > { %v1687_v10 = vmax.f32 %v5072_v35, %v1645_v22 }
 0x392   : > { %v2110_v20 = vpop.permute.xlu1 %2109  ;;  %v2118_v48 = vpop.permute.xlu2 %2117 }
 0x393   : > { %1720 = vst.msk [vmem:[%s3065_s10 + $0xa8] sm:$0xff] %vm1698_vm3, %v1687_v10  ;;  %v5350_v16 = vmax.f32 %v5080_v14, %v2110_v20  ;;  %v5368_v14 = vmax.f32 %v5140_v52, %v2118_v48 }
 0x396   : > { %2205 = vrot.lane.b32.xlu0 %v5350_v16, %s2656_s30 }
 0x398   : > { %v2108_v26 = vpop.permute.xlu0 %2107  ;;  %2207 = vrot.lane.b32.xlu1 %v5353_v31, %s2656_s30 }
 0x399   : > { %v5360_v35 = vmax.f32 %v5091_v37, %v2108_v26 }
 0x39a   : > { %v1647_v33 = vpop.permute.xlu1 %1646  ;;  %v2124_v59 = vpop.permute.xlu2 %2123 }
 0x39b   : > { %v1688_v60 = vmax.f32 %v5100_v4, %v1647_v33  ;;  %2203 = vrot.lane.b32.xlu2 %v5360_v35, %s2656_s30  ;;  %v5386_v52 = vmax.f32 %v5157_v8, %v2124_v59  ;;  %v5905_v33 = vld [vmem:[#allocation38_spill] sm:$0xff] }
 0x39d   : > { %1721 = vst.msk [vmem:[%s3065_s10 + $0xb0] sm:$0xff] %vm1698_vm3, %v1688_v60 }
 0x3a0   : > { %v2114_v50 = vpop.permute.xlu0 %2113  ;;  %2213 = vrot.lane.b32.xlu1 %v5368_v14, %s2656_s30 }
 0x3a1   : > { %v5373_v37 = vmax.f32 %v5111_v32, %v2114_v50 }
 0x3a2   : > { %v2116_v36 = vpop.permute.xlu1 %2115  ;;  %v1655_v12 = vpop.permute.xlu2 %1654 }
 0x3a3   : > { %v5376_v4 = vmax.f32 %v5117_v43, %v2116_v36  ;;  %v1692_v19 = vmax.f32 %v5179_v40, %v1655_v12  ;;  %2209 = vrot.lane.b32.xlu2 %v5373_v37, %s2656_s30 }
 0x3a5   : > { %1725 = vst.msk [vmem:[%s3065_s10 + $0xd0] sm:$0xff] %vm1698_vm3, %v1692_v19  ;;  %2211 = vrot.lane.b32.xlu0 %v5376_v4, %s2656_s30 }
 0x3a8   : > { %v1651_v32 = vpop.permute.xlu0 %1650  ;;  %2219 = vrot.lane.b32.xlu1 %v5386_v52, %s2656_s30 }
 0x3a9   : > { %v1690_v43 = vmax.f32 %v5132_v44, %v1651_v32 }
 0x3aa   : > { %v2122_v17 = vpop.permute.xlu1 %2121  ;;  %v2130_v40 = vpop.permute.xlu2 %2129 }
 0x3ab   : > { %1723 = vst.msk [vmem:[%s3065_s10 + $0xc0] sm:$0xff] %vm1698_vm3, %v1690_v43  ;;  %v5394_v1 = vmax.f32 %v5136_v49, %v2122_v17  ;;  %v5399_v8 = vmax.f32 %v5197_v24, %v2130_v40 }
 0x3ad   : > { %2217 = vrot.lane.b32.xlu0 %v5394_v1, %s2656_s30 }
 0x3b0   : > { %v2120_v3 = vpop.permute.xlu0 %2119  ;;  %2225 = vrot.lane.b32.xlu1 %v5399_v8, %s2656_s30 }
 0x3b1   : > { %v5404_v44 = vmax.f32 %v5151_v18, %v2120_v3 }
 0x3b2   : > { %v1653_v53 = vpop.permute.xlu1 %1652  ;;  %v2136_v5 = vpop.permute.xlu2 %2135 }
 0x3b3   : > { %v1691_v62 = vmax.f32 %v5160_v23, %v1653_v53  ;;  %2215 = vrot.lane.b32.xlu2 %v5404_v44, %s2656_s30  ;;  %v5412_v49 = vmax.f32 %v5215_v11, %v2136_v5  ;;  %v5907_v5 = vld [vmem:[#allocation35_spill] sm:$0xff] }
 0x3b5   : > { %1724 = vst.msk [vmem:[%s3065_s10 + $0xc8] sm:$0xff] %vm1698_vm3, %v1691_v62 }
 0x3b8   : > { %v2126_v24 = vpop.permute.xlu0 %2125  ;;  %2231 = vrot.lane.b32.xlu1 %v5412_v49, %s2656_s30 }
 0x3b9   : > { %v5417_v18 = vmax.f32 %v5170_v13, %v2126_v24 }
 0x3ba   : > { %v2128_v51 = vpop.permute.xlu1 %2127  ;;  %v1661_v54 = vpop.permute.xlu2 %1660 }
 0x3bb   : > { %v5420_v23 = vmax.f32 %v5176_v7, %v2128_v51  ;;  %v1695_v41 = vmax.f32 %v5233_v57, %v1661_v54  ;;  %2221 = vrot.lane.b32.xlu2 %v5417_v18, %s2656_s30 }
 0x3bd   : > { %1728 = vst.msk [vmem:[%s3065_s10 + $0xe8] sm:$0xff] %vm1698_vm3, %v1695_v41  ;;  %2223 = vrot.lane.b32.xlu0 %v5420_v23, %s2656_s30 }
 0x3c0   : > { %v1657_v11 = vpop.permute.xlu0 %1656 }
 0x3c1   : > { %v1693_v22 = vmax.f32 %v5191_v2, %v1657_v11  ;;  %v2628_v2 = vld [vmem:[%s5657_s2] sm:$0x7] }
 0x3c2   : > { %v2134_v13 = vpop.permute.xlu1 %2133  ;;  %v2142_v10 = vpop.permute.xlu2 %2141  ;;  %v5445_v48 = vperm.slane %v2628_v2, 2 }
 0x3c3   : > { %1726 = vst.msk [vmem:[%s3065_s10 + $0xd8] sm:$0xff] %vm1698_vm3, %v1693_v22  ;;  %v5433_v7 = vmax.f32 %v5194_v45, %v2134_v13  ;;  %v5436_v57 = vmax.f32 %v5252_v6, %v2142_v10 }
 0x3c4   : > { %v678_v59 = vadd.f32 %v5905_v33, %v5445_v48 }
 0x3c5   : > { %2229 = vrot.lane.b32.xlu0 %v5433_v7, %s2656_s30  ;;  %2237 = vrot.lane.b32.xlu1 %v5436_v57, %s2656_s30 }
 0x3c8   : > { %v2132_v20 = vpop.permute.xlu0 %2131 }
 0x3c9   : > { %v5448_v45 = vmax.f32 %v5207_v63, %v2132_v20 }
 0x3ca   : > { %v1659_v26 = vpop.permute.xlu1 %1658  ;;  %v2186_v6 = vpop.permute.xlu2 %2185 }
 0x3cb   : > { %v1694_v60 = vmax.f32 %v5212_v9, %v1659_v26  ;;  %v2247_v50 = vmax.f32 %v5270_v28, %v2186_v6  ;;  %2227 = vrot.lane.b32.xlu2 %v5448_v45, %s2656_s30  ;;  %v5906_v9 = vld [vmem:[#allocation46_spill] sm:$0xff] }
 0x3cc   : > { %v687_v28 = vadd.f32 %v5906_v9, %v5445_v48 }
 0x3cd   : > { %1727 = vst.msk [vmem:[%s3065_s10 + $0xe0] sm:$0xff] %vm1698_vm3, %v1694_v60  ;;  %v2279_v36 = vadd.f32 %v2247_v50, %v678_v59  ;;  %v5910_v59 = vld [vmem:[#allocation40_spill] sm:$0xff] }
 0x3ce   : > { %v681_v60 = vadd.f32 %v5910_v59, %v5445_v48 }
 0x3cf   : > { %2312 = vst.msk [vmem:[%s3065_s10 + $0x10] sm:$0xff] %vm2309_vm4, %v2279_v36  ;;  %v5911_v36 = vld [vmem:[#allocation7_spill] sm:$0xff] }
 0x3d0   : > { %v2138_v63 = vpop.permute.xlu0 %2137 }
 0x3d1   : > { %v5461_v12 = vmax.f32 %v5225_v38, %v2138_v63  ;;  %v684_v63 = vadd.f32 %v5911_v36, %v5445_v48 }
 0x3d2   : > { %v2140_v19 = vpop.permute.xlu1 %2139  ;;  %v2192_v32 = vpop.permute.xlu2 %2191 }
 0x3d3   : > { %v5466_v43 = vmax.f32 %v5230_v21, %v2140_v19  ;;  %v2250_v17 = vmax.f32 %v5289_v61, %v2192_v32  ;;  %2233 = vrot.lane.b32.xlu2 %v5461_v12, %s2656_s30  ;;  %v675_v21 = vadd.f32 %v5907_v5, %v5445_v48 }
 0x3d5   : > { %v2282_v40 = vadd.f32 %v2250_v17, %v687_v28  ;;  %2235 = vrot.lane.b32.xlu0 %v5466_v43, %s2656_s30  ;;  %v5912_v28 = vld [vmem:[#allocation20_spill] sm:$0xff] }
 0x3d6   : > { %v705_v17 = vadd.f32 %v5912_v28, %v5445_v48  ;;  %v5921_v28 = vld [vmem:[#allocation50_spill] sm:$0xff] }
 0x3d7   : > { %2315 = vst.msk [vmem:[%s3065_s10 + $0x28] sm:$0xff] %vm2309_vm4, %v2282_v40 }
 0x3d8   : > { %v1663_v38 = vpop.permute.xlu0 %1662 }
 0x3d9   : > { %v1696_v3 = vmax.f32 %v5245_v56, %v1663_v38 }
 0x3da   : > { %v2184_v53 = vpop.permute.xlu1 %2183 }
 0x3db   : > { %1729 = vst.msk [vmem:[%s3065_s10 + $0xf0] sm:$0xff] %vm1698_vm3, %v1696_v3  ;;  %v2246_v61 = vmax.f32 %v5249_v15, %v2184_v53  ;;  %v5913_v3 = vld [vmem:[#allocation16_spill] sm:$0xff] }
 0x3dc   : > { %v690_v53 = vadd.f32 %v5913_v3, %v5445_v48 }
 0x3dd   : > { %v2278_v62 = vadd.f32 %v2246_v61, %v675_v21  ;;  %v2148_v24 = vpop.permute.xlu2 %2147  ;;  %v5914_v21 = vld [vmem:[#allocation47_spill] sm:$0xff] }
 0x3de   : > { %v5482_v51 = vmax.f32 %v5311_v46, %v2148_v24  ;;  %v5908_v46 = vld [vmem:[#allocation18_spill] sm:$0xff]  ;;  %v693_v61 = vadd.f32 %v5914_v21, %v5445_v48 }
 0x3df   : > { %2311 = vst.msk [vmem:[%s3065_s10 + $0x8] sm:$0xff] %vm2309_vm4, %v2278_v62  ;;  %v696_v22 = vadd.f32 %v5908_v46, %v5445_v48 }
 0x3e0   : > { %v2144_v54 = vpop.permute.xlu0 %2143  ;;  %2243 = vrot.lane.b32.xlu1 %v5482_v51, %s2656_s30 }
 0x3e1   : > { %v5489_v56 = vmax.f32 %v5262_v58, %v2144_v54  ;;  %v5909_v58 = vld [vmem:[#allocation2_spill] sm:$0xff] }
 0x3e2   : > { %v1665_v41 = vpop.permute.xlu1 %1664  ;;  %v672_v2 = vadd.f32 %v5909_v58, %v5445_v48 }
 0x3e3   : > { %v1697_v11 = vmax.f32 %v5267_v25, %v1665_v41  ;;  %2239 = vrot.lane.b32.xlu2 %v5489_v56, %s2656_s30  ;;  %v5915_v41 = vld [vmem:[#allocation43_spill] sm:$0xff] }
 0x3e5   : > { %1730 = vst.msk [vmem:[%s3065_s10 + $0xf8] sm:$0xff] %vm1698_vm3, %v1697_v11  ;;  %v2198_v15 = vpop.permute.xlu2 %2197  ;;  %v714_v11 = vadd.f32 %v5915_v41, %v5445_v48 }
 0x3e6   : > { %v2253_v13 = vmax.f32 %v5329_v39, %v2198_v15 }
 0x3e8   : > { %v2285_v10 = vadd.f32 %v2253_v13, %v696_v22  ;;  %v2182_v20 = vpop.permute.xlu0 %2181  ;;  %v5916_v22 = vld [vmem:[#allocation19_spill] sm:$0xff] }
 0x3e9   : > { %v2245_v26 = vmax.f32 %v5281_v30, %v2182_v20  ;;  %v699_v13 = vadd.f32 %v5916_v22, %v5445_v48  ;;  %v5917_v20 = vld [vmem:[#allocation48_spill] sm:$0xff] }
 0x3ea   : > { %2318 = vst.msk [vmem:[%s3065_s10 + $0x40] sm:$0xff] %vm2309_vm4, %v2285_v10  ;;  %v2146_v25 = vpop.permute.xlu1 %2145  ;;  %v702_v58 = vadd.f32 %v5917_v20, %v5445_v48  ;;  %v5926_v22 = vld [vmem:[#allocation44_spill] sm:$0xff] }
 0x3eb   : > { %v2277_v6 = vadd.f32 %v2245_v26, %v672_v2  ;;  %v5505_v33 = vmax.f32 %v5286_v42, %v2146_v25  ;;  %v5927_v20 = vld [vmem:[#allocation8_spill] sm:$0xff] }
 0x3ed   : > { %2310 = vst.msk [vmem:[%s3065_s10] sm:$0xff] %vm2309_vm4, %v2277_v6  ;;  %2241 = vrot.lane.b32.xlu0 %v5505_v33, %s2656_s30 }
 0x3f0   : > { %v2188_v39 = vpop.permute.xlu0 %2187 }
 0x3f1   : > { %v2248_v30 = vmax.f32 %v5301_v29, %v2188_v39 }
 0x3f2   : > { %v2190_v50 = vpop.permute.xlu1 %2189 }
 0x3f3   : > { %v2280_v19 = vadd.f32 %v2248_v30, %v681_v60  ;;  %v2249_v42 = vmax.f32 %v5304_v27, %v2190_v50  ;;  %v5919_v60 = vld [vmem:[#allocation49_spill] sm:$0xff] }
 0x3f4   : > { %v711_v30 = vadd.f32 %v5919_v60, %v5445_v48 }
 0x3f5   : > { %2313 = vst.msk [vmem:[%s3065_s10 + $0x18] sm:$0xff] %vm2309_vm4, %v2280_v19  ;;  %v2281_v32 = vadd.f32 %v2249_v42, %v684_v63  ;;  %v2204_v9 = vpop.permute.xlu2 %2203  ;;  %v5920_v19 = vld [vmem:[#allocation51_spill] sm:$0xff] }
 0x3f6   : > { %v2256_v40 = vmax.f32 %v5360_v35, %v2204_v9  ;;  %v723_v42 = vadd.f32 %v5920_v19, %v5445_v48 }
 0x3f7   : > { %2314 = vst.msk [vmem:[%s3065_s10 + $0x20] sm:$0xff] %vm2309_vm4, %v2281_v32 }
 0x3f8   : > { %v2288_v29 = vadd.f32 %v2256_v40, %v705_v17  ;;  %v2194_v38 = vpop.permute.xlu0 %2193 }
 0x3f9   : > { %v2251_v27 = vmax.f32 %v5317_v34, %v2194_v38  ;;  %v5922_v38 = vld [vmem:[#allocation36_spill] sm:$0xff] }
 0x3fa   : > { %2321 = vst.msk [vmem:[%s3065_s10 + $0x58] sm:$0xff] %vm2309_vm4, %v2288_v29  ;;  %v2196_v5 = vpop.permute.xlu1 %2195  ;;  %v732_v3 = vadd.f32 %v5922_v38, %v5445_v48 }
 0x3fb   : > { %v2283_v62 = vadd.f32 %v2251_v27, %v690_v53  ;;  %v2252_v35 = vmax.f32 %v5322_v0, %v2196_v5  ;;  %v5923_v27 = vld [vmem:[#allocation26_spill] sm:$0xff] }
 0x3fc   : > { %v717_v5 = vadd.f32 %v5923_v27, %v5445_v48 }
 0x3fd   : > { %2316 = vst.msk [vmem:[%s3065_s10 + $0x30] sm:$0xff] %vm2309_vm4, %v2283_v62  ;;  %v2284_v24 = vadd.f32 %v2252_v35, %v693_v61  ;;  %v2210_v54 = vpop.permute.xlu2 %2209  ;;  %v5924_v35 = vld [vmem:[#allocation5_spill] sm:$0xff] }
 0x3fe   : > { %v2259_v34 = vmax.f32 %v5373_v37, %v2210_v54 }
 0x3ff   : > { %2317 = vst.msk [vmem:[%s3065_s10 + $0x38] sm:$0xff] %vm2309_vm4, %v2284_v24  ;;  %v729_v24 = vadd.f32 %v5924_v35, %v5445_v48  ;;  %v5936_v35 = vld [vmem:[#allocation41_spill] sm:$0xff] }
 0x400   : > { %v2291_v15 = vadd.f32 %v2259_v34, %v714_v11  ;;  %v2200_v46 = vpop.permute.xlu0 %2199 }
 0x401   : > { %v2254_v0 = vmax.f32 %v5332_v47, %v2200_v46  ;;  %v5918_v47 = vld [vmem:[#allocation22_spill] sm:$0xff] }
 0x402   : > { %2324 = vst.msk [vmem:[%s3065_s10 + $0x70] sm:$0xff] %vm2309_vm4, %v2291_v15  ;;  %v2202_v10 = vpop.permute.xlu1 %2201  ;;  %v708_v6 = vadd.f32 %v5918_v47, %v5445_v48 }
 0x403   : > { %v2286_v2 = vadd.f32 %v2254_v0, %v699_v13  ;;  %v2255_v26 = vmax.f32 %v5340_v55, %v2202_v10  ;;  %v738_v13 = vadd.f32 %v5926_v22, %v5445_v48 }
 0x405   : > { %2319 = vst.msk [vmem:[%s3065_s10 + $0x48] sm:$0xff] %vm2309_vm4, %v2286_v2  ;;  %v2287_v37 = vadd.f32 %v2255_v26, %v702_v58  ;;  %v741_v58 = vadd.f32 %v5927_v20, %v5445_v48 }
 0x407   : > { %2320 = vst.msk [vmem:[%s3065_s10 + $0x50] sm:$0xff] %vm2309_vm4, %v2287_v37 }
 0x408   : > { %v2206_v25 = vpop.permute.xlu0 %2205 }
 0x409   : > { %v2257_v39 = vmax.f32 %v5350_v16, %v2206_v25 }
 0x40a   : > { %v2208_v59 = vpop.permute.xlu1 %2207 }
 0x40b   : > { %v2289_v50 = vadd.f32 %v2257_v39, %v708_v6  ;;  %v2258_v55 = vmax.f32 %v5353_v31, %v2208_v59  ;;  %v720_v31 = vadd.f32 %v5921_v28, %v5445_v48  ;;  %v5929_v39 = vld [vmem:[#allocation13_spill] sm:$0xff] }
 0x40c   : > { %v750_v59 = vadd.f32 %v5929_v39, %v5445_v48 }
 0x40d   : > { %2322 = vst.msk [vmem:[%s3065_s10 + $0x60] sm:$0xff] %vm2309_vm4, %v2289_v50  ;;  %v2290_v36 = vadd.f32 %v2258_v55, %v711_v30  ;;  %v2216_v63 = vpop.permute.xlu2 %2215  ;;  %v5930_v30 = vld [vmem:[#allocation39_spill] sm:$0xff] }
 0x40e   : > { %v2262_v32 = vmax.f32 %v5404_v44, %v2216_v63  ;;  %v735_v50 = vadd.f32 %v5930_v30, %v5445_v48 }
 0x40f   : > { %2323 = vst.msk [vmem:[%s3065_s10 + $0x68] sm:$0xff] %vm2309_vm4, %v2290_v36 }
 0x410   : > { %v2294_v16 = vadd.f32 %v2262_v32, %v723_v42  ;;  %v5932_v32 = vld [vmem:[#allocation53_spill] sm:$0xff] }
 0x412   : > { %2327 = vst.msk [vmem:[%s3065_s10 + $0x88] sm:$0xff] %vm2309_vm4, %v2294_v16  ;;  %v2214_v9 = vpop.permute.xlu1 %2213  ;;  %v756_v16 = vadd.f32 %v5932_v32, %v5445_v48 }
 0x413   : > { %v2261_v17 = vmax.f32 %v5368_v14, %v2214_v9 }
 0x415   : > { %v2293_v40 = vadd.f32 %v2261_v17, %v720_v31  ;;  %v2222_v29 = vpop.permute.xlu2 %2221 }
 0x416   : > { %v2265_v44 = vmax.f32 %v5417_v18, %v2222_v29 }
 0x417   : > { %2326 = vst.msk [vmem:[%s3065_s10 + $0x80] sm:$0xff] %vm2309_vm4, %v2293_v40  ;;  %v2212_v53 = vpop.permute.xlu0 %2211  ;;  %v5933_v40 = vld [vmem:[#allocation54_spill] sm:$0xff] }
 0x418   : > { %v2297_v21 = vadd.f32 %v2265_v44, %v732_v3  ;;  %v2260_v61 = vmax.f32 %v5376_v4, %v2212_v53  ;;  %v5925_v4 = vld [vmem:[#allocation32_spill] sm:$0xff]  ;;  %v759_v29 = vadd.f32 %v5933_v40, %v5445_v48 }
 0x419   : > { %v726_v11 = vadd.f32 %v5925_v4, %v5445_v48 }
 0x41a   : > { %2330 = vst.msk [vmem:[%s3065_s10 + $0xa0] sm:$0xff] %vm2309_vm4, %v2297_v21  ;;  %v2292_v14 = vadd.f32 %v2260_v61, %v717_v5  ;;  %v2220_v62 = vpop.permute.xlu1 %2219  ;;  %v5935_v21 = vld [vmem:[#allocation11_spill] sm:$0xff] }
 0x41b   : > { %v2264_v54 = vmax.f32 %v5386_v52, %v2220_v62  ;;  %v765_v61 = vadd.f32 %v5935_v21, %v5445_v48 }
 0x41c   : > { %2325 = vst.msk [vmem:[%s3065_s10 + $0x78] sm:$0xff] %vm2309_vm4, %v2292_v14 }
 0x41d   : > { %v2296_v18 = vadd.f32 %v2264_v54, %v729_v24  ;;  %v762_v24 = vadd.f32 %v5936_v35, %v5445_v48 }
 0x41f   : > { %2329 = vst.msk [vmem:[%s3065_s10 + $0x98] sm:$0xff] %vm2309_vm4, %v2296_v18  ;;  %v2218_v41 = vpop.permute.xlu0 %2217 }
 0x420   : > { %v2263_v34 = vmax.f32 %v5394_v1, %v2218_v41 }
 0x422   : > { %v2295_v15 = vadd.f32 %v2263_v34, %v726_v11  ;;  %v2226_v46 = vpop.permute.xlu1 %2225 }
 0x423   : > { %v2267_v52 = vmax.f32 %v5399_v8, %v2226_v46  ;;  %v5928_v8 = vld [vmem:[#allocation12_spill] sm:$0xff] }
 0x424   : > { %2328 = vst.msk [vmem:[%s3065_s10 + $0x90] sm:$0xff] %vm2309_vm4, %v2295_v15  ;;  %v747_v37 = vadd.f32 %v5928_v8, %v5445_v48 }
 0x425   : > { %v2299_v0 = vadd.f32 %v2267_v52, %v738_v13  ;;  %v2228_v10 = vpop.permute.xlu2 %2227 }
 0x426   : > { %v2268_v2 = vmax.f32 %v5448_v45, %v2228_v10 }
 0x427   : > { %2332 = vst.msk [vmem:[%s3065_s10 + $0xb0] sm:$0xff] %vm2309_vm4, %v2299_v0 }
 0x428   : > { %v2300_v1 = vadd.f32 %v2268_v2, %v741_v58 }
 0x42a   : > { %2333 = vst.msk [vmem:[%s3065_s10 + $0xb8] sm:$0xff] %vm2309_vm4, %v2300_v1  ;;  %v2232_v26 = vpop.permute.xlu1 %2231 }
 0x42b   : > { %v2270_v25 = vmax.f32 %v5412_v49, %v2232_v26 }
 0x42d   : > { %v2302_v47 = vadd.f32 %v2270_v25, %v747_v37  ;;  %v2234_v6 = vpop.permute.xlu2 %2233 }
 0x42e   : > { %v2271_v45 = vmax.f32 %v5461_v12, %v2234_v6  ;;  %v5931_v12 = vld [vmem:[#allocation42_spill] sm:$0xff] }
 0x42f   : > { %2335 = vst.msk [vmem:[%s3065_s10 + $0xc8] sm:$0xff] %vm2309_vm4, %v2302_v47  ;;  %v2224_v60 = vpop.permute.xlu0 %2223  ;;  %v744_v42 = vadd.f32 %v5931_v12, %v5445_v48 }
 0x430   : > { %v2303_v55 = vadd.f32 %v2271_v45, %v750_v59  ;;  %v2266_v36 = vmax.f32 %v5420_v23, %v2224_v60 }
 0x432   : > { %2336 = vst.msk [vmem:[%s3065_s10 + $0xd0] sm:$0xff] %vm2309_vm4, %v2303_v55  ;;  %v2298_v49 = vadd.f32 %v2266_v36, %v735_v50 }
 0x434   : > { %2331 = vst.msk [vmem:[%s3065_s10 + $0xa8] sm:$0xff] %vm2309_vm4, %v2298_v49 }
 0x437   : > { %v2230_v63 = vpop.permute.xlu0 %2229  ;;  %v2238_v19 = vpop.permute.xlu1 %2237 }
 0x438   : > { %v2269_v9 = vmax.f32 %v5433_v7, %v2230_v63  ;;  %v2273_v28 = vmax.f32 %v5436_v57, %v2238_v19  ;;  %v5934_v57 = vld [vmem:[#allocation52_spill] sm:$0xff] }
 0x439   : > { %v753_v44 = vadd.f32 %v5934_v57, %v5445_v48 }
 0x43a   : > { %v2301_v23 = vadd.f32 %v2269_v9, %v744_v42  ;;  %v2305_v31 = vadd.f32 %v2273_v28, %v756_v16 }
 0x43c   : > { %2334 = vst.msk [vmem:[%s3065_s10 + $0xc0] sm:$0xff] %vm2309_vm4, %v2301_v23 }
 0x43d   : > { %2338 = vst.msk [vmem:[%s3065_s10 + $0xe0] sm:$0xff] %vm2309_vm4, %v2305_v31  ;;  %v2240_v17 = vpop.permute.xlu2 %2239 }
 0x43e   : > { %v2274_v38 = vmax.f32 %v5489_v56, %v2240_v17 }
 0x440   : > { %v2306_v3 = vadd.f32 %v2274_v38, %v759_v29 }
 0x442   : > { %2339 = vst.msk [vmem:[%s3065_s10 + $0xe8] sm:$0xff] %vm2309_vm4, %v2306_v3 }
 0x447   : > { %v2236_v7 = vpop.permute.xlu0 %2235 }
 0x448   : > { %v2272_v53 = vmax.f32 %v5466_v43, %v2236_v7 }
 0x44a   : > { %v2304_v27 = vadd.f32 %v2272_v53, %v753_v44 }
 0x44c   : > { %2337 = vst.msk [vmem:[%s3065_s10 + $0xd8] sm:$0xff] %vm2309_vm4, %v2304_v27 }
 0x452   : > { %v2244_v5 = vpop.permute.xlu1 %2243 }
 0x453   : > { %v2276_v14 = vmax.f32 %v5482_v51, %v2244_v5 }
 0x455   : > { %v2308_v56 = vadd.f32 %v2276_v14, %v765_v61 }
 0x457   : > { %2341 = vst.msk [vmem:[%s3065_s10 + $0xf8] sm:$0xff] %vm2309_vm4, %v2308_v56 }
 0x45f   : > { %v2242_v62 = vpop.permute.xlu0 %2241 }
 0x460   : > { %v2275_v54 = vmax.f32 %v5505_v33, %v2242_v62 }
 0x462   : > { %v2307_v18 = vadd.f32 %v2275_v54, %v762_v24 }
 0x464   : > { %2340 = vst.msk [vmem:[%s3065_s10 + $0xf0] sm:$0xff] %vm2309_vm4, %v2307_v18 }
 0x465 PF: > { %s15_s20 = sadd.s32 1, %s2651_s20   ;;  %s5937_s18 = smov %s2647_s19 }
 0x466   : > { %p12_p5 = scmp.ge.s32.totalorder %s15_s20, 4   ;;  %s5938_s19 = smov %s5940_s21 }
 0x468   :  { %14 = sbr.rel (!%p12_p5) target bundleno = 2 (0x2), region = 70 }

</bundles_post_ra>
